<compile_context>
chip_gen: v7x
topology: tpu7x:2x2x1
jax: 0.10.0
libtpu: 0.0.40
codegen_flags: <defaults>
</compile_context>

<pallas_src>
import numpy as np
import jax
import jax.numpy as jnp
from jax.experimental import pallas as pl
from jax.experimental.pallas import tpu as pltpu


_VMEM = pl.BlockSpec(memory_space=pltpu.MemorySpace.VMEM)


# ---------------------------------------------------------------------------
# Fused Pallas kernel: the entire forward pass (8 MXU matmuls, all lane-dense)
# ---------------------------------------------------------------------------
def _fused_forward_kernel(x_ref, w1_ref, w2_ref, w3_ref,
                          fc1w_ref, fc1b_ref, fc2w_ref, fc2b_ref, out_ref):
    """CNN_Local_USPS forward on VMEM-resident, lane-dense data.

    x_ref:    (N, 256)       flattened input image (row-major 16x16)
    w1_ref:   (4, 256, 392)  dense conv1 weights, one slab per 2x2-pool window elem
    w2_ref:   (392, 400)     dense conv2 weights
    w3_ref:   (400, 288)     dense conv3 weights
    fc1w_ref: (288, F)
    fc1b_ref: (1, F)
    fc2w_ref: (F, 128)       zero-padded to 128 lanes (first 10 columns are real)
    fc2b_ref: (1, 128)
    out_ref:  (N, 128)       padded logits; wrapper slices [:, :10]
    """
    f32 = jnp.float32
    x = x_ref[...]                                                    # (N, 256)

    # ---- conv1 + MaxPool2d(2,2) + ReLU: four dense K=256 matmuls, elementwise max.
    p = jnp.dot(x, w1_ref[0], preferred_element_type=f32)            # (N, 392)
    for w in range(1, 4):
        p = jnp.maximum(p, jnp.dot(x, w1_ref[w], preferred_element_type=f32))
    h = jnp.maximum(p, 0.0)                                           # (N, 392)

    # ---- conv2 + ReLU: one dense K=392 matmul.
    h = jnp.maximum(jnp.dot(h, w2_ref[...], preferred_element_type=f32), 0.0)  # (N, 400)

    # ---- conv3 + ReLU: one dense K=400 matmul.
    h = jnp.maximum(jnp.dot(h, w3_ref[...], preferred_element_type=f32), 0.0)  # (N, 288)

    # TODO(synk): nn.Dropout is identity in eval mode; training-mode dropout
    # (pltpu.prng_seed / prng_random_bits mask) is not implemented.

    # ---- fc1 + ReLU (flatten ordering already folded into the conv3 output layout).
    h = jnp.maximum(jnp.dot(h, fc1w_ref[...], preferred_element_type=f32)
                    + fc1b_ref[...], 0.0)                             # (N, F)

    # ---- fc2, output padded to 128 lanes for an unmasked, lane-dense store.
    out_ref[...] = (jnp.dot(h, fc2w_ref[...], preferred_element_type=f32)
                    + fc2b_ref[...])                                  # (N, 128)


# ---------------------------------------------------------------------------
# One-time weight re-layout (hoisted out of the forward path)
# ---------------------------------------------------------------------------
def _dense_local_conv(w, in_h, in_w):
    """Expand a LocalConv2d weight into a dense matmul matrix.

    w: (O, C, OH, OW, 9) torch-layout weight (leading batch-1 squeezed); the last
    dim is the unfolded 3x3 tap, k = di*3 + dj, value taken at input (i+di, j+dj).

    Returns (C*in_h*in_w, O*OH*OW) with channel-major flattening on both sides
    (in: c*in_h*in_w + ih*in_w + iw ; out: o*OH*OW + oi*OW + oj).
    """
    O, C, OH, OW, K2 = w.shape
    assert K2 == 9
    w6 = np.asarray(w, np.float32).reshape(O, C, OH, OW, 3, 3)
    sh = np.zeros((in_h, OH, 3), np.float32)
    sw = np.zeros((in_w, OW, 3), np.float32)
    for o in range(OH):
        for d in range(3):
            sh[o + d, o, d] = 1.0
    for o in range(OW):
        for d in range(3):
            sw[o + d, o, d] = 1.0
    dense = np.einsum("ocijab,hia,wjb->chwoij", w6, sh, sw)
    return dense.reshape(C * in_h * in_w, O * OH * OW)


def prepare_params(params, n_pad_logits=128):
    """Re-lay out PyTorch-convention params into dense kernel slabs (call once)."""
    # conv1 (1->8, 16x16 -> 14x14), with MaxPool2d(2,2) folded into 4 window slabs.
    d1 = _dense_local_conv(np.asarray(params["conv1_w"]), 16, 16)     # (256, 1568)
    d1 = d1.reshape(256, 8, 14, 14)
    w1 = np.stack([d1[:, :, a::2, b::2].reshape(256, 8 * 49)
                   for a in (0, 1) for b in (0, 1)], axis=0)          # (4, 256, 392)
    # conv2 (8->16, 7x7 -> 5x5) and conv3 (16->32, 5x5 -> 3x3) as dense matrices.
    w2 = _dense_local_conv(np.asarray(params["conv2_w"]), 7, 7)       # (392, 400)
    w3 = _dense_local_conv(np.asarray(params["conv3_w"]), 5, 5)       # (400, 288)
    # fc1: conv3 dense output ordering (c*9 + i*3 + j) == torch .view(-1, 288).
    fc1_w = np.asarray(params["fc1_w"], np.float32).T                 # (288, F)
    fc1_b = np.asarray(params["fc1_b"], np.float32)[None, :]          # (1, F)
    # fc2: zero-pad to 128 output lanes for a lane-dense final store.
    f = fc1_w.shape[1]
    fc2_w = np.zeros((f, n_pad_logits), np.float32)
    fc2_w[:, :10] = np.asarray(params["fc2_w"], np.float32).T
    fc2_b = np.zeros((1, n_pad_logits), np.float32)
    fc2_b[0, :10] = np.asarray(params["fc2_b"], np.float32)
    return {
        "conv1_w": jnp.asarray(w1), "conv2_w": jnp.asarray(w2),
        "conv3_w": jnp.asarray(w3),
        "fc1_w": jnp.asarray(fc1_w), "fc1_b": jnp.asarray(fc1_b),
        "fc2_w": jnp.asarray(fc2_w), "fc2_b": jnp.asarray(fc2_b),
    }


# ---------------------------------------------------------------------------
# Forward wrapper: one fused pallas_call
# ---------------------------------------------------------------------------
def cnn_local_usps_forward(kparams, x):
    """x: (N, 1, 16, 16) float32 -> logits (N, 10)."""
    n = x.shape[0]
    x_flat = x.reshape(n, 16 * 16)          # contiguous reshape; no transpose, dense DMA
    out = pl.pallas_call(
        _fused_forward_kernel,
        out_shape=jax.ShapeDtypeStruct((n, kparams["fc2_w"].shape[1]), jnp.float32),
        in_specs=[_VMEM] * 8,
        out_specs=_VMEM,
    )(x_flat, kparams["conv1_w"], kparams["conv2_w"], kparams["conv3_w"],
      kparams["fc1_w"], kparams["fc1_b"], kparams["fc2_w"], kparams["fc2_b"])
    return out[:, :10]


# ---------------------------------------------------------------------------
# Deterministic parameter init (mirrors the PyTorch module __init__ shapes)
# ---------------------------------------------------------------------------
def init_params(key, fc_1_output=64):
    k = jax.random.split(key, 7)
    fin1 = 32 * 3 * 3
    b1 = 1.0 / float(fin1) ** 0.5
    b2 = 1.0 / float(fc_1_output) ** 0.5
    return {
        # LocalConv2d weights: torch.randn(1, O, C, OH, OW, 9) with leading 1 squeezed
        "conv1_w": jax.random.normal(k[0], (8, 1, 14, 14, 9), jnp.float32),
        "conv2_w": jax.random.normal(k[1], (16, 8, 5, 5, 9), jnp.float32),
        "conv3_w": jax.random.normal(k[2], (32, 16, 3, 3, 9), jnp.float32),
        # nn.Linear-style init
        "fc1_w": jax.random.uniform(k[3], (fc_1_output, fin1), jnp.float32, -b1, b1),
        "fc1_b": jax.random.uniform(k[4], (fc_1_output,), jnp.float32, -b1, b1),
        "fc2_w": jax.random.uniform(k[5], (10, fc_1_output), jnp.float32, -b2, b2),
        "fc2_b": jax.random.uniform(k[6], (10,), jnp.float32, -b2, b2),
    }


# ---------------------------------------------------------------------------
# Pure-JAX reference (same math, torch-layout params) for the correctness check
# ---------------------------------------------------------------------------
def _ref_local_conv(x, w):
    O, C, OH, OW, KK = w.shape
    patches = jnp.stack(
        [x[:, :, di:di + OH, dj:dj + OW] for di in range(3) for dj in range(3)],
        axis=-1)
    return jnp.einsum("ncijk,ocijk->noij", patches, w,
                      precision=jax.lax.Precision.HIGHEST)


def ref_forward(params, x):
    h = jax.nn.relu(_ref_local_conv(x, params["conv1_w"]))
    n, c, hh, ww = h.shape
    h = jnp.max(h.reshape(n, c, hh // 2, 2, ww // 2, 2), axis=(3, 5))
    h = jax.nn.relu(_ref_local_conv(h, params["conv2_w"]))
    h = jax.nn.relu(_ref_local_conv(h, params["conv3_w"]))
    feat = h.reshape(n, -1)
    h = jax.nn.relu(jnp.dot(feat, params["fc1_w"].T,
                            precision=jax.lax.Precision.HIGHEST) + params["fc1_b"])
    return jnp.dot(h, params["fc2_w"].T,
                   precision=jax.lax.Precision.HIGHEST) + params["fc2_b"]


if __name__ == "__main__":
    key = jax.random.PRNGKey(0)
    pkey, xkey = jax.random.split(key)
    params = init_params(pkey, fc_1_output=64)
    kparams = prepare_params(params)           # one-time, hoisted dense re-layout
    x = jax.random.normal(xkey, (2, 1, 16, 16), jnp.float32)

    fwd = jax.jit(cnn_local_usps_forward)
    out = jax.block_until_ready(fwd(kparams, x))
    assert out.shape == (2, 10), out.shape

    ref = ref_forward(params, x)
    rel_err = float(jnp.max(jnp.abs(out - ref)) / (jnp.max(jnp.abs(ref)) + 1e-6))
    # Kernel matmuls use the MXU's default f32 path (f32 accumulation via
    # preferred_element_type); 2e-2 leaves headroom for its reduced-precision passes
    # while still catching any indexing/ordering bug (those show up as O(1) errors).
    assert rel_err < 2e-2, f"mismatch vs reference: rel_err={rel_err}"
    print("KERNEL_OK")
</pallas_src>

<mosaic_0001>
module attributes {stable_mosaic.version = 11 : i64} {
  func.func @_fused_forward_kernel(%arg0: memref<2x256xf32, #tpu.memory_space<vmem>>, %arg1: memref<4x256x392xf32, #tpu.memory_space<vmem>>, %arg2: memref<392x400xf32, #tpu.memory_space<vmem>>, %arg3: memref<400x288xf32, #tpu.memory_space<vmem>>, %arg4: memref<288x64xf32, #tpu.memory_space<vmem>>, %arg5: memref<1x64xf32, #tpu.memory_space<vmem>>, %arg6: memref<64x128xf32, #tpu.memory_space<vmem>>, %arg7: memref<1x128xf32, #tpu.memory_space<vmem>>, %arg8: memref<2x128xf32, #tpu.memory_space<vmem>>) attributes {dimension_semantics = [], scalar_prefetch = 0 : i64, scratch_operands = 0 : i64, tpu.core_type = #tpu.core_type<tc>} {
    %c0 = arith.constant 0 : index
    %c0_0 = arith.constant 0 : index
    %0 = vector.load %arg0[%c0, %c0_0] : memref<2x256xf32, #tpu.memory_space<vmem>>, vector<2x256xf32>
    %c0_1 = arith.constant 0 : index
    %c0_2 = arith.constant 0 : index
    %c0_3 = arith.constant 0 : index
    %1 = vector.load %arg1[%c0_1, %c0_2, %c0_3] : memref<4x256x392xf32, #tpu.memory_space<vmem>>, vector<1x256x392xf32>
    %2 = vector.shape_cast %1 : vector<1x256x392xf32> to vector<256x392xf32>
    %cst = arith.constant dense<0.000000e+00> : vector<2x392xf32>
    %3 = tpu.matmul %0, %2, %cst {dimension_numbers = #tpu.dot_dimension_numbers<[1], [0], [0], [1], [0, 0, 1, 1], [], []>} : vector<2x256xf32>, vector<256x392xf32>, vector<2x392xf32> -> vector<2x392xf32>
    %c1 = arith.constant 1 : index
    %c0_4 = arith.constant 0 : index
    %c0_5 = arith.constant 0 : index
    %4 = vector.load %arg1[%c1, %c0_4, %c0_5] : memref<4x256x392xf32, #tpu.memory_space<vmem>>, vector<1x256x392xf32>
    %5 = vector.shape_cast %4 : vector<1x256x392xf32> to vector<256x392xf32>
    %cst_6 = arith.constant dense<0.000000e+00> : vector<2x392xf32>
    %6 = tpu.matmul %0, %5, %cst_6 {dimension_numbers = #tpu.dot_dimension_numbers<[1], [0], [0], [1], [0, 0, 1, 1], [], []>} : vector<2x256xf32>, vector<256x392xf32>, vector<2x392xf32> -> vector<2x392xf32>
    %7 = arith.maximumf %3, %6 : vector<2x392xf32>
    %c2 = arith.constant 2 : index
    %c0_7 = arith.constant 0 : index
    %c0_8 = arith.constant 0 : index
    %8 = vector.load %arg1[%c2, %c0_7, %c0_8] : memref<4x256x392xf32, #tpu.memory_space<vmem>>, vector<1x256x392xf32>
    %9 = vector.shape_cast %8 : vector<1x256x392xf32> to vector<256x392xf32>
    %cst_9 = arith.constant dense<0.000000e+00> : vector<2x392xf32>
    %10 = tpu.matmul %0, %9, %cst_9 {dimension_numbers = #tpu.dot_dimension_numbers<[1], [0], [0], [1], [0, 0, 1, 1], [], []>} : vector<2x256xf32>, vector<256x392xf32>, vector<2x392xf32> -> vector<2x392xf32>
    %11 = arith.maximumf %7, %10 : vector<2x392xf32>
    %c3 = arith.constant 3 : index
    %c0_10 = arith.constant 0 : index
    %c0_11 = arith.constant 0 : index
    %12 = vector.load %arg1[%c3, %c0_10, %c0_11] : memref<4x256x392xf32, #tpu.memory_space<vmem>>, vector<1x256x392xf32>
    %13 = vector.shape_cast %12 : vector<1x256x392xf32> to vector<256x392xf32>
    %cst_12 = arith.constant dense<0.000000e+00> : vector<2x392xf32>
    %14 = tpu.matmul %0, %13, %cst_12 {dimension_numbers = #tpu.dot_dimension_numbers<[1], [0], [0], [1], [0, 0, 1, 1], [], []>} : vector<2x256xf32>, vector<256x392xf32>, vector<2x392xf32> -> vector<2x392xf32>
    %15 = arith.maximumf %11, %14 : vector<2x392xf32>
    %cst_13 = arith.constant 0.000000e+00 : f32
    %16 = vector.broadcast %cst_13 : f32 to vector<2x392xf32>
    %17 = arith.maximumf %15, %16 : vector<2x392xf32>
    %c0_14 = arith.constant 0 : index
    %c0_15 = arith.constant 0 : index
    %18 = vector.load %arg2[%c0_14, %c0_15] : memref<392x400xf32, #tpu.memory_space<vmem>>, vector<392x400xf32>
    %cst_16 = arith.constant dense<0.000000e+00> : vector<2x400xf32>
    %19 = tpu.matmul %17, %18, %cst_16 {dimension_numbers = #tpu.dot_dimension_numbers<[1], [0], [0], [1], [0, 0, 1, 1], [], []>} : vector<2x392xf32>, vector<392x400xf32>, vector<2x400xf32> -> vector<2x400xf32>
    %cst_17 = arith.constant 0.000000e+00 : f32
    %20 = vector.broadcast %cst_17 : f32 to vector<2x400xf32>
    %21 = arith.maximumf %19, %20 : vector<2x400xf32>
    %c0_18 = arith.constant 0 : index
    %c0_19 = arith.constant 0 : index
    %22 = vector.load %arg3[%c0_18, %c0_19] : memref<400x288xf32, #tpu.memory_space<vmem>>, vector<400x288xf32>
    %cst_20 = arith.constant dense<0.000000e+00> : vector<2x288xf32>
    %23 = tpu.matmul %21, %22, %cst_20 {dimension_numbers = #tpu.dot_dimension_numbers<[1], [0], [0], [1], [0, 0, 1, 1], [], []>} : vector<2x400xf32>, vector<400x288xf32>, vector<2x288xf32> -> vector<2x288xf32>
    %cst_21 = arith.constant 0.000000e+00 : f32
    %24 = vector.broadcast %cst_21 : f32 to vector<2x288xf32>
    %25 = arith.maximumf %23, %24 : vector<2x288xf32>
    %c0_22 = arith.constant 0 : index
    %c0_23 = arith.constant 0 : index
    %26 = vector.load %arg4[%c0_22, %c0_23] : memref<288x64xf32, #tpu.memory_space<vmem>>, vector<288x64xf32>
    %cst_24 = arith.constant dense<0.000000e+00> : vector<2x64xf32>
    %27 = tpu.matmul %25, %26, %cst_24 {dimension_numbers = #tpu.dot_dimension_numbers<[1], [0], [0], [1], [0, 0, 1, 1], [], []>} : vector<2x288xf32>, vector<288x64xf32>, vector<2x64xf32> -> vector<2x64xf32>
    %c0_25 = arith.constant 0 : index
    %c0_26 = arith.constant 0 : index
    %28 = vector.load %arg5[%c0_25, %c0_26] : memref<1x64xf32, #tpu.memory_space<vmem>>, vector<1x64xf32>
    %29 = vector.broadcast %28 : vector<1x64xf32> to vector<2x64xf32>
    %30 = arith.addf %27, %29 : vector<2x64xf32>
    %cst_27 = arith.constant 0.000000e+00 : f32
    %31 = vector.broadcast %cst_27 : f32 to vector<2x64xf32>
    %32 = arith.maximumf %30, %31 : vector<2x64xf32>
    %c0_28 = arith.constant 0 : index
    %c0_29 = arith.constant 0 : index
    %33 = vector.load %arg6[%c0_28, %c0_29] : memref<64x128xf32, #tpu.memory_space<vmem>>, vector<64x128xf32>
    %cst_30 = arith.constant dense<0.000000e+00> : vector<2x128xf32>
    %34 = tpu.matmul %32, %33, %cst_30 {dimension_numbers = #tpu.dot_dimension_numbers<[1], [0], [0], [1], [0, 0, 1, 1], [], []>} : vector<2x64xf32>, vector<64x128xf32>, vector<2x128xf32> -> vector<2x128xf32>
    %c0_31 = arith.constant 0 : index
    %c0_32 = arith.constant 0 : index
    %35 = vector.load %arg7[%c0_31, %c0_32] : memref<1x128xf32, #tpu.memory_space<vmem>>, vector<1x128xf32>
    %36 = vector.broadcast %35 : vector<1x128xf32> to vector<2x128xf32>
    %37 = arith.addf %34, %36 : vector<2x128xf32>
    %c0_33 = arith.constant 0 : index
    %c0_34 = arith.constant 0 : index
    %38 = vector.load %arg8[%c0_33, %c0_34] : memref<2x128xf32, #tpu.memory_space<vmem>>, vector<2x128xf32>
    tpu.vector_store %arg8[%c0_33, %c0_34], %37 {strides = array<i32>} : memref<2x128xf32, #tpu.memory_space<vmem>>, vector<2x128xf32>,
    return
  }
}

</mosaic_0001>

<bundles_post_ra>
// kernel: cnn_local_usps_forward.1
= control target key start
LH: loop header
LB: loop body
LE: loop exit
PB: predicated region body
PF: predicated region fallthrough
CT: control target
= control target key end

     0   :  { %s6661_s0 = inlined_call_operand.vmem [shape: f32[2,256], index: 0, kind: input, shape index: {}]   ;;  %s6662_s1 = inlined_call_operand.vmem [shape: f32[4,256,392], index: 1, kind: input, shape index: {}]   ;;  %s6663_s2 = inlined_call_operand.vmem [shape: f32[392,400], index: 2, kind: input, shape index: {}]   ;;  %s6664_s3 = inlined_call_operand.vmem [shape: f32[400,288], index: 3, kind: input, shape index: {}]   ;;  %s6665_s4 = inlined_call_operand.vmem [shape: f32[288,64], index: 4, kind: input, shape index: {}]   ;;  %s6666_s5 = inlined_call_operand.vmem [shape: f32[1,64], index: 5, kind: input, shape index: {}]   ;;  %s6667_s6 = inlined_call_operand.vmem [shape: f32[64,128], index: 6, kind: input, shape index: {}]   ;;  %s6668_s7 = inlined_call_operand.vmem [shape: f32[1,128], index: 7, kind: input, shape index: {}]   ;;  %s6669_s8 = inlined_call_operand.hbm [shape: f32[2,128], index: 8, kind: output, shape index: {}]  }
   0x1   :  { %v32_v0 = vld [vmem:[%s6662_s1 + $0x8] sm:$0xff]  ;;  %v34_v2 = vld [vmem:[%s6662_s1 + $0x18] sm:$0xff]  ;;  %v31_v5 = vld [vmem:[%s6662_s1] sm:$0xff] }
   0x2   :  { %v36_v1 = vld [vmem:[%s6662_s1 + $0x28] sm:$0xff]  ;;  %v38_v4 = vld [vmem:[%s6662_s1 + $0x38] sm:$0xff]  ;;  %v35_v6 = vld [vmem:[%s6662_s1 + $0x20] sm:$0xff] }
   0x3   :  { %v2867_v3 = vpack.c.bf16 %v36_v1, %v32_v0  ;;  %v2931_v7 = vpack.c.bf16 %v38_v4, %v34_v2  ;;  %v2869_v8 = vpack.c.bf16 %v35_v6, %v31_v5  ;;  %v33_v9 = vld [vmem:[%s6662_s1 + $0x10] sm:$0xff]  ;;  %v40_v11 = vld [vmem:[%s6662_s1 + $0x48] sm:$0xff]  ;;  %v42_v14 = vld [vmem:[%s6662_s1 + $0x58] sm:$0xff] }
   0x4   :  { %v37_v10 = vld [vmem:[%s6662_s1 + $0x30] sm:$0xff]  ;;  %v44_v13 = vld [vmem:[%s6662_s1 + $0x68] sm:$0xff]  ;;  %v46_v15 = vld [vmem:[%s6662_s1 + $0x78] sm:$0xff] }
   0x5   :  { %2868 = vmatprep.subr.bf16.mxu0 %v2867_v3  ;;  %v2933_v12 = vpack.c.bf16 %v37_v10, %v33_v9  ;;  %2932 = vmatprep.subr.bf16.mxu1 %v2931_v7  ;;  %v2871_v16 = vpack.c.bf16 %v44_v13, %v40_v11  ;;  %v2935_v17 = vpack.c.bf16 %v46_v15, %v42_v14  ;;  %v39_v18 = vld [vmem:[%s6662_s1 + $0x40] sm:$0xff]  ;;  %v41_v20 = vld [vmem:[%s6662_s1 + $0x50] sm:$0xff]  ;;  %v48_v23 = vld [vmem:[%s6662_s1 + $0x88] sm:$0xff] }
   0x6   :  { %2870 = vmatpush1.bf16.msra.mxu0 %v2869_v8  ;;  %v43_v19 = vld [vmem:[%s6662_s1 + $0x60] sm:$0xff]  ;;  %v45_v22 = vld [vmem:[%s6662_s1 + $0x70] sm:$0xff]  ;;  %v52_v24 = vld [vmem:[%s6662_s1 + $0xa8] sm:$0xff] }
   0x7   :  { %2934 = vmatpush1.bf16.msra.mxu1 %v2933_v12  ;;  %v2873_v21 = vpack.c.bf16 %v43_v19, %v39_v18  ;;  %2872 = vmatprep.subr.bf16.mxu0 %v2871_v16  ;;  %v2937_v25 = vpack.c.bf16 %v45_v22, %v41_v20  ;;  %v2875_v26 = vpack.c.bf16 %v52_v24, %v48_v23  ;;  %v50_v27 = vld [vmem:[%s6662_s1 + $0x98] sm:$0xff]  ;;  %v47_v29 = vld [vmem:[%s6662_s1 + $0x80] sm:$0xff]  ;;  %v49_v32 = vld [vmem:[%s6662_s1 + $0x90] sm:$0xff] }
   0x8   :  { %2936 = vmatprep.subr.bf16.mxu1 %v2935_v17  ;;  %v54_v28 = vld [vmem:[%s6662_s1 + $0xb8] sm:$0xff]  ;;  %v51_v31 = vld [vmem:[%s6662_s1 + $0xa0] sm:$0xff]  ;;  %v53_v33 = vld [vmem:[%s6662_s1 + $0xb0] sm:$0xff] }
   0x9   :  { %v2939_v30 = vpack.c.bf16 %v54_v28, %v50_v27  ;;  %v2877_v34 = vpack.c.bf16 %v51_v31, %v47_v29  ;;  %v56_v35 = vld [vmem:[%s6662_s1 + $0xc8] sm:$0xff]  ;;  %v58_v37 = vld [vmem:[%s6662_s1 + $0xd8] sm:$0xff]  ;;  %v2941_v38 = vpack.c.bf16 %v53_v33, %v49_v32  ;;  %v55_v41 = vld [vmem:[%s6662_s1 + $0xc0] sm:$0xff] }
   0xa   :  { %2874 = vmatpush1.bf16.msra.mxu0 %v2873_v21  ;;  %v60_v36 = vld [vmem:[%s6662_s1 + $0xe8] sm:$0xff]  ;;  %v62_v40 = vld [vmem:[%s6662_s1 + $0xf8] sm:$0xff]  ;;  %v59_v42 = vld [vmem:[%s6662_s1 + $0xe0] sm:$0xff] }
   0xb   :  { %2938 = vmatpush1.bf16.msra.mxu1 %v2937_v25  ;;  %2876 = vmatprep.subr.bf16.mxu0 %v2875_v26  ;;  %v2879_v39 = vpack.c.bf16 %v60_v36, %v56_v35  ;;  %v2943_v43 = vpack.c.bf16 %v62_v40, %v58_v37  ;;  %v57_v44 = vld [vmem:[%s6662_s1 + $0xd0] sm:$0xff]  ;;  %v64_v46 = vld [vmem:[%s6662_s1 + $0x108] sm:$0xff]  ;;  %v66_v48 = vld [vmem:[%s6662_s1 + $0x118] sm:$0xff]  ;;  %v2881_v50 = vpack.c.bf16 %v59_v42, %v55_v41 }
   0xc   :  { %2940 = vmatprep.subr.bf16.mxu1 %v2939_v30  ;;  %v61_v45 = vld [vmem:[%s6662_s1 + $0xf0] sm:$0xff]  ;;  %v68_v47 = vld [vmem:[%s6662_s1 + $0x128] sm:$0xff]  ;;  %v70_v49 = vld [vmem:[%s6662_s1 + $0x138] sm:$0xff] }
   0xd   :  { %v2945_v51 = vpack.c.bf16 %v61_v45, %v57_v44  ;;  %v2883_v52 = vpack.c.bf16 %v68_v47, %v64_v46  ;;  %v63_v53 = vld [vmem:[%s6662_s1 + $0x100] sm:$0xff]  ;;  %v65_v55 = vld [vmem:[%s6662_s1 + $0x110] sm:$0xff]  ;;  %v2947_v56 = vpack.c.bf16 %v70_v49, %v66_v48  ;;  %v72_v58 = vld [vmem:[%s6662_s1 + $0x148] sm:$0xff] }
   0xe   :  { %2878 = vmatpush1.bf16.msra.mxu0 %v2877_v34  ;;  %v67_v54 = vld [vmem:[%s6662_s1 + $0x120] sm:$0xff]  ;;  %v69_v57 = vld [vmem:[%s6662_s1 + $0x130] sm:$0xff]  ;;  %v76_v59 = vld [vmem:[%s6662_s1 + $0x168] sm:$0xff] }
   0xf   :  { %2942 = vmatpush1.bf16.msra.mxu1 %v2941_v38  ;;  %2880 = vmatprep.subr.bf16.mxu0 %v2879_v39  ;;  %v74_v60 = vld [vmem:[%s6662_s1 + $0x158] sm:$0xff]  ;;  %v2885_v62 = vpack.c.bf16 %v67_v54, %v63_v53  ;;  %v2949_v63 = vpack.c.bf16 %v69_v57, %v65_v55  ;;  %v2887_v0 = vpack.c.bf16 %v76_v59, %v72_v58  ;;  %v71_v1 = vld [vmem:[%s6662_s1 + $0x140] sm:$0xff]  ;;  %v73_v3 = vld [vmem:[%s6662_s1 + $0x150] sm:$0xff] }
  0x10   :  { %2944 = vmatprep.subr.bf16.mxu1 %v2943_v43  ;;  %v78_v61 = vld [vmem:[%s6662_s1 + $0x178] sm:$0xff]  ;;  %v75_v2 = vld [vmem:[%s6662_s1 + $0x160] sm:$0xff]  ;;  %v77_v5 = vld [vmem:[%s6662_s1 + $0x170] sm:$0xff] }
  0x11   :  { %v2951_v4 = vpack.c.bf16 %v78_v61, %v74_v60  ;;  %v80_v6 = vld [vmem:[%s6662_s1 + $0x188] sm:$0xff]  ;;  %v82_v8 = vld [vmem:[%s6662_s1 + $0x198] sm:$0xff]  ;;  %v2889_v10 = vpack.c.bf16 %v75_v2, %v71_v1  ;;  %v2953_v11 = vpack.c.bf16 %v77_v5, %v73_v3  ;;  %v79_v13 = vld [vmem:[%s6662_s1 + $0x180] sm:$0xff] }
  0x12   :  { %2882 = vmatpush1.bf16.msra.mxu0 %v2881_v50  ;;  %v84_v7 = vld [vmem:[%s6662_s1 + $0x1a8] sm:$0xff]  ;;  %v86_v9 = vld [vmem:[%s6662_s1 + $0x1b8] sm:$0xff]  ;;  %v83_v14 = vld [vmem:[%s6662_s1 + $0x1a0] sm:$0xff] }
  0x13   :  { %2946 = vmatpush1.bf16.msra.mxu1 %v2945_v51  ;;  %2884 = vmatprep.subr.bf16.mxu0 %v2883_v52  ;;  %v2891_v12 = vpack.c.bf16 %v84_v7, %v80_v6  ;;  %v81_v15 = vld [vmem:[%s6662_s1 + $0x190] sm:$0xff]  ;;  %v2955_v16 = vpack.c.bf16 %v86_v9, %v82_v8  ;;  %v88_v18 = vld [vmem:[%s6662_s1 + $0x1c8] sm:$0xff]  ;;  %v90_v20 = vld [vmem:[%s6662_s1 + $0x1d8] sm:$0xff]  ;;  %v2893_v22 = vpack.c.bf16 %v83_v14, %v79_v13 }
  0x14   :  { %2948 = vmatprep.subr.bf16.mxu1 %v2947_v56  ;;  %v85_v17 = vld [vmem:[%s6662_s1 + $0x1b0] sm:$0xff]  ;;  %v92_v19 = vld [vmem:[%s6662_s1 + $0x1e8] sm:$0xff]  ;;  %v94_v21 = vld [vmem:[%s6662_s1 + $0x1f8] sm:$0xff] }
  0x15   :  { %v2957_v23 = vpack.c.bf16 %v85_v17, %v81_v15  ;;  %v2895_v24 = vpack.c.bf16 %v92_v19, %v88_v18  ;;  %v87_v25 = vld [vmem:[%s6662_s1 + $0x1c0] sm:$0xff]  ;;  %v89_v27 = vld [vmem:[%s6662_s1 + $0x1d0] sm:$0xff]  ;;  %v2959_v28 = vpack.c.bf16 %v94_v21, %v90_v20  ;;  %v96_v30 = vld [vmem:[%s6662_s1 + $0x208] sm:$0xff] }
  0x16   :  { %2886 = vmatpush1.bf16.msra.mxu0 %v2885_v62  ;;  %v91_v26 = vld [vmem:[%s6662_s1 + $0x1e0] sm:$0xff]  ;;  %v93_v29 = vld [vmem:[%s6662_s1 + $0x1f0] sm:$0xff]  ;;  %v100_v31 = vld [vmem:[%s6662_s1 + $0x228] sm:$0xff] }
  0x17   :  { %2950 = vmatpush1.bf16.msra.mxu1 %v2949_v63  ;;  %2888 = vmatprep.subr.bf16.mxu0 %v2887_v0  ;;  %v98_v32 = vld [vmem:[%s6662_s1 + $0x218] sm:$0xff]  ;;  %v2897_v34 = vpack.c.bf16 %v91_v26, %v87_v25  ;;  %v2961_v35 = vpack.c.bf16 %v93_v29, %v89_v27  ;;  %v2899_v36 = vpack.c.bf16 %v100_v31, %v96_v30  ;;  %v95_v37 = vld [vmem:[%s6662_s1 + $0x200] sm:$0xff]  ;;  %v97_v39 = vld [vmem:[%s6662_s1 + $0x210] sm:$0xff] }
  0x18   :  { %2952 = vmatprep.subr.bf16.mxu1 %v2951_v4  ;;  %v102_v33 = vld [vmem:[%s6662_s1 + $0x238] sm:$0xff]  ;;  %v99_v38 = vld [vmem:[%s6662_s1 + $0x220] sm:$0xff]  ;;  %v101_v41 = vld [vmem:[%s6662_s1 + $0x230] sm:$0xff] }
  0x19   :  { %v2963_v40 = vpack.c.bf16 %v102_v33, %v98_v32  ;;  %v104_v42 = vld [vmem:[%s6662_s1 + $0x248] sm:$0xff]  ;;  %v106_v44 = vld [vmem:[%s6662_s1 + $0x258] sm:$0xff]  ;;  %v2901_v46 = vpack.c.bf16 %v99_v38, %v95_v37  ;;  %v2965_v47 = vpack.c.bf16 %v101_v41, %v97_v39  ;;  %v103_v49 = vld [vmem:[%s6662_s1 + $0x240] sm:$0xff] }
  0x1a   :  { %2890 = vmatpush1.bf16.msra.mxu0 %v2889_v10  ;;  %v108_v43 = vld [vmem:[%s6662_s1 + $0x268] sm:$0xff]  ;;  %v110_v45 = vld [vmem:[%s6662_s1 + $0x278] sm:$0xff]  ;;  %v107_v50 = vld [vmem:[%s6662_s1 + $0x260] sm:$0xff] }
  0x1b   :  { %2954 = vmatpush1.bf16.msra.mxu1 %v2953_v11  ;;  %2892 = vmatprep.subr.bf16.mxu0 %v2891_v12  ;;  %v2903_v48 = vpack.c.bf16 %v108_v43, %v104_v42  ;;  %v105_v51 = vld [vmem:[%s6662_s1 + $0x250] sm:$0xff]  ;;  %v2967_v52 = vpack.c.bf16 %v110_v45, %v106_v44  ;;  %v112_v54 = vld [vmem:[%s6662_s1 + $0x288] sm:$0xff]  ;;  %v114_v56 = vld [vmem:[%s6662_s1 + $0x298] sm:$0xff]  ;;  %v2905_v58 = vpack.c.bf16 %v107_v50, %v103_v49 }
  0x1c   :  { %2956 = vmatprep.subr.bf16.mxu1 %v2955_v16  ;;  %v109_v53 = vld [vmem:[%s6662_s1 + $0x270] sm:$0xff]  ;;  %v116_v55 = vld [vmem:[%s6662_s1 + $0x2a8] sm:$0xff]  ;;  %v118_v57 = vld [vmem:[%s6662_s1 + $0x2b8] sm:$0xff] }
  0x1d   :  { %v2969_v59 = vpack.c.bf16 %v109_v53, %v105_v51  ;;  %v2907_v60 = vpack.c.bf16 %v116_v55, %v112_v54  ;;  %v111_v61 = vld [vmem:[%s6662_s1 + $0x280] sm:$0xff]  ;;  %v113_v63 = vld [vmem:[%s6662_s1 + $0x290] sm:$0xff]  ;;  %v2971_v0 = vpack.c.bf16 %v118_v57, %v114_v56  ;;  %v120_v2 = vld [vmem:[%s6662_s1 + $0x2c8] sm:$0xff] }
  0x1e   :  { %2894 = vmatpush1.bf16.msra.mxu0 %v2893_v22  ;;  %v115_v62 = vld [vmem:[%s6662_s1 + $0x2a0] sm:$0xff]  ;;  %v117_v1 = vld [vmem:[%s6662_s1 + $0x2b0] sm:$0xff]  ;;  %v124_v3 = vld [vmem:[%s6662_s1 + $0x2e8] sm:$0xff] }
  0x1f   :  { %2958 = vmatpush1.bf16.msra.mxu1 %v2957_v23  ;;  %2896 = vmatprep.subr.bf16.mxu0 %v2895_v24  ;;  %v122_v4 = vld [vmem:[%s6662_s1 + $0x2d8] sm:$0xff]  ;;  %v2909_v6 = vpack.c.bf16 %v115_v62, %v111_v61  ;;  %v119_v7 = vld [vmem:[%s6662_s1 + $0x2c0] sm:$0xff]  ;;  %v2973_v8 = vpack.c.bf16 %v117_v1, %v113_v63  ;;  %v2911_v9 = vpack.c.bf16 %v124_v3, %v120_v2  ;;  %v121_v11 = vld [vmem:[%s6662_s1 + $0x2d0] sm:$0xff] }
  0x20   :  { %2960 = vmatprep.subr.bf16.mxu1 %v2959_v28  ;;  %v126_v5 = vld [vmem:[%s6662_s1 + $0x2f8] sm:$0xff]  ;;  %v123_v10 = vld [vmem:[%s6662_s1 + $0x2e0] sm:$0xff]  ;;  %v125_v12 = vld [vmem:[%s6662_s1 + $0x2f0] sm:$0xff] }
  0x21   :  { %v2975_v13 = vpack.c.bf16 %v126_v5, %v122_v4  ;;  %v128_v14 = vld [vmem:[%s6662_s1 + $0x308] sm:$0xff]  ;;  %v4161_v16 = vld.sshfl [vmem:[%s6661_s0] sm:$0x33 pattern:$0x76325410]  ;;  %v130_v17 = vld [vmem:[%s6662_s1 + $0x318] sm:$0xff]  ;;  %v2913_v20 = vpack.c.bf16 %v123_v10, %v119_v7  ;;  %v2977_v21 = vpack.c.bf16 %v125_v12, %v121_v11 }
  0x22   :  { %2898 = vmatpush1.bf16.msra.mxu0 %v2897_v34  ;;  %v132_v15 = vld [vmem:[%s6662_s1 + $0x328] sm:$0xff]  ;;  %v134_v18 = vld [vmem:[%s6662_s1 + $0x338] sm:$0xff]  ;;  %v4171_v19 = vcombine.high %v4161_v16, %v4161_v16  ;;  %v127_v23 = vld [vmem:[%s6662_s1 + $0x300] sm:$0xff] }
  0x23   :  { %2962 = vmatpush1.bf16.msra.mxu1 %v2961_v35  ;;  %2900 = vmatprep.subr.bf16.mxu0 %v2899_v36  ;;  %v2915_v22 = vpack.c.bf16 %v132_v15, %v128_v14  ;;  %v131_v24 = vld [vmem:[%s6662_s1 + $0x320] sm:$0xff]  ;;  %v129_v25 = vld [vmem:[%s6662_s1 + $0x310] sm:$0xff]  ;;  %v2979_v26 = vpack.c.bf16 %v134_v18, %v130_v17  ;;  %v136_v28 = vld [vmem:[%s6662_s1 + $0x348] sm:$0xff] }
  0x24   :  { %2964 = vmatprep.subr.bf16.mxu1 %v2963_v40  ;;  %v133_v27 = vld [vmem:[%s6662_s1 + $0x330] sm:$0xff]  ;;  %v140_v29 = vld [vmem:[%s6662_s1 + $0x368] sm:$0xff]  ;;  %234 = vmatprep.mubr.f32.mxu0 %v4171_v19  ;;  %v138_v30 = vld [vmem:[%s6662_s1 + $0x358] sm:$0xff]  ;;  %v2917_v32 = vpack.c.bf16 %v131_v24, %v127_v23 }
  0x25   :  { %v142_v31 = vld [vmem:[%s6662_s1 + $0x378] sm:$0xff]  ;;  %305 = vmatprep.mubr.f32.mxu1 %v4171_v19  ;;  %v2981_v33 = vpack.c.bf16 %v133_v27, %v129_v25  ;;  %v2919_v34 = vpack.c.bf16 %v140_v29, %v136_v28  ;;  %v135_v35 = vld [vmem:[%s6662_s1 + $0x340] sm:$0xff]  ;;  %v137_v37 = vld [vmem:[%s6662_s1 + $0x350] sm:$0xff] }
  0x26   :  { %2902 = vmatpush1.bf16.msra.mxu0 %v2901_v46  ;;  %v139_v36 = vld [vmem:[%s6662_s1 + $0x360] sm:$0xff]  ;;  %v2983_v38 = vpack.c.bf16 %v142_v31, %v138_v30  ;;  %v141_v39 = vld [vmem:[%s6662_s1 + $0x370] sm:$0xff]  ;;  %v144_v40 = vld [vmem:[%s6662_s1 + $0x388] sm:$0xff] }
  0x27   :  { %2966 = vmatpush1.bf16.msra.mxu1 %v2965_v47  ;;  %2904 = vmatprep.subr.bf16.mxu0 %v2903_v48  ;;  %v148_v41 = vld [vmem:[%s6662_s1 + $0x3a8] sm:$0xff]  ;;  %v146_v42 = vld [vmem:[%s6662_s1 + $0x398] sm:$0xff]  ;;  %v2921_v44 = vpack.c.bf16 %v139_v36, %v135_v35  ;;  %v2985_v45 = vpack.c.bf16 %v141_v39, %v137_v37  ;;  %v143_v47 = vld [vmem:[%s6662_s1 + $0x380] sm:$0xff] }
  0x28   :  { %2968 = vmatprep.subr.bf16.mxu1 %v2967_v52  ;;  %v150_v43 = vld [vmem:[%s6662_s1 + $0x3b8] sm:$0xff]  ;;  %v2923_v46 = vpack.c.bf16 %v148_v41, %v144_v40  ;;  %v147_v48 = vld [vmem:[%s6662_s1 + $0x3a0] sm:$0xff]  ;;  %v145_v49 = vld [vmem:[%s6662_s1 + $0x390] sm:$0xff] }
  0x29   :  { %v2987_v50 = vpack.c.bf16 %v150_v43, %v146_v42  ;;  %v149_v51 = vld [vmem:[%s6662_s1 + $0x3b0] sm:$0xff]  ;;  %v152_v52 = vld [vmem:[%s6662_s1 + $0x3c8] sm:$0xff]  ;;  %v154_v54 = vld [vmem:[%s6662_s1 + $0x3d8] sm:$0xff]  ;;  %v2925_v56 = vpack.c.bf16 %v147_v48, %v143_v47 }
  0x2a   :  { %2906 = vmatpush1.bf16.msra.mxu0 %v2905_v58  ;;  %v156_v53 = vld [vmem:[%s6662_s1 + $0x3e8] sm:$0xff]  ;;  %v158_v55 = vld [vmem:[%s6662_s1 + $0x3f8] sm:$0xff]  ;;  %v2989_v57 = vpack.c.bf16 %v149_v51, %v145_v49  ;;  %v153_v61 = vld [vmem:[%s6662_s1 + $0x3d0] sm:$0xff] }
  0x2b   :  { %2970 = vmatpush1.bf16.msra.mxu1 %v2969_v59  ;;  %2908 = vmatprep.subr.bf16.mxu0 %v2907_v60  ;;  %v2927_v58 = vpack.c.bf16 %v156_v53, %v152_v52  ;;  %v151_v59 = vld [vmem:[%s6662_s1 + $0x3c0] sm:$0xff]  ;;  %v2991_v62 = vpack.c.bf16 %v158_v55, %v154_v54  ;;  %v157_v63 = vld [vmem:[%s6662_s1 + $0x3f0] sm:$0xff]  ;;  %v2366_v1 = vld [vmem:[%s6662_s1 + $0x428] sm:$0xff] }
  0x2c   :  { %2972 = vmatprep.subr.bf16.mxu1 %v2971_v0  ;;  %v155_v60 = vld [vmem:[%s6662_s1 + $0x3e0] sm:$0xff]  ;;  %v2362_v0 = vld [vmem:[%s6662_s1 + $0x408] sm:$0xff]  ;;  %v2364_v2 = vld [vmem:[%s6662_s1 + $0x418] sm:$0xff]  ;;  %v2993_v5 = vpack.c.bf16 %v157_v63, %v153_v61 }
  0x2d   :  { %v2368_v3 = vld [vmem:[%s6662_s1 + $0x438] sm:$0xff]  ;;  %v2929_v4 = vpack.c.bf16 %v155_v60, %v151_v59  ;;  %v2361_v7 = vld [vmem:[%s6662_s1 + $0x400] sm:$0xff]  ;;  %v2367_v11 = vld [vmem:[%s6662_s1 + $0x430] sm:$0xff] }
  0x2e   :  { %2910 = vmatpush1.bf16.msra.mxu0 %v2909_v6  ;;  %v2995_v6 = vpack.c.bf16 %v2366_v1, %v2362_v0  ;;  %v3059_v10 = vpack.c.bf16 %v2368_v3, %v2364_v2  ;;  %v2370_v12 = vld [vmem:[%s6662_s1 + $0x448] sm:$0xff]  ;;  %v2372_v14 = vld [vmem:[%s6662_s1 + $0x458] sm:$0xff]  ;;  %v2371_v23 = vld [vmem:[%s6662_s1 + $0x450] sm:$0xff] }
  0x2f   :  { %2974 = vmatpush1.bf16.msra.mxu1 %v2973_v8  ;;  %2912 = vmatprep.subr.bf16.mxu0 %v2911_v9  ;;  %v2365_v8 = vld [vmem:[%s6662_s1 + $0x420] sm:$0xff]  ;;  %v2363_v9 = vld [vmem:[%s6662_s1 + $0x410] sm:$0xff]  ;;  %v2376_v15 = vld [vmem:[%s6662_s1 + $0x478] sm:$0xff] }
  0x30   :  { %2976 = vmatprep.subr.bf16.mxu1 %v2975_v13  ;;  %v2374_v13 = vld [vmem:[%s6662_s1 + $0x468] sm:$0xff]  ;;  %v2997_v17 = vpack.c.bf16 %v2365_v8, %v2361_v7  ;;  %v3061_v18 = vpack.c.bf16 %v2367_v11, %v2363_v9  ;;  %v3063_v24 = vpack.c.bf16 %v2376_v15, %v2372_v14  ;;  %v2375_v25 = vld [vmem:[%s6662_s1 + $0x470] sm:$0xff]  ;;  %v2380_v28 = vld [vmem:[%s6662_s1 + $0x498] sm:$0xff] }
  0x31   :  { %v2382_v27 = vld [vmem:[%s6662_s1 + $0x4a8] sm:$0xff]  ;;  %v2384_v29 = vld [vmem:[%s6662_s1 + $0x4b8] sm:$0xff]  ;;  %v3065_v31 = vpack.c.bf16 %v2375_v25, %v2371_v23  ;;  %v2379_v35 = vld [vmem:[%s6662_s1 + $0x490] sm:$0xff] }
  0x32   :  { %2914 = vmatpush1.bf16.msra.mxu0 %v2913_v20  ;;  %v2999_v20 = vpack.c.bf16 %v2374_v13, %v2370_v12  ;;  %v3067_v36 = vpack.c.bf16 %v2384_v29, %v2380_v28  ;;  %v2383_v37 = vld [vmem:[%s6662_s1 + $0x4b0] sm:$0xff]  ;;  %v2390_v39 = vld [vmem:[%s6662_s1 + $0x4e8] sm:$0xff]  ;;  %v2388_v40 = vld [vmem:[%s6662_s1 + $0x4d8] sm:$0xff] }
  0x33   :  { %2978 = vmatpush1.bf16.msra.mxu1 %v2977_v21  ;;  %2916 = vmatprep.subr.bf16.mxu0 %v2915_v22  ;;  %v2369_v21 = vld [vmem:[%s6662_s1 + $0x440] sm:$0xff]  ;;  %v2392_v41 = vld [vmem:[%s6662_s1 + $0x4f8] sm:$0xff]  ;;  %v3069_v43 = vpack.c.bf16 %v2383_v37, %v2379_v35  ;;  %v2387_v47 = vld [vmem:[%s6662_s1 + $0x4d0] sm:$0xff] }
  0x34   :  { %2980 = vmatprep.subr.bf16.mxu1 %v2979_v26  ;;  %v2373_v22 = vld [vmem:[%s6662_s1 + $0x460] sm:$0xff]  ;;  %v2378_v26 = vld [vmem:[%s6662_s1 + $0x488] sm:$0xff]  ;;  %v3071_v48 = vpack.c.bf16 %v2392_v41, %v2388_v40  ;;  %v2391_v49 = vld [vmem:[%s6662_s1 + $0x4f0] sm:$0xff] }
  0x35   :  { %v3001_v30 = vpack.c.bf16 %v2373_v22, %v2369_v21  ;;  %v2398_v51 = vld [vmem:[%s6662_s1 + $0x528] sm:$0xff]  ;;  %v2396_v52 = vld [vmem:[%s6662_s1 + $0x518] sm:$0xff]  ;;  %v3073_v55 = vpack.c.bf16 %v2391_v49, %v2387_v47  ;;  %v2395_v59 = vld [vmem:[%s6662_s1 + $0x510] sm:$0xff] }
  0x36   :  { %2918 = vmatpush1.bf16.msra.mxu0 %v2917_v32  ;;  %v3003_v32 = vpack.c.bf16 %v2382_v27, %v2378_v26  ;;  %v2400_v53 = vld [vmem:[%s6662_s1 + $0x538] sm:$0xff]  ;;  %v2399_v61 = vld [vmem:[%s6662_s1 + $0x530] sm:$0xff]  ;;  %v2406_v63 = vld [vmem:[%s6662_s1 + $0x568] sm:$0xff] }
  0x37   :  { %2982 = vmatpush1.bf16.msra.mxu1 %v2981_v33  ;;  %2920 = vmatprep.subr.bf16.mxu0 %v2919_v34  ;;  %v2377_v33 = vld [vmem:[%s6662_s1 + $0x480] sm:$0xff]  ;;  %v3075_v60 = vpack.c.bf16 %v2400_v53, %v2396_v52  ;;  %v2404_v0 = vld [vmem:[%s6662_s1 + $0x558] sm:$0xff]  ;;  %v3077_v3 = vpack.c.bf16 %v2399_v61, %v2395_v59  ;;  %v2403_v7 = vld [vmem:[%s6662_s1 + $0x550] sm:$0xff] }
  0x38   :  { %2984 = vmatprep.subr.bf16.mxu1 %v2983_v38  ;;  %v2381_v34 = vld [vmem:[%s6662_s1 + $0x4a0] sm:$0xff]  ;;  %v2386_v38 = vld [vmem:[%s6662_s1 + $0x4c8] sm:$0xff]  ;;  %v2408_v1 = vld [vmem:[%s6662_s1 + $0x578] sm:$0xff] }
  0x39   :  { %v3005_v42 = vpack.c.bf16 %v2381_v34, %v2377_v33  ;;  %v3079_v8 = vpack.c.bf16 %v2408_v1, %v2404_v0  ;;  %v2407_v9 = vld [vmem:[%s6662_s1 + $0x570] sm:$0xff]  ;;  %v2414_v11 = vld [vmem:[%s6662_s1 + $0x5a8] sm:$0xff]  ;;  %v2412_v12 = vld [vmem:[%s6662_s1 + $0x598] sm:$0xff] }
  0x3a   :  { %2922 = vmatpush1.bf16.msra.mxu0 %v2921_v44  ;;  %v3007_v44 = vpack.c.bf16 %v2390_v39, %v2386_v38  ;;  %v2416_v13 = vld [vmem:[%s6662_s1 + $0x5b8] sm:$0xff]  ;;  %v3081_v15 = vpack.c.bf16 %v2407_v9, %v2403_v7  ;;  %v2411_v21 = vld [vmem:[%s6662_s1 + $0x590] sm:$0xff]  ;;  %v2422_v25 = vld [vmem:[%s6662_s1 + $0x5e8] sm:$0xff] }
  0x3b   :  { %2986 = vmatpush1.bf16.msra.mxu1 %v2985_v45  ;;  %2924 = vmatprep.subr.bf16.mxu0 %v2923_v46  ;;  %v2385_v45 = vld [vmem:[%s6662_s1 + $0x4c0] sm:$0xff]  ;;  %v3083_v22 = vpack.c.bf16 %v2416_v13, %v2412_v12  ;;  %v2415_v23 = vld [vmem:[%s6662_s1 + $0x5b0] sm:$0xff]  ;;  %v2420_v26 = vld [vmem:[%s6662_s1 + $0x5d8] sm:$0xff] }
  0x3c   :  { %2988 = vmatprep.subr.bf16.mxu1 %v2987_v50  ;;  %v2389_v46 = vld [vmem:[%s6662_s1 + $0x4e0] sm:$0xff]  ;;  %v2394_v50 = vld [vmem:[%s6662_s1 + $0x508] sm:$0xff]  ;;  %v2424_v27 = vld [vmem:[%s6662_s1 + $0x5f8] sm:$0xff]  ;;  %v3085_v29 = vpack.c.bf16 %v2415_v23, %v2411_v21 }
  0x3d   :  { %v3009_v54 = vpack.c.bf16 %v2389_v46, %v2385_v45  ;;  %v2419_v33 = vld [vmem:[%s6662_s1 + $0x5d0] sm:$0xff]  ;;  %v3087_v34 = vpack.c.bf16 %v2424_v27, %v2420_v26  ;;  %v2430_v37 = vld [vmem:[%s6662_s1 + $0x628] sm:$0xff]  ;;  %v2428_v38 = vld [vmem:[%s6662_s1 + $0x618] sm:$0xff] }
  0x3e   :  { %2926 = vmatpush1.bf16.msra.mxu0 %v2925_v56  ;;  %v3011_v56 = vpack.c.bf16 %v2398_v51, %v2394_v50  ;;  %v2423_v35 = vld [vmem:[%s6662_s1 + $0x5f0] sm:$0xff]  ;;  %v2432_v39 = vld [vmem:[%s6662_s1 + $0x638] sm:$0xff]  ;;  %v2438_v49 = vld [vmem:[%s6662_s1 + $0x668] sm:$0xff] }
  0x3f   :  { %2990 = vmatpush1.bf16.msra.mxu1 %v2989_v57  ;;  %2928 = vmatprep.subr.bf16.mxu0 %v2927_v58  ;;  %v2393_v57 = vld [vmem:[%s6662_s1 + $0x500] sm:$0xff]  ;;  %v3089_v41 = vpack.c.bf16 %v2423_v35, %v2419_v33  ;;  %v2427_v45 = vld [vmem:[%s6662_s1 + $0x610] sm:$0xff]  ;;  %v3091_v46 = vpack.c.bf16 %v2432_v39, %v2428_v38  ;;  %v2436_v50 = vld [vmem:[%s6662_s1 + $0x658] sm:$0xff] }
  0x40   :  { %2992 = vmatprep.subr.bf16.mxu1 %v2991_v62  ;;  %v2397_v58 = vld [vmem:[%s6662_s1 + $0x520] sm:$0xff]  ;;  %v2402_v62 = vld [vmem:[%s6662_s1 + $0x548] sm:$0xff]  ;;  %v2431_v47 = vld [vmem:[%s6662_s1 + $0x630] sm:$0xff] }
  0x41   :  { %v3013_v2 = vpack.c.bf16 %v2397_v58, %v2393_v57  ;;  %v2440_v51 = vld [vmem:[%s6662_s1 + $0x678] sm:$0xff]  ;;  %v3093_v53 = vpack.c.bf16 %v2431_v47, %v2427_v45  ;;  %v2435_v57 = vld [vmem:[%s6662_s1 + $0x650] sm:$0xff]  ;;  %v2446_v61 = vld [vmem:[%s6662_s1 + $0x6a8] sm:$0xff] }
  0x42   :  { %2930 = vmatpush1.bf16.msra.mxu0 %v2929_v4  ;;  %v3015_v4 = vpack.c.bf16 %v2406_v63, %v2402_v62  ;;  %v3095_v58 = vpack.c.bf16 %v2440_v51, %v2436_v50  ;;  %v2439_v59 = vld [vmem:[%s6662_s1 + $0x670] sm:$0xff]  ;;  %v2444_v62 = vld [vmem:[%s6662_s1 + $0x698] sm:$0xff]  ;;  %v2454_v9 = vld [vmem:[%s6662_s1 + $0x6e8] sm:$0xff] }
  0x43   :  { %2994 = vmatpush1.bf16.msra.mxu1 %v2993_v5  ;;  %2996 = vmatprep.subr.bf16.mxu0 %v2995_v6  ;;  %v2401_v5 = vld [vmem:[%s6662_s1 + $0x540] sm:$0xff]  ;;  %v2448_v63 = vld [vmem:[%s6662_s1 + $0x6b8] sm:$0xff]  ;;  %v3097_v1 = vpack.c.bf16 %v2439_v59, %v2435_v57  ;;  %v2447_v7 = vld [vmem:[%s6662_s1 + $0x6b0] sm:$0xff] }
  0x44   :  { %3060 = vmatprep.subr.bf16.mxu1 %v3059_v10  ;;  %v2405_v6 = vld [vmem:[%s6662_s1 + $0x560] sm:$0xff]  ;;  %v2410_v10 = vld [vmem:[%s6662_s1 + $0x588] sm:$0xff]  ;;  %v2455_v21 = vld [vmem:[%s6662_s1 + $0x6f0] sm:$0xff] }
  0x45   :  { %235 = vmatmul.mubr.f32.vlgmr.msra.gmra.mrb[0].mxu0 %v4161_v16  ;;  %v3017_v14 = vpack.c.bf16 %v2405_v6, %v2401_v5  ;;  %v2443_v5 = vld [vmem:[%s6662_s1 + $0x690] sm:$0xff]  ;;  %v3099_v6 = vpack.c.bf16 %v2448_v63, %v2444_v62  ;;  %v2462_v23 = vld [vmem:[%s6662_s1 + $0x728] sm:$0xff] }
  0x46   :  { %306 = vmatmul.mubr.f32.vlgmr.msra.gmra.mrb[0].mxu1 %v4161_v16  ;;  %2998 = vmatpush1.bf16.msra.mxu0 %v2997_v17  ;;  %v3019_v17 = vpack.c.bf16 %v2414_v11, %v2410_v10  ;;  %v2452_v10 = vld [vmem:[%s6662_s1 + $0x6d8] sm:$0xff]  ;;  %v3101_v13 = vpack.c.bf16 %v2447_v7, %v2443_v5  ;;  %v2463_v33 = vld [vmem:[%s6662_s1 + $0x730] sm:$0xff]  ;;  %v2470_v35 = vld [vmem:[%s6662_s1 + $0x768] sm:$0xff] }
  0x47   :  { %3062 = vmatpush1.bf16.msra.mxu1 %v3061_v18  ;;  %3000 = vmatprep.subr.bf16.mxu0 %v2999_v20  ;;  %v2409_v18 = vld [vmem:[%s6662_s1 + $0x580] sm:$0xff]  ;;  %v2456_v11 = vld [vmem:[%s6662_s1 + $0x6f8] sm:$0xff]  ;;  %v2471_v45 = vld [vmem:[%s6662_s1 + $0x770] sm:$0xff] }
  0x48   :  { %3064 = vmatprep.subr.bf16.mxu1 %v3063_v24  ;;  %505 = vmatprep.mubr.f32.mxu0 %v4171_v19  ;;  %v2413_v20 = vld [vmem:[%s6662_s1 + $0x5a0] sm:$0xff]  ;;  %v2418_v24 = vld [vmem:[%s6662_s1 + $0x5c8] sm:$0xff]  ;;  %v2479_v57 = vld [vmem:[%s6662_s1 + $0x7b0] sm:$0xff] }
  0x49   :  { %576 = vmatprep.mubr.f32.mxu1 %v4171_v19  ;;  %v3021_v28 = vpack.c.bf16 %v2413_v20, %v2409_v18  ;;  %v2451_v18 = vld [vmem:[%s6662_s1 + $0x6d0] sm:$0xff]  ;;  %v3103_v20 = vpack.c.bf16 %v2456_v11, %v2452_v10  ;;  %v2478_v47 = vld [vmem:[%s6662_s1 + $0x7a8] sm:$0xff] }
  0x4a   :  { %3002 = vmatpush1.bf16.msra.mxu0 %v3001_v30  ;;  %v3023_v30 = vpack.c.bf16 %v2422_v25, %v2418_v24  ;;  %v2460_v24 = vld [vmem:[%s6662_s1 + $0x718] sm:$0xff]  ;;  %v3105_v27 = vpack.c.bf16 %v2455_v21, %v2451_v18  ;;  %v2486_v59 = vld [vmem:[%s6662_s1 + $0x7e8] sm:$0xff]  ;;  %v2487_v5 = vld [vmem:[%s6662_s1 + $0x7f0] sm:$0xff] }
  0x4b   :  { %3066 = vmatpush1.bf16.msra.mxu1 %v3065_v31  ;;  %3004 = vmatprep.subr.bf16.mxu0 %v3003_v32  ;;  %v2417_v31 = vld [vmem:[%s6662_s1 + $0x5c0] sm:$0xff]  ;;  %v2464_v25 = vld [vmem:[%s6662_s1 + $0x738] sm:$0xff]  ;;  %v2494_v7 = vld [vmem:[%s6662_s1 + $0x828] sm:$0xff] }
  0x4c   :  { %3068 = vmatprep.subr.bf16.mxu1 %v3067_v36  ;;  %v2421_v32 = vld [vmem:[%s6662_s1 + $0x5e0] sm:$0xff]  ;;  %v2426_v36 = vld [vmem:[%s6662_s1 + $0x608] sm:$0xff]  ;;  %v2495_v18 = vld [vmem:[%s6662_s1 + $0x830] sm:$0xff] }
  0x4d   :  { %v3025_v40 = vpack.c.bf16 %v2421_v32, %v2417_v31  ;;  %v2459_v31 = vld [vmem:[%s6662_s1 + $0x710] sm:$0xff]  ;;  %v3107_v32 = vpack.c.bf16 %v2464_v25, %v2460_v24  ;;  %v2502_v21 = vld [vmem:[%s6662_s1 + $0x868] sm:$0xff] }
  0x4e   :  { %3006 = vmatpush1.bf16.msra.mxu0 %v3005_v42  ;;  %v3027_v42 = vpack.c.bf16 %v2430_v37, %v2426_v36  ;;  %v2468_v36 = vld [vmem:[%s6662_s1 + $0x758] sm:$0xff]  ;;  %v3109_v39 = vpack.c.bf16 %v2463_v33, %v2459_v31  ;;  %v2503_v31 = vld [vmem:[%s6662_s1 + $0x870] sm:$0xff]  ;;  %v2510_v33 = vld [vmem:[%s6662_s1 + $0x8a8] sm:$0xff] }
  0x4f   :  { %3070 = vmatpush1.bf16.msra.mxu1 %v3069_v43  ;;  %3008 = vmatprep.subr.bf16.mxu0 %v3007_v44  ;;  %v2425_v43 = vld [vmem:[%s6662_s1 + $0x600] sm:$0xff]  ;;  %v2472_v37 = vld [vmem:[%s6662_s1 + $0x778] sm:$0xff] }
  0x50   :  { %3072 = vmatprep.subr.bf16.mxu1 %v3071_v48  ;;  %v2429_v44 = vld [vmem:[%s6662_s1 + $0x620] sm:$0xff]  ;;  %v2434_v48 = vld [vmem:[%s6662_s1 + $0x648] sm:$0xff] }
  0x51   :  { %v3029_v52 = vpack.c.bf16 %v2429_v44, %v2425_v43  ;;  %v2467_v43 = vld [vmem:[%s6662_s1 + $0x750] sm:$0xff]  ;;  %v3111_v44 = vpack.c.bf16 %v2472_v37, %v2468_v36 }
  0x52   :  { %3010 = vmatpush1.bf16.msra.mxu0 %v3009_v54  ;;  %v3031_v54 = vpack.c.bf16 %v2438_v49, %v2434_v48  ;;  %v2476_v48 = vld [vmem:[%s6662_s1 + $0x798] sm:$0xff]  ;;  %v3113_v51 = vpack.c.bf16 %v2471_v45, %v2467_v43  ;;  %v2514_v43 = vld [vmem:[%s6662_s1 + $0x8c8] sm:$0xff] }
  0x53   :  { %3074 = vmatpush1.bf16.msra.mxu1 %v3073_v55  ;;  %3012 = vmatprep.subr.bf16.mxu0 %v3011_v56  ;;  %v2433_v55 = vld [vmem:[%s6662_s1 + $0x640] sm:$0xff]  ;;  %v2480_v49 = vld [vmem:[%s6662_s1 + $0x7b8] sm:$0xff] }
  0x54   :  { %3076 = vmatprep.subr.bf16.mxu1 %v3075_v60  ;;  %v2437_v56 = vld [vmem:[%s6662_s1 + $0x660] sm:$0xff]  ;;  %v2442_v60 = vld [vmem:[%s6662_s1 + $0x688] sm:$0xff]  ;;  %v2516_v45 = vld [vmem:[%s6662_s1 + $0x8d8] sm:$0xff] }
  0x55   :  { %v3033_v0 = vpack.c.bf16 %v2437_v56, %v2433_v55  ;;  %v2475_v55 = vld [vmem:[%s6662_s1 + $0x790] sm:$0xff]  ;;  %v3115_v56 = vpack.c.bf16 %v2480_v49, %v2476_v48 }
  0x56   :  { %3014 = vmatpush1.bf16.msra.mxu0 %v3013_v2  ;;  %v3035_v2 = vpack.c.bf16 %v2446_v61, %v2442_v60  ;;  %v2484_v60 = vld [vmem:[%s6662_s1 + $0x7d8] sm:$0xff]  ;;  %v3117_v63 = vpack.c.bf16 %v2479_v57, %v2475_v55  ;;  %v2522_v55 = vld [vmem:[%s6662_s1 + $0x908] sm:$0xff] }
  0x57   :  { %3078 = vmatpush1.bf16.msra.mxu1 %v3077_v3  ;;  %3016 = vmatprep.subr.bf16.mxu0 %v3015_v4  ;;  %v2441_v3 = vld [vmem:[%s6662_s1 + $0x680] sm:$0xff]  ;;  %v2488_v61 = vld [vmem:[%s6662_s1 + $0x7f8] sm:$0xff] }
  0x58   :  { %3080 = vmatprep.subr.bf16.mxu1 %v3079_v8  ;;  %v2445_v4 = vld [vmem:[%s6662_s1 + $0x6a0] sm:$0xff]  ;;  %v2450_v8 = vld [vmem:[%s6662_s1 + $0x6c8] sm:$0xff]  ;;  %v2524_v57 = vld [vmem:[%s6662_s1 + $0x918] sm:$0xff] }
  0x59   :  { %v3037_v12 = vpack.c.bf16 %v2445_v4, %v2441_v3  ;;  %v2483_v3 = vld [vmem:[%s6662_s1 + $0x7d0] sm:$0xff]  ;;  %v3119_v4 = vpack.c.bf16 %v2488_v61, %v2484_v60 }
  0x5a   :  { %3018 = vmatpush1.bf16.msra.mxu0 %v3017_v14  ;;  %v3039_v14 = vpack.c.bf16 %v2454_v9, %v2450_v8  ;;  %v2492_v8 = vld [vmem:[%s6662_s1 + $0x818] sm:$0xff]  ;;  %v3121_v11 = vpack.c.bf16 %v2487_v5, %v2483_v3  ;;  %v2530_v3 = vld [vmem:[%s6662_s1 + $0x948] sm:$0xff] }
  0x5b   :  { %3082 = vmatpush1.bf16.msra.mxu1 %v3081_v15  ;;  %3020 = vmatprep.subr.bf16.mxu0 %v3019_v17  ;;  %v2449_v15 = vld [vmem:[%s6662_s1 + $0x6c0] sm:$0xff]  ;;  %v2496_v9 = vld [vmem:[%s6662_s1 + $0x838] sm:$0xff] }
  0x5c   :  { %3084 = vmatprep.subr.bf16.mxu1 %v3083_v22  ;;  %v2453_v17 = vld [vmem:[%s6662_s1 + $0x6e0] sm:$0xff]  ;;  %v2458_v22 = vld [vmem:[%s6662_s1 + $0x708] sm:$0xff]  ;;  %v2532_v5 = vld [vmem:[%s6662_s1 + $0x958] sm:$0xff] }
  0x5d   :  { %v3041_v26 = vpack.c.bf16 %v2453_v17, %v2449_v15  ;;  %v2491_v15 = vld [vmem:[%s6662_s1 + $0x810] sm:$0xff]  ;;  %v3187_v17 = vpack.c.bf16 %v2496_v9, %v2492_v8 }
  0x5e   :  { %3022 = vmatpush1.bf16.msra.mxu0 %v3021_v28  ;;  %v3043_v28 = vpack.c.bf16 %v2462_v23, %v2458_v22  ;;  %v2500_v22 = vld [vmem:[%s6662_s1 + $0x858] sm:$0xff]  ;;  %v3189_v25 = vpack.c.bf16 %v2495_v18, %v2491_v15  ;;  %v2538_v15 = vld [vmem:[%s6662_s1 + $0x988] sm:$0xff] }
  0x5f   :  { %3086 = vmatpush1.bf16.msra.mxu1 %v3085_v29  ;;  %3024 = vmatprep.subr.bf16.mxu0 %v3023_v30  ;;  %v2457_v29 = vld [vmem:[%s6662_s1 + $0x700] sm:$0xff]  ;;  %v2504_v23 = vld [vmem:[%s6662_s1 + $0x878] sm:$0xff] }
  0x60   :  { %3088 = vmatprep.subr.bf16.mxu1 %v3087_v34  ;;  %v2461_v30 = vld [vmem:[%s6662_s1 + $0x720] sm:$0xff]  ;;  %v2466_v34 = vld [vmem:[%s6662_s1 + $0x748] sm:$0xff]  ;;  %v2540_v18 = vld [vmem:[%s6662_s1 + $0x998] sm:$0xff] }
  0x61   :  { %v3045_v38 = vpack.c.bf16 %v2461_v30, %v2457_v29  ;;  %v2499_v29 = vld [vmem:[%s6662_s1 + $0x850] sm:$0xff]  ;;  %v3191_v30 = vpack.c.bf16 %v2504_v23, %v2500_v22 }
  0x62   :  { %3026 = vmatpush1.bf16.msra.mxu0 %v3025_v40  ;;  %v3047_v40 = vpack.c.bf16 %v2470_v35, %v2466_v34  ;;  %v2508_v34 = vld [vmem:[%s6662_s1 + $0x898] sm:$0xff]  ;;  %v3193_v37 = vpack.c.bf16 %v2503_v31, %v2499_v29  ;;  %v2546_v29 = vld [vmem:[%s6662_s1 + $0x9c8] sm:$0xff] }
  0x63   :  { %3090 = vmatpush1.bf16.msra.mxu1 %v3089_v41  ;;  %3028 = vmatprep.subr.bf16.mxu0 %v3027_v42  ;;  %v2465_v41 = vld [vmem:[%s6662_s1 + $0x740] sm:$0xff]  ;;  %v2512_v35 = vld [vmem:[%s6662_s1 + $0x8b8] sm:$0xff] }
  0x64   :  { %3092 = vmatprep.subr.bf16.mxu1 %v3091_v46  ;;  %v2469_v42 = vld [vmem:[%s6662_s1 + $0x760] sm:$0xff]  ;;  %v2474_v46 = vld [vmem:[%s6662_s1 + $0x788] sm:$0xff]  ;;  %v2548_v31 = vld [vmem:[%s6662_s1 + $0x9d8] sm:$0xff] }
  0x65   :  { %v3049_v50 = vpack.c.bf16 %v2469_v42, %v2465_v41  ;;  %v2507_v41 = vld [vmem:[%s6662_s1 + $0x890] sm:$0xff] }
  0x66   :  { %3030 = vmatpush1.bf16.msra.mxu0 %v3029_v52  ;;  %v3051_v52 = vpack.c.bf16 %v2478_v47, %v2474_v46  ;;  %v2511_v42 = vld [vmem:[%s6662_s1 + $0x8b0] sm:$0xff]  ;;  %v2520_v46 = vld [vmem:[%s6662_s1 + $0x8f8] sm:$0xff] }
  0x67   :  { %3094 = vmatpush1.bf16.msra.mxu1 %v3093_v53  ;;  %3032 = vmatprep.subr.bf16.mxu0 %v3031_v54  ;;  %v2473_v53 = vld [vmem:[%s6662_s1 + $0x780] sm:$0xff]  ;;  %v3197_v48 = vpack.c.bf16 %v2511_v42, %v2507_v41  ;;  %v2554_v41 = vld [vmem:[%s6662_s1 + $0xa08] sm:$0xff]  ;;  %v2556_v42 = vld [vmem:[%s6662_s1 + $0xa18] sm:$0xff] }
  0x68   :  { %3096 = vmatprep.subr.bf16.mxu1 %v3095_v58  ;;  %v2477_v54 = vld [vmem:[%s6662_s1 + $0x7a0] sm:$0xff]  ;;  %v2482_v58 = vld [vmem:[%s6662_s1 + $0x7c8] sm:$0xff] }
  0x69   :  { %v3053_v62 = vpack.c.bf16 %v2477_v54, %v2473_v53  ;;  %v3199_v53 = vpack.c.bf16 %v2520_v46, %v2516_v45  ;;  %v2519_v54 = vld [vmem:[%s6662_s1 + $0x8f0] sm:$0xff] }
  0x6a   :  { %3034 = vmatpush1.bf16.msra.mxu0 %v3033_v0  ;;  %v3055_v0 = vpack.c.bf16 %v2486_v59, %v2482_v58  ;;  %v2528_v58 = vld [vmem:[%s6662_s1 + $0x938] sm:$0xff] }
  0x6b   :  { %3098 = vmatpush1.bf16.msra.mxu1 %v3097_v1  ;;  %3036 = vmatprep.subr.bf16.mxu0 %v3035_v2  ;;  %v2481_v1 = vld [vmem:[%s6662_s1 + $0x7c0] sm:$0xff] }
  0x6c   :  { %3100 = vmatprep.subr.bf16.mxu1 %v3099_v6  ;;  %v2485_v2 = vld [vmem:[%s6662_s1 + $0x7e0] sm:$0xff]  ;;  %v2490_v6 = vld [vmem:[%s6662_s1 + $0x808] sm:$0xff] }
  0x6d   :  { %v3057_v10 = vpack.c.bf16 %v2485_v2, %v2481_v1  ;;  %v3203_v1 = vpack.c.bf16 %v2528_v58, %v2524_v57  ;;  %v2527_v2 = vld [vmem:[%s6662_s1 + $0x930] sm:$0xff] }
  0x6e   :  { %3038 = vmatpush1.bf16.msra.mxu0 %v3037_v12  ;;  %v3123_v12 = vpack.c.bf16 %v2494_v7, %v2490_v6  ;;  %v2536_v6 = vld [vmem:[%s6662_s1 + $0x978] sm:$0xff] }
  0x6f   :  { %3102 = vmatpush1.bf16.msra.mxu1 %v3101_v13  ;;  %3040 = vmatprep.subr.bf16.mxu0 %v3039_v14  ;;  %v2489_v13 = vld [vmem:[%s6662_s1 + $0x800] sm:$0xff] }
  0x70   :  { %3104 = vmatprep.subr.bf16.mxu1 %v3103_v20  ;;  %v2493_v14 = vld [vmem:[%s6662_s1 + $0x820] sm:$0xff]  ;;  %v2498_v20 = vld [vmem:[%s6662_s1 + $0x848] sm:$0xff] }
  0x71   :  { %v3125_v24 = vpack.c.bf16 %v2493_v14, %v2489_v13  ;;  %v3207_v13 = vpack.c.bf16 %v2536_v6, %v2532_v5  ;;  %v2535_v14 = vld [vmem:[%s6662_s1 + $0x970] sm:$0xff] }
  0x72   :  { %3042 = vmatpush1.bf16.msra.mxu0 %v3041_v26  ;;  %v3127_v26 = vpack.c.bf16 %v2502_v21, %v2498_v20  ;;  %v2544_v20 = vld [vmem:[%s6662_s1 + $0x9b8] sm:$0xff] }
  0x73   :  { %3106 = vmatpush1.bf16.msra.mxu1 %v3105_v27  ;;  %3044 = vmatprep.subr.bf16.mxu0 %v3043_v28  ;;  %v2497_v27 = vld [vmem:[%s6662_s1 + $0x840] sm:$0xff] }
  0x74   :  { %3108 = vmatprep.subr.bf16.mxu1 %v3107_v32  ;;  %v2501_v28 = vld [vmem:[%s6662_s1 + $0x860] sm:$0xff]  ;;  %v2506_v32 = vld [vmem:[%s6662_s1 + $0x888] sm:$0xff] }
  0x75   :  { %v3129_v36 = vpack.c.bf16 %v2501_v28, %v2497_v27  ;;  %v3211_v27 = vpack.c.bf16 %v2544_v20, %v2540_v18  ;;  %v2543_v28 = vld [vmem:[%s6662_s1 + $0x9b0] sm:$0xff] }
  0x76   :  { %3046 = vmatpush1.bf16.msra.mxu0 %v3045_v38  ;;  %v3131_v38 = vpack.c.bf16 %v2510_v33, %v2506_v32  ;;  %v2552_v32 = vld [vmem:[%s6662_s1 + $0x9f8] sm:$0xff] }
  0x77   :  { %3110 = vmatpush1.bf16.msra.mxu1 %v3109_v39  ;;  %3048 = vmatprep.subr.bf16.mxu0 %v3047_v40  ;;  %v2505_v39 = vld [vmem:[%s6662_s1 + $0x880] sm:$0xff] }
  0x78   :  { %3112 = vmatprep.subr.bf16.mxu1 %v3111_v44  ;;  %v2509_v40 = vld [vmem:[%s6662_s1 + $0x8a0] sm:$0xff]  ;;  %v2518_v44 = vld [vmem:[%s6662_s1 + $0x8e8] sm:$0xff] }
  0x79   :  { %v3133_v47 = vpack.c.bf16 %v2509_v40, %v2505_v39  ;;  %v3135_v49 = vpack.c.bf16 %v2518_v44, %v2514_v43  ;;  %v3215_v39 = vpack.c.bf16 %v2552_v32, %v2548_v31  ;;  %v2551_v40 = vld [vmem:[%s6662_s1 + $0x9f0] sm:$0xff]  ;;  %v2560_v43 = vld [vmem:[%s6662_s1 + $0xa38] sm:$0xff] }
  0x7a   :  { %3050 = vmatpush1.bf16.msra.mxu0 %v3049_v50  ;;  %v2513_v50 = vld [vmem:[%s6662_s1 + $0x8c0] sm:$0xff] }
  0x7b   :  { %3114 = vmatpush1.bf16.msra.mxu1 %v3113_v51  ;;  %3052 = vmatprep.subr.bf16.mxu0 %v3051_v52  ;;  %v2517_v51 = vld [vmem:[%s6662_s1 + $0x8e0] sm:$0xff]  ;;  %v2515_v52 = vld [vmem:[%s6662_s1 + $0x8d0] sm:$0xff] }
  0x7c   :  { %3116 = vmatprep.subr.bf16.mxu1 %v3115_v56  ;;  %v2526_v56 = vld [vmem:[%s6662_s1 + $0x928] sm:$0xff]  ;;  %v3137_v59 = vpack.c.bf16 %v2517_v51, %v2513_v50  ;;  %v3201_v60 = vpack.c.bf16 %v2519_v54, %v2515_v52  ;;  %v3219_v50 = vpack.c.bf16 %v2560_v43, %v2556_v42  ;;  %v2559_v51 = vld [vmem:[%s6662_s1 + $0xa30] sm:$0xff]  ;;  %v2564_v54 = vld [vmem:[%s6662_s1 + $0xa58] sm:$0xff] }
  0x7d   :  { %v3139_v61 = vpack.c.bf16 %v2526_v56, %v2522_v55  ;;  %v2562_v52 = vld [vmem:[%s6662_s1 + $0xa48] sm:$0xff]  ;;  %v2568_v55 = vld [vmem:[%s6662_s1 + $0xa78] sm:$0xff] }
  0x7e   :  { %3054 = vmatpush1.bf16.msra.mxu0 %v3053_v62  ;;  %v2521_v62 = vld [vmem:[%s6662_s1 + $0x900] sm:$0xff] }
  0x7f   :  { %3118 = vmatpush1.bf16.msra.mxu1 %v3117_v63  ;;  %3056 = vmatprep.subr.bf16.mxu0 %v3055_v0  ;;  %v2525_v63 = vld [vmem:[%s6662_s1 + $0x920] sm:$0xff]  ;;  %v2523_v0 = vld [vmem:[%s6662_s1 + $0x910] sm:$0xff] }
  0x80   :  { %3120 = vmatprep.subr.bf16.mxu1 %v3119_v4  ;;  %v2534_v4 = vld [vmem:[%s6662_s1 + $0x968] sm:$0xff]  ;;  %v3141_v7 = vpack.c.bf16 %v2525_v63, %v2521_v62  ;;  %v3205_v8 = vpack.c.bf16 %v2527_v2, %v2523_v0  ;;  %v3223_v62 = vpack.c.bf16 %v2568_v55, %v2564_v54  ;;  %v2567_v63 = vld [vmem:[%s6662_s1 + $0xa70] sm:$0xff]  ;;  %v2572_v2 = vld [vmem:[%s6662_s1 + $0xa98] sm:$0xff] }
  0x81   :  { %v3143_v9 = vpack.c.bf16 %v2534_v4, %v2530_v3  ;;  %v2570_v0 = vld [vmem:[%s6662_s1 + $0xa88] sm:$0xff]  ;;  %v2576_v3 = vld [vmem:[%s6662_s1 + $0xab8] sm:$0xff] }
  0x82   :  { %3058 = vmatpush1.bf16.msra.mxu0 %v3057_v10  ;;  %v2529_v10 = vld [vmem:[%s6662_s1 + $0x940] sm:$0xff] }
  0x83   :  { %3122 = vmatpush1.bf16.msra.mxu1 %v3121_v11  ;;  %3124 = vmatprep.subr.bf16.mxu0 %v3123_v12  ;;  %v2533_v11 = vld [vmem:[%s6662_s1 + $0x960] sm:$0xff]  ;;  %v2531_v12 = vld [vmem:[%s6662_s1 + $0x950] sm:$0xff] }
  0x84   :  { %3188 = vmatprep.subr.bf16.mxu1 %v3187_v17  ;;  %v2542_v17 = vld [vmem:[%s6662_s1 + $0x9a8] sm:$0xff]  ;;  %v3145_v21 = vpack.c.bf16 %v2533_v11, %v2529_v10  ;;  %v3209_v22 = vpack.c.bf16 %v2535_v14, %v2531_v12  ;;  %v3227_v10 = vpack.c.bf16 %v2576_v3, %v2572_v2  ;;  %v2575_v11 = vld [vmem:[%s6662_s1 + $0xab0] sm:$0xff]  ;;  %v2580_v14 = vld [vmem:[%s6662_s1 + $0xad8] sm:$0xff] }
  0x85   :  { %506 = vmatmul.mubr.f32.vlgmr.msra.gmra.mrb[2].mxu0 %v4161_v16  ;;  %v3147_v23 = vpack.c.bf16 %v2542_v17, %v2538_v15  ;;  %v2578_v12 = vld [vmem:[%s6662_s1 + $0xac8] sm:$0xff]  ;;  %v2584_v15 = vld [vmem:[%s6662_s1 + $0xaf8] sm:$0xff] }
  0x86   :  { %577 = vmatmul.mubr.f32.vlgmr.msra.gmra.mrb[2].mxu1 %v4161_v16  ;;  %3126 = vmatpush1.bf16.msra.mxu0 %v3125_v24  ;;  %v3195_v16 = vpack.c.bf16 %v2512_v35, %v2508_v34  ;;  %v2537_v24 = vld [vmem:[%s6662_s1 + $0x980] sm:$0xff] }
  0x87   :  { %3190 = vmatpush1.bf16.msra.mxu1 %v3189_v25  ;;  %3128 = vmatprep.subr.bf16.mxu0 %v3127_v26  ;;  %v2541_v25 = vld [vmem:[%s6662_s1 + $0x9a0] sm:$0xff]  ;;  %v2539_v26 = vld [vmem:[%s6662_s1 + $0x990] sm:$0xff] }
  0x88   :  { %3192 = vmatprep.subr.bf16.mxu1 %v3191_v30  ;;  %780 = vmatprep.mubr.f32.mxu0 %v4171_v19  ;;  %v2550_v30 = vld [vmem:[%s6662_s1 + $0x9e8] sm:$0xff]  ;;  %v3149_v33 = vpack.c.bf16 %v2541_v25, %v2537_v24  ;;  %v3213_v34 = vpack.c.bf16 %v2543_v28, %v2539_v26  ;;  %v3231_v24 = vpack.c.bf16 %v2584_v15, %v2580_v14  ;;  %v2583_v25 = vld [vmem:[%s6662_s1 + $0xaf0] sm:$0xff]  ;;  %v2588_v28 = vld [vmem:[%s6662_s1 + $0xb18] sm:$0xff] }
  0x89   :  { %851 = vmatprep.mubr.f32.mxu1 %v4171_v19  ;;  %v3151_v35 = vpack.c.bf16 %v2550_v30, %v2546_v29  ;;  %v2586_v26 = vld [vmem:[%s6662_s1 + $0xb08] sm:$0xff]  ;;  %v2592_v29 = vld [vmem:[%s6662_s1 + $0xb38] sm:$0xff] }
  0x8a   :  { %3130 = vmatpush1.bf16.msra.mxu0 %v3129_v36  ;;  %v2545_v36 = vld [vmem:[%s6662_s1 + $0x9c0] sm:$0xff] }
  0x8b   :  { %3194 = vmatpush1.bf16.msra.mxu1 %v3193_v37  ;;  %3132 = vmatprep.subr.bf16.mxu0 %v3131_v38  ;;  %v2549_v37 = vld [vmem:[%s6662_s1 + $0x9e0] sm:$0xff]  ;;  %v2547_v38 = vld [vmem:[%s6662_s1 + $0x9d0] sm:$0xff] }
  0x8c   :  { %3196 = vmatprep.subr.bf16.mxu1 %v3195_v16  ;;  %v2558_v16 = vld [vmem:[%s6662_s1 + $0xa28] sm:$0xff]  ;;  %v3153_v44 = vpack.c.bf16 %v2549_v37, %v2545_v36  ;;  %v3217_v45 = vpack.c.bf16 %v2551_v40, %v2547_v38 }
  0x8d   :  { %v3155_v46 = vpack.c.bf16 %v2558_v16, %v2554_v41 }
  0x8e   :  { %3134 = vmatpush1.bf16.msra.mxu0 %v3133_v47  ;;  %v2553_v47 = vld [vmem:[%s6662_s1 + $0xa00] sm:$0xff] }
  0x8f   :  { %3198 = vmatpush1.bf16.msra.mxu1 %v3197_v48  ;;  %3136 = vmatprep.subr.bf16.mxu0 %v3135_v49  ;;  %v2557_v48 = vld [vmem:[%s6662_s1 + $0xa20] sm:$0xff]  ;;  %v2555_v49 = vld [vmem:[%s6662_s1 + $0xa10] sm:$0xff] }
  0x90   :  { %3200 = vmatprep.subr.bf16.mxu1 %v3199_v53  ;;  %v2566_v53 = vld [vmem:[%s6662_s1 + $0xa68] sm:$0xff]  ;;  %v3157_v56 = vpack.c.bf16 %v2557_v48, %v2553_v47  ;;  %v3221_v57 = vpack.c.bf16 %v2559_v51, %v2555_v49 }
  0x91   :  { %v3159_v58 = vpack.c.bf16 %v2566_v53, %v2562_v52 }
  0x92   :  { %3138 = vmatpush1.bf16.msra.mxu0 %v3137_v59  ;;  %v2561_v59 = vld [vmem:[%s6662_s1 + $0xa40] sm:$0xff] }
  0x93   :  { %3202 = vmatpush1.bf16.msra.mxu1 %v3201_v60  ;;  %3140 = vmatprep.subr.bf16.mxu0 %v3139_v61  ;;  %v2565_v60 = vld [vmem:[%s6662_s1 + $0xa60] sm:$0xff]  ;;  %v2563_v61 = vld [vmem:[%s6662_s1 + $0xa50] sm:$0xff] }
  0x94   :  { %3204 = vmatprep.subr.bf16.mxu1 %v3203_v1  ;;  %v2574_v1 = vld [vmem:[%s6662_s1 + $0xaa8] sm:$0xff]  ;;  %v3161_v4 = vpack.c.bf16 %v2565_v60, %v2561_v59  ;;  %v3225_v5 = vpack.c.bf16 %v2567_v63, %v2563_v61 }
  0x95   :  { %v3163_v6 = vpack.c.bf16 %v2574_v1, %v2570_v0 }
  0x96   :  { %3142 = vmatpush1.bf16.msra.mxu0 %v3141_v7  ;;  %v2569_v7 = vld [vmem:[%s6662_s1 + $0xa80] sm:$0xff] }
  0x97   :  { %3206 = vmatpush1.bf16.msra.mxu1 %v3205_v8  ;;  %3144 = vmatprep.subr.bf16.mxu0 %v3143_v9  ;;  %v2573_v8 = vld [vmem:[%s6662_s1 + $0xaa0] sm:$0xff]  ;;  %v2571_v9 = vld [vmem:[%s6662_s1 + $0xa90] sm:$0xff] }
  0x98   :  { %3208 = vmatprep.subr.bf16.mxu1 %v3207_v13  ;;  %v2582_v13 = vld [vmem:[%s6662_s1 + $0xae8] sm:$0xff]  ;;  %v3165_v17 = vpack.c.bf16 %v2573_v8, %v2569_v7  ;;  %v3229_v18 = vpack.c.bf16 %v2575_v11, %v2571_v9 }
  0x99   :  { %v3167_v20 = vpack.c.bf16 %v2582_v13, %v2578_v12 }
  0x9a   :  { %3146 = vmatpush1.bf16.msra.mxu0 %v3145_v21  ;;  %v2577_v21 = vld [vmem:[%s6662_s1 + $0xac0] sm:$0xff] }
  0x9b   :  { %3210 = vmatpush1.bf16.msra.mxu1 %v3209_v22  ;;  %3148 = vmatprep.subr.bf16.mxu0 %v3147_v23  ;;  %v2581_v22 = vld [vmem:[%s6662_s1 + $0xae0] sm:$0xff]  ;;  %v2579_v23 = vld [vmem:[%s6662_s1 + $0xad0] sm:$0xff] }
  0x9c   :  { %3212 = vmatprep.subr.bf16.mxu1 %v3211_v27  ;;  %v2590_v27 = vld [vmem:[%s6662_s1 + $0xb28] sm:$0xff] }
  0x9e   :  { %3150 = vmatpush1.bf16.msra.mxu0 %v3149_v33 }
  0x9f   :  { %3214 = vmatpush1.bf16.msra.mxu1 %v3213_v34  ;;  %3152 = vmatprep.subr.bf16.mxu0 %v3151_v35 }
  0xa0   :  { %3216 = vmatprep.subr.bf16.mxu1 %v3215_v39 }
  0xa2   :  { %3154 = vmatpush1.bf16.msra.mxu0 %v3153_v44 }
  0xa3   :  { %3218 = vmatpush1.bf16.msra.mxu1 %v3217_v45  ;;  %3156 = vmatprep.subr.bf16.mxu0 %v3155_v46 }
  0xa4   :  { %3220 = vmatprep.subr.bf16.mxu1 %v3219_v50 }
  0xa6   :  { %3158 = vmatpush1.bf16.msra.mxu0 %v3157_v56 }
  0xa7   :  { %3222 = vmatpush1.bf16.msra.mxu1 %v3221_v57  ;;  %3160 = vmatprep.subr.bf16.mxu0 %v3159_v58 }
  0xa8   :  { %3224 = vmatprep.subr.bf16.mxu1 %v3223_v62 }
  0xaa   :  { %3162 = vmatpush1.bf16.msra.mxu0 %v3161_v4 }
  0xab   :  { %3226 = vmatpush1.bf16.msra.mxu1 %v3225_v5  ;;  %3164 = vmatprep.subr.bf16.mxu0 %v3163_v6 }
  0xac   :  { %3228 = vmatprep.subr.bf16.mxu1 %v3227_v10 }
  0xad   :  { %13 = vsyncpa [#allocation3], 0  ;;  %v3169_v30 = vpack.c.bf16 %v2581_v22, %v2577_v21  ;;  %v3233_v31 = vpack.c.bf16 %v2583_v25, %v2579_v23  ;;  %v3171_v32 = vpack.c.bf16 %v2590_v27, %v2586_v26  ;;  %v2585_v33 = vld [vmem:[%s6662_s1 + $0xb00] sm:$0xff]  ;;  %v2587_v35 = vld [vmem:[%s6662_s1 + $0xb10] sm:$0xff]  ;;  %v3235_v36 = vpack.c.bf16 %v2592_v29, %v2588_v28 }
  0xae   :  { %3166 = vmatpush1.bf16.msra.mxu0 %v3165_v17  ;;  %v2589_v34 = vld [vmem:[%s6662_s1 + $0xb20] sm:$0xff]  ;;  %v2591_v37 = vld [vmem:[%s6662_s1 + $0xb30] sm:$0xff]  ;;  %v2594_v38 = vld [vmem:[%s6662_s1 + $0xb48] sm:$0xff]  ;;  %vm1337_vm0 = vcmask 64512   ;;  %vm1779_vm1 = vcmask 130048   ;;  %vm3816_vm2 = vmmov 0  }
  0xaf   :  { %3230 = vmatpush1.bf16.msra.mxu1 %v3229_v18  ;;  %3168 = vmatprep.subr.bf16.mxu0 %v3167_v20  ;;  %v2598_v39 = vld [vmem:[%s6662_s1 + $0xb68] sm:$0xff]  ;;  %v2596_v40 = vld [vmem:[%s6662_s1 + $0xb58] sm:$0xff]  ;;  %v3173_v16 = vpack.c.bf16 %v2589_v34, %v2585_v33  ;;  %v3237_v42 = vpack.c.bf16 %v2591_v37, %v2587_v35  ;;  %v2593_v44 = vld [vmem:[%s6662_s1 + $0xb40] sm:$0xff]  ;;  %vm2111_vm3 = vcmask 261120   ;;  %vm2271_vm4 = vcmask 523264  }
  0xb0   :  { %3232 = vmatprep.subr.bf16.mxu1 %v3231_v24  ;;  %v2600_v41 = vld [vmem:[%s6662_s1 + $0xb78] sm:$0xff]  ;;  %v3175_v43 = vpack.c.bf16 %v2598_v39, %v2594_v38  ;;  %v2597_v45 = vld [vmem:[%s6662_s1 + $0xb60] sm:$0xff]  ;;  %v2595_v46 = vld [vmem:[%s6662_s1 + $0xb50] sm:$0xff] }
  0xb1   :  { %v3239_v47 = vpack.c.bf16 %v2600_v41, %v2596_v40  ;;  %v2599_v48 = vld [vmem:[%s6662_s1 + $0xb70] sm:$0xff]  ;;  %v2602_v49 = vld [vmem:[%s6662_s1 + $0xb88] sm:$0xff]  ;;  %v2604_v51 = vld [vmem:[%s6662_s1 + $0xb98] sm:$0xff]  ;;  %v3177_v53 = vpack.c.bf16 %v2597_v45, %v2593_v44 }
  0xb2   :  { %3170 = vmatpush1.bf16.msra.mxu0 %v3169_v30  ;;  %v2606_v50 = vld [vmem:[%s6662_s1 + $0xba8] sm:$0xff]  ;;  %v2608_v52 = vld [vmem:[%s6662_s1 + $0xbb8] sm:$0xff]  ;;  %v3241_v54 = vpack.c.bf16 %v2599_v48, %v2595_v46  ;;  %v2601_v56 = vld [vmem:[%s6662_s1 + $0xb80] sm:$0xff] }
  0xb3   :  { %3234 = vmatpush1.bf16.msra.mxu1 %v3233_v31  ;;  %3172 = vmatprep.subr.bf16.mxu0 %v3171_v32  ;;  %v3179_v55 = vpack.c.bf16 %v2606_v50, %v2602_v49  ;;  %v2605_v57 = vld [vmem:[%s6662_s1 + $0xba0] sm:$0xff]  ;;  %v2603_v58 = vld [vmem:[%s6662_s1 + $0xb90] sm:$0xff]  ;;  %v3243_v59 = vpack.c.bf16 %v2608_v52, %v2604_v51  ;;  %v2610_v61 = vld [vmem:[%s6662_s1 + $0xbc8] sm:$0xff] }
  0xb4   :  { %3236 = vmatprep.subr.bf16.mxu1 %v3235_v36  ;;  %v2607_v60 = vld [vmem:[%s6662_s1 + $0xbb0] sm:$0xff]  ;;  %v2614_v62 = vld [vmem:[%s6662_s1 + $0xbe8] sm:$0xff]  ;;  %v2612_v63 = vld [vmem:[%s6662_s1 + $0xbd8] sm:$0xff]  ;;  %v3181_v1 = vpack.c.bf16 %v2605_v57, %v2601_v56 }
  0xb5   :  { %v2616_v0 = vld [vmem:[%s6662_s1 + $0xbf8] sm:$0xff]  ;;  %v3245_v2 = vpack.c.bf16 %v2607_v60, %v2603_v58  ;;  %v3183_v3 = vpack.c.bf16 %v2614_v62, %v2610_v61  ;;  %v2609_v4 = vld [vmem:[%s6662_s1 + $0xbc0] sm:$0xff]  ;;  %v2611_v6 = vld [vmem:[%s6662_s1 + $0xbd0] sm:$0xff] }
  0xb6   :  { %3174 = vmatpush1.bf16.msra.mxu0 %v3173_v16  ;;  %v2613_v5 = vld [vmem:[%s6662_s1 + $0xbe0] sm:$0xff]  ;;  %v3247_v7 = vpack.c.bf16 %v2616_v0, %v2612_v63  ;;  %v2615_v8 = vld [vmem:[%s6662_s1 + $0xbf0] sm:$0xff]  ;;  %v2618_v9 = vld [vmem:[%s6662_s1 + $0xc08] sm:$0xff] }
  0xb7   :  { %3238 = vmatpush1.bf16.msra.mxu1 %v3237_v42  ;;  %3176 = vmatprep.subr.bf16.mxu0 %v3175_v43  ;;  %v2622_v10 = vld [vmem:[%s6662_s1 + $0xc28] sm:$0xff]  ;;  %v2620_v11 = vld [vmem:[%s6662_s1 + $0xc18] sm:$0xff]  ;;  %v3185_v13 = vpack.c.bf16 %v2613_v5, %v2609_v4  ;;  %v3249_v14 = vpack.c.bf16 %v2615_v8, %v2611_v6  ;;  %v2617_v17 = vld [vmem:[%s6662_s1 + $0xc00] sm:$0xff] }
  0xb8   :  { %3240 = vmatprep.subr.bf16.mxu1 %v3239_v47  ;;  %v2624_v12 = vld [vmem:[%s6662_s1 + $0xc38] sm:$0xff]  ;;  %v3251_v15 = vpack.c.bf16 %v2622_v10, %v2618_v9  ;;  %v2621_v18 = vld [vmem:[%s6662_s1 + $0xc20] sm:$0xff]  ;;  %v2619_v20 = vld [vmem:[%s6662_s1 + $0xc10] sm:$0xff] }
  0xb9   :  { %v3315_v21 = vpack.c.bf16 %v2624_v12, %v2620_v11  ;;  %v2623_v22 = vld [vmem:[%s6662_s1 + $0xc30] sm:$0xff]  ;;  %v2626_v23 = vld [vmem:[%s6662_s1 + $0xc48] sm:$0xff]  ;;  %v2628_v25 = vld [vmem:[%s6662_s1 + $0xc58] sm:$0xff]  ;;  %v3253_v27 = vpack.c.bf16 %v2621_v18, %v2617_v17 }
  0xba   :  { %3178 = vmatpush1.bf16.msra.mxu0 %v3177_v53  ;;  %v2630_v24 = vld [vmem:[%s6662_s1 + $0xc68] sm:$0xff]  ;;  %v2632_v26 = vld [vmem:[%s6662_s1 + $0xc78] sm:$0xff]  ;;  %v3317_v28 = vpack.c.bf16 %v2623_v22, %v2619_v20  ;;  %v2625_v30 = vld [vmem:[%s6662_s1 + $0xc40] sm:$0xff] }
  0xbb   :  { %3242 = vmatpush1.bf16.msra.mxu1 %v3241_v54  ;;  %3180 = vmatprep.subr.bf16.mxu0 %v3179_v55  ;;  %v3255_v29 = vpack.c.bf16 %v2630_v24, %v2626_v23  ;;  %v2629_v31 = vld [vmem:[%s6662_s1 + $0xc60] sm:$0xff]  ;;  %v2627_v32 = vld [vmem:[%s6662_s1 + $0xc50] sm:$0xff]  ;;  %v3319_v33 = vpack.c.bf16 %v2632_v26, %v2628_v25  ;;  %v2634_v35 = vld [vmem:[%s6662_s1 + $0xc88] sm:$0xff] }
  0xbc   :  { %3244 = vmatprep.subr.bf16.mxu1 %v3243_v59  ;;  %v2631_v34 = vld [vmem:[%s6662_s1 + $0xc70] sm:$0xff]  ;;  %v2638_v36 = vld [vmem:[%s6662_s1 + $0xca8] sm:$0xff]  ;;  %v5092_v37 = vld.sshfl [vmem:[%s6661_s0] sm:$0x33 pattern:$0x76325410]  ;;  %v3257_v40 = vpack.c.bf16 %v2629_v31, %v2625_v30 }
  0xbd   :  { %v2636_v38 = vld [vmem:[%s6662_s1 + $0xc98] sm:$0xff]  ;;  %v3321_v41 = vpack.c.bf16 %v2631_v34, %v2627_v32  ;;  %v3259_v16 = vpack.c.bf16 %v2638_v36, %v2634_v35  ;;  %v2633_v42 = vld [vmem:[%s6662_s1 + $0xc80] sm:$0xff]  ;;  %v2635_v44 = vld [vmem:[%s6662_s1 + $0xc90] sm:$0xff] }
  0xbe   :  { %3182 = vmatpush1.bf16.msra.mxu0 %v3181_v1  ;;  %v2640_v39 = vld [vmem:[%s6662_s1 + $0xcb8] sm:$0xff]  ;;  %v2637_v43 = vld [vmem:[%s6662_s1 + $0xca0] sm:$0xff]  ;;  %v2639_v46 = vld [vmem:[%s6662_s1 + $0xcb0] sm:$0xff] }
  0xbf   :  { %3246 = vmatpush1.bf16.msra.mxu1 %v3245_v2  ;;  %3184 = vmatprep.subr.bf16.mxu0 %v3183_v3  ;;  %v3323_v45 = vpack.c.bf16 %v2640_v39, %v2636_v38  ;;  %v2642_v47 = vld [vmem:[%s6662_s1 + $0xcc8] sm:$0xff]  ;;  %v2644_v49 = vld [vmem:[%s6662_s1 + $0xcd8] sm:$0xff]  ;;  %v3261_v51 = vpack.c.bf16 %v2637_v43, %v2633_v42  ;;  %v3325_v52 = vpack.c.bf16 %v2639_v46, %v2635_v44  ;;  %v2641_v54 = vld [vmem:[%s6662_s1 + $0xcc0] sm:$0xff] }
  0xc0   :  { %3248 = vmatprep.subr.bf16.mxu1 %v3247_v7  ;;  %v2646_v48 = vld [vmem:[%s6662_s1 + $0xce8] sm:$0xff]  ;;  %v2648_v50 = vld [vmem:[%s6662_s1 + $0xcf8] sm:$0xff]  ;;  %v2645_v55 = vld [vmem:[%s6662_s1 + $0xce0] sm:$0xff] }
  0xc1   :  { %v3263_v53 = vpack.c.bf16 %v2646_v48, %v2642_v47  ;;  %v2643_v56 = vld [vmem:[%s6662_s1 + $0xcd0] sm:$0xff]  ;;  %v2650_v58 = vld [vmem:[%s6662_s1 + $0xd08] sm:$0xff]  ;;  %v2652_v60 = vld [vmem:[%s6662_s1 + $0xd18] sm:$0xff]  ;;  %v3265_v62 = vpack.c.bf16 %v2645_v55, %v2641_v54 }
  0xc2   :  { %3186 = vmatpush1.bf16.msra.mxu0 %v3185_v13  ;;  %v2647_v57 = vld [vmem:[%s6662_s1 + $0xcf0] sm:$0xff]  ;;  %v2654_v59 = vld [vmem:[%s6662_s1 + $0xd28] sm:$0xff]  ;;  %v2656_v61 = vld [vmem:[%s6662_s1 + $0xd38] sm:$0xff] }
  0xc3   :  { %3250 = vmatpush1.bf16.msra.mxu1 %v3249_v14  ;;  %3252 = vmatprep.subr.bf16.mxu0 %v3251_v15  ;;  %v3329_v63 = vpack.c.bf16 %v2647_v57, %v2643_v56  ;;  %v3267_v0 = vpack.c.bf16 %v2654_v59, %v2650_v58  ;;  %v2649_v1 = vld [vmem:[%s6662_s1 + $0xd00] sm:$0xff]  ;;  %v2651_v3 = vld [vmem:[%s6662_s1 + $0xd10] sm:$0xff]  ;;  %v3331_v4 = vpack.c.bf16 %v2656_v61, %v2652_v60  ;;  %v2658_v6 = vld [vmem:[%s6662_s1 + $0xd48] sm:$0xff] }
  0xc4   :  { %3316 = vmatprep.subr.bf16.mxu1 %v3315_v21  ;;  %v2653_v2 = vld [vmem:[%s6662_s1 + $0xd20] sm:$0xff]  ;;  %v2655_v5 = vld [vmem:[%s6662_s1 + $0xd30] sm:$0xff]  ;;  %v2662_v7 = vld [vmem:[%s6662_s1 + $0xd68] sm:$0xff] }
  0xc5   :  { %781 = vmatmul.mubr.f32.vlgmr.msra.gmra.mrb[4].mxu0 %v5092_v37  ;;  %v2660_v8 = vld [vmem:[%s6662_s1 + $0xd58] sm:$0xff]  ;;  %v3269_v10 = vpack.c.bf16 %v2653_v2, %v2649_v1  ;;  %v3333_v11 = vpack.c.bf16 %v2655_v5, %v2651_v3  ;;  %v3271_v12 = vpack.c.bf16 %v2662_v7, %v2658_v6  ;;  %v2657_v13 = vld [vmem:[%s6662_s1 + $0xd40] sm:$0xff]  ;;  %v2659_v15 = vld [vmem:[%s6662_s1 + $0xd50] sm:$0xff] }
  0xc6   :  { %852 = vmatmul.mubr.f32.vlgmr.msra.gmra.mrb[4].mxu1 %v5092_v37  ;;  %3254 = vmatpush1.bf16.msra.mxu0 %v3253_v27  ;;  %v2664_v9 = vld [vmem:[%s6662_s1 + $0xd78] sm:$0xff]  ;;  %v2661_v14 = vld [vmem:[%s6662_s1 + $0xd60] sm:$0xff]  ;;  %v2663_v18 = vld [vmem:[%s6662_s1 + $0xd70] sm:$0xff] }
  0xc7   :  { %3318 = vmatpush1.bf16.msra.mxu1 %v3317_v28  ;;  %3256 = vmatprep.subr.bf16.mxu0 %v3255_v29  ;;  %v3335_v17 = vpack.c.bf16 %v2664_v9, %v2660_v8  ;;  %v2666_v20 = vld [vmem:[%s6662_s1 + $0xd88] sm:$0xff]  ;;  %v2668_v22 = vld [vmem:[%s6662_s1 + $0xd98] sm:$0xff]  ;;  %v3273_v24 = vpack.c.bf16 %v2661_v14, %v2657_v13  ;;  %v3337_v25 = vpack.c.bf16 %v2663_v18, %v2659_v15  ;;  %v2665_v27 = vld [vmem:[%s6662_s1 + $0xd80] sm:$0xff] }
  0xc8   :  { %3320 = vmatprep.subr.bf16.mxu1 %v3319_v33  ;;  %1055 = vmatprep.mubr.f32.mxu0 %v4171_v19  ;;  %v2670_v21 = vld [vmem:[%s6662_s1 + $0xda8] sm:$0xff]  ;;  %v2672_v23 = vld [vmem:[%s6662_s1 + $0xdb8] sm:$0xff]  ;;  %v2669_v28 = vld [vmem:[%s6662_s1 + $0xda0] sm:$0xff] }
  0xc9   :  { %1126 = vmatprep.mubr.f32.mxu1 %v4171_v19  ;;  %v3327_v19 = vpack.c.bf16 %v2648_v50, %v2644_v49  ;;  %v3275_v26 = vpack.c.bf16 %v2670_v21, %v2666_v20  ;;  %v2667_v29 = vld [vmem:[%s6662_s1 + $0xd90] sm:$0xff]  ;;  %v3339_v30 = vpack.c.bf16 %v2672_v23, %v2668_v22  ;;  %v2674_v32 = vld [vmem:[%s6662_s1 + $0xdc8] sm:$0xff]  ;;  %v2676_v34 = vld [vmem:[%s6662_s1 + $0xdd8] sm:$0xff]  ;;  %v3277_v36 = vpack.c.bf16 %v2669_v28, %v2665_v27 }
  0xca   :  { %3258 = vmatpush1.bf16.msra.mxu0 %v3257_v40  ;;  %v2671_v31 = vld [vmem:[%s6662_s1 + $0xdb0] sm:$0xff]  ;;  %v2678_v33 = vld [vmem:[%s6662_s1 + $0xde8] sm:$0xff]  ;;  %v2680_v35 = vld [vmem:[%s6662_s1 + $0xdf8] sm:$0xff] }
  0xcb   :  { %3322 = vmatpush1.bf16.msra.mxu1 %v3321_v41  ;;  %3260 = vmatprep.subr.bf16.mxu0 %v3259_v16  ;;  %v3341_v38 = vpack.c.bf16 %v2671_v31, %v2667_v29  ;;  %v3279_v39 = vpack.c.bf16 %v2678_v33, %v2674_v32  ;;  %v2673_v40 = vld [vmem:[%s6662_s1 + $0xdc0] sm:$0xff]  ;;  %v2675_v16 = vld [vmem:[%s6662_s1 + $0xdd0] sm:$0xff]  ;;  %v3343_v42 = vpack.c.bf16 %v2680_v35, %v2676_v34  ;;  %v2682_v44 = vld [vmem:[%s6662_s1 + $0xe08] sm:$0xff] }
  0xcc   :  { %3324 = vmatprep.subr.bf16.mxu1 %v3323_v45  ;;  %v2677_v41 = vld [vmem:[%s6662_s1 + $0xde0] sm:$0xff]  ;;  %v2679_v43 = vld [vmem:[%s6662_s1 + $0xdf0] sm:$0xff]  ;;  %v2686_v45 = vld [vmem:[%s6662_s1 + $0xe28] sm:$0xff] }
  0xcd   :  { %v2684_v46 = vld [vmem:[%s6662_s1 + $0xe18] sm:$0xff]  ;;  %v3281_v48 = vpack.c.bf16 %v2677_v41, %v2673_v40  ;;  %v3345_v49 = vpack.c.bf16 %v2679_v43, %v2675_v16  ;;  %v3283_v50 = vpack.c.bf16 %v2686_v45, %v2682_v44  ;;  %v2687_v55 = vld [vmem:[%s6662_s1 + $0xe30] sm:$0xff]  ;;  %v2690_v56 = vld [vmem:[%s6662_s1 + $0xe48] sm:$0xff] }
  0xce   :  { %3262 = vmatpush1.bf16.msra.mxu0 %v3261_v51  ;;  %v2688_v47 = vld [vmem:[%s6662_s1 + $0xe38] sm:$0xff]  ;;  %v2681_v51 = vld [vmem:[%s6662_s1 + $0xe00] sm:$0xff]  ;;  %v2695_v2 = vld [vmem:[%s6662_s1 + $0xe70] sm:$0xff] }
  0xcf   :  { %3326 = vmatpush1.bf16.msra.mxu1 %v3325_v52  ;;  %3264 = vmatprep.subr.bf16.mxu0 %v3263_v53  ;;  %v2685_v52 = vld [vmem:[%s6662_s1 + $0xe20] sm:$0xff]  ;;  %v2683_v53 = vld [vmem:[%s6662_s1 + $0xe10] sm:$0xff]  ;;  %v3347_v54 = vpack.c.bf16 %v2688_v47, %v2684_v46  ;;  %v2692_v57 = vld [vmem:[%s6662_s1 + $0xe58] sm:$0xff] }
  0xd0   :  { %3328 = vmatprep.subr.bf16.mxu1 %v3327_v19  ;;  %v2694_v19 = vld [vmem:[%s6662_s1 + $0xe68] sm:$0xff]  ;;  %v2696_v58 = vld [vmem:[%s6662_s1 + $0xe78] sm:$0xff]  ;;  %v3285_v59 = vpack.c.bf16 %v2685_v52, %v2681_v51  ;;  %v3349_v60 = vpack.c.bf16 %v2687_v55, %v2683_v53  ;;  %v2703_v14 = vld [vmem:[%s6662_s1 + $0xeb0] sm:$0xff] }
  0xd1   :  { %v3287_v61 = vpack.c.bf16 %v2694_v19, %v2690_v56  ;;  %v3351_v1 = vpack.c.bf16 %v2696_v58, %v2692_v57  ;;  %v2698_v3 = vld [vmem:[%s6662_s1 + $0xe88] sm:$0xff]  ;;  %v2700_v5 = vld [vmem:[%s6662_s1 + $0xe98] sm:$0xff]  ;;  %v2711_v28 = vld [vmem:[%s6662_s1 + $0xef0] sm:$0xff] }
  0xd2   :  { %3266 = vmatpush1.bf16.msra.mxu0 %v3265_v62  ;;  %v2689_v62 = vld [vmem:[%s6662_s1 + $0xe40] sm:$0xff]  ;;  %v2704_v6 = vld [vmem:[%s6662_s1 + $0xeb8] sm:$0xff]  ;;  %v2706_v15 = vld [vmem:[%s6662_s1 + $0xec8] sm:$0xff] }
  0xd3   :  { %3330 = vmatpush1.bf16.msra.mxu1 %v3329_v63  ;;  %3268 = vmatprep.subr.bf16.mxu0 %v3267_v0  ;;  %v2693_v63 = vld [vmem:[%s6662_s1 + $0xe60] sm:$0xff]  ;;  %v2691_v0 = vld [vmem:[%s6662_s1 + $0xe50] sm:$0xff]  ;;  %v3355_v13 = vpack.c.bf16 %v2704_v6, %v2700_v5  ;;  %v2708_v18 = vld [vmem:[%s6662_s1 + $0xed8] sm:$0xff] }
  0xd4   :  { %3332 = vmatprep.subr.bf16.mxu1 %v3331_v4  ;;  %v2702_v4 = vld [vmem:[%s6662_s1 + $0xea8] sm:$0xff]  ;;  %v3289_v7 = vpack.c.bf16 %v2693_v63, %v2689_v62  ;;  %v3353_v8 = vpack.c.bf16 %v2695_v2, %v2691_v0  ;;  %v2712_v20 = vld [vmem:[%s6662_s1 + $0xef8] sm:$0xff]  ;;  %v2719_v41 = vld [vmem:[%s6662_s1 + $0xf30] sm:$0xff] }
  0xd5   :  { %v3291_v9 = vpack.c.bf16 %v2702_v4, %v2698_v3  ;;  %v3359_v27 = vpack.c.bf16 %v2712_v20, %v2708_v18  ;;  %v2714_v29 = vld [vmem:[%s6662_s1 + $0xf08] sm:$0xff]  ;;  %v2716_v31 = vld [vmem:[%s6662_s1 + $0xf18] sm:$0xff]  ;;  %v2727_v52 = vld [vmem:[%s6662_s1 + $0xf70] sm:$0xff] }
  0xd6   :  { %3270 = vmatpush1.bf16.msra.mxu0 %v3269_v10  ;;  %v2697_v10 = vld [vmem:[%s6662_s1 + $0xe80] sm:$0xff]  ;;  %v2720_v32 = vld [vmem:[%s6662_s1 + $0xf38] sm:$0xff]  ;;  %v2722_v16 = vld [vmem:[%s6662_s1 + $0xf48] sm:$0xff] }
  0xd7   :  { %3334 = vmatpush1.bf16.msra.mxu1 %v3333_v11  ;;  %3272 = vmatprep.subr.bf16.mxu0 %v3271_v12  ;;  %v2701_v11 = vld [vmem:[%s6662_s1 + $0xea0] sm:$0xff]  ;;  %v2699_v12 = vld [vmem:[%s6662_s1 + $0xe90] sm:$0xff]  ;;  %v3363_v40 = vpack.c.bf16 %v2720_v32, %v2716_v31  ;;  %v2724_v43 = vld [vmem:[%s6662_s1 + $0xf58] sm:$0xff] }
  0xd8   :  { %3336 = vmatprep.subr.bf16.mxu1 %v3335_v17  ;;  %v2710_v17 = vld [vmem:[%s6662_s1 + $0xee8] sm:$0xff]  ;;  %v3293_v21 = vpack.c.bf16 %v2701_v11, %v2697_v10  ;;  %v3357_v22 = vpack.c.bf16 %v2703_v14, %v2699_v12  ;;  %v2728_v44 = vld [vmem:[%s6662_s1 + $0xf78] sm:$0xff]  ;;  %v2735_v63 = vld [vmem:[%s6662_s1 + $0xfb0] sm:$0xff] }
  0xd9   :  { %v3295_v23 = vpack.c.bf16 %v2710_v17, %v2706_v15  ;;  %v3367_v51 = vpack.c.bf16 %v2728_v44, %v2724_v43  ;;  %v2730_v53 = vld [vmem:[%s6662_s1 + $0xf88] sm:$0xff]  ;;  %v2732_v55 = vld [vmem:[%s6662_s1 + $0xf98] sm:$0xff]  ;;  %v2739_v10 = vld [vmem:[%s6662_s1 + $0xfd0] sm:$0xff] }
  0xda   :  { %3274 = vmatpush1.bf16.msra.mxu0 %v3273_v24  ;;  %v2705_v24 = vld [vmem:[%s6662_s1 + $0xec0] sm:$0xff]  ;;  %v2736_v56 = vld [vmem:[%s6662_s1 + $0xfb8] sm:$0xff]  ;;  %v2738_v0 = vld [vmem:[%s6662_s1 + $0xfc8] sm:$0xff] }
  0xdb   :  { %3338 = vmatpush1.bf16.msra.mxu1 %v3337_v25  ;;  %3276 = vmatprep.subr.bf16.mxu0 %v3275_v26  ;;  %v2709_v25 = vld [vmem:[%s6662_s1 + $0xee0] sm:$0xff]  ;;  %v2707_v26 = vld [vmem:[%s6662_s1 + $0xed0] sm:$0xff]  ;;  %v3371_v62 = vpack.c.bf16 %v2736_v56, %v2732_v55  ;;  %v2740_v2 = vld [vmem:[%s6662_s1 + $0xfd8] sm:$0xff] }
  0xdc   :  { %3340 = vmatprep.subr.bf16.mxu1 %v3339_v30  ;;  %v2718_v30 = vld [vmem:[%s6662_s1 + $0xf28] sm:$0xff]  ;;  %v3297_v33 = vpack.c.bf16 %v2709_v25, %v2705_v24  ;;  %v3361_v34 = vpack.c.bf16 %v2711_v28, %v2707_v26  ;;  %v2744_v3 = vld [vmem:[%s6662_s1 + $0xff8] sm:$0xff]  ;;  %v2743_v11 = vld [vmem:[%s6662_s1 + $0xff0] sm:$0xff] }
  0xdd   :  { %v3299_v35 = vpack.c.bf16 %v2718_v30, %v2714_v29  ;;  %v1142_v20 = vld [vmem:[%s6663_s2 + $0x8] sm:$0xff]  ;;  %v1141_v24 = vld [vmem:[%s6663_s2] sm:$0xff]  ;;  %v1143_v28 = vld [vmem:[%s6663_s2 + $0x10] sm:$0xff] }
  0xde   :  { %3278 = vmatpush1.bf16.msra.mxu0 %v3277_v36  ;;  %v2713_v36 = vld [vmem:[%s6662_s1 + $0xf00] sm:$0xff]  ;;  %v1147_v29 = vld [vmem:[%s6663_s2 + $0x30] sm:$0xff]  ;;  %v1150_v30 = vld [vmem:[%s6663_s2 + $0x48] sm:$0xff] }
  0xdf   :  { %3342 = vmatpush1.bf16.msra.mxu1 %v3341_v38  ;;  %3280 = vmatprep.subr.bf16.mxu0 %v3279_v39  ;;  %v2717_v38 = vld [vmem:[%s6662_s1 + $0xf20] sm:$0xff]  ;;  %v2715_v39 = vld [vmem:[%s6662_s1 + $0xf10] sm:$0xff]  ;;  %v3477_v31 = vpack.c.bf16 %v1147_v29, %v1143_v28  ;;  %v1154_v32 = vld [vmem:[%s6663_s2 + $0x68] sm:$0xff] }
  0xe0   :  { %3344 = vmatprep.subr.bf16.mxu1 %v3343_v42  ;;  %v2726_v42 = vld [vmem:[%s6662_s1 + $0xf68] sm:$0xff]  ;;  %v3301_v45 = vpack.c.bf16 %v2717_v38, %v2713_v36  ;;  %v3365_v46 = vpack.c.bf16 %v2719_v41, %v2715_v39  ;;  %v1145_v25 = vld [vmem:[%s6663_s2 + $0x20] sm:$0xff]  ;;  %v1168_v56 = vld [vmem:[%s6663_s2 + $0xd8] sm:$0xff] }
  0xe1   :  { %v3303_v47 = vpack.c.bf16 %v2726_v42, %v2722_v16  ;;  %v1149_v38 = vld [vmem:[%s6663_s2 + $0x40] sm:$0xff]  ;;  %v1155_v16 = vld [vmem:[%s6663_s2 + $0x70] sm:$0xff]  ;;  %v1158_v42 = vld [vmem:[%s6663_s2 + $0x88] sm:$0xff] }
  0xe2   :  { %3282 = vmatpush1.bf16.msra.mxu0 %v3281_v48  ;;  %v2721_v48 = vld [vmem:[%s6662_s1 + $0xf40] sm:$0xff]  ;;  %v1162_v43 = vld [vmem:[%s6663_s2 + $0xa8] sm:$0xff]  ;;  %v1187_v28 = vld [vmem:[%s6663_s2 + $0x170] sm:$0xff] }
  0xe3   :  { %3346 = vmatpush1.bf16.msra.mxu1 %v3345_v49  ;;  %3284 = vmatprep.subr.bf16.mxu0 %v3283_v50  ;;  %v2725_v49 = vld [vmem:[%s6662_s1 + $0xf60] sm:$0xff]  ;;  %v2723_v50 = vld [vmem:[%s6662_s1 + $0xf50] sm:$0xff]  ;;  %v1170_v55 = vld [vmem:[%s6663_s2 + $0xe8] sm:$0xff] }
  0xe4   :  { %3348 = vmatprep.subr.bf16.mxu1 %v3347_v54  ;;  %v2734_v54 = vld [vmem:[%s6662_s1 + $0xfa8] sm:$0xff]  ;;  %v3305_v19 = vpack.c.bf16 %v2725_v49, %v2721_v48  ;;  %v3369_v57 = vpack.c.bf16 %v2727_v52, %v2723_v50  ;;  %v1153_v39 = vld [vmem:[%s6663_s2 + $0x60] sm:$0xff]  ;;  %v1163_v52 = vld [vmem:[%s6663_s2 + $0xb0] sm:$0xff] }
  0xe5   :  { %v3307_v58 = vpack.c.bf16 %v2734_v54, %v2730_v53  ;;  %v3385_v41 = vpack.c.bf16 %v1153_v39, %v1149_v38  ;;  %v1157_v48 = vld [vmem:[%s6663_s2 + $0x80] sm:$0xff]  ;;  %v1166_v54 = vld [vmem:[%s6663_s2 + $0xc8] sm:$0xff]  ;;  %v1191_v39 = vld [vmem:[%s6663_s2 + $0x190] sm:$0xff] }
  0xe6   :  { %3286 = vmatpush1.bf16.msra.mxu0 %v3285_v59  ;;  %v2729_v59 = vld [vmem:[%s6662_s1 + $0xf80] sm:$0xff]  ;;  %v1190_v29 = vld [vmem:[%s6663_s2 + $0x188] sm:$0xff] }
  0xe7   :  { %3350 = vmatpush1.bf16.msra.mxu1 %v3349_v60  ;;  %3288 = vmatprep.subr.bf16.mxu0 %v3287_v61  ;;  %v2733_v60 = vld [vmem:[%s6662_s1 + $0xfa0] sm:$0xff]  ;;  %v2731_v61 = vld [vmem:[%s6662_s1 + $0xf90] sm:$0xff] }
  0xe8   :  { %3352 = vmatprep.subr.bf16.mxu1 %v3351_v1  ;;  %v2742_v1 = vld [vmem:[%s6662_s1 + $0xfe8] sm:$0xff]  ;;  %v3309_v4 = vpack.c.bf16 %v2733_v60, %v2729_v59  ;;  %v3373_v5 = vpack.c.bf16 %v2735_v63, %v2731_v61  ;;  %v1161_v50 = vld [vmem:[%s6663_s2 + $0xa0] sm:$0xff]  ;;  %v1171_v63 = vld [vmem:[%s6663_s2 + $0xf0] sm:$0xff] }
  0xe9   :  { %v3311_v6 = vpack.c.bf16 %v2742_v1, %v2738_v0  ;;  %v3389_v53 = vpack.c.bf16 %v1161_v50, %v1157_v48  ;;  %v1165_v59 = vld [vmem:[%s6663_s2 + $0xc0] sm:$0xff]  ;;  %v1174_v0 = vld [vmem:[%s6663_s2 + $0x108] sm:$0xff]  ;;  %v1199_v50 = vld [vmem:[%s6663_s2 + $0x1d0] sm:$0xff] }
  0xea   :  { %3290 = vmatpush1.bf16.msra.mxu0 %v3289_v7  ;;  %v2737_v7 = vld [vmem:[%s6662_s1 + $0xfc0] sm:$0xff]  ;;  %v1178_v1 = vld [vmem:[%s6663_s2 + $0x128] sm:$0xff] }
  0xeb   :  { %3354 = vmatpush1.bf16.msra.mxu1 %v3353_v8  ;;  %3292 = vmatprep.subr.bf16.mxu0 %v3291_v9  ;;  %v2741_v8 = vld [vmem:[%s6662_s1 + $0xfe0] sm:$0xff]  ;;  %v3375_v9 = vpack.c.bf16 %v2744_v3, %v2740_v2  ;;  %v1176_v2 = vld [vmem:[%s6663_s2 + $0x118] sm:$0xff] }
  0xec   :  { %3356 = vmatprep.subr.bf16.mxu1 %v3355_v13  ;;  %v3313_v12 = vpack.c.bf16 %v2741_v8, %v2737_v7  ;;  %v3377_v13 = vpack.c.bf16 %v2743_v11, %v2739_v10  ;;  %v1169_v60 = vld [vmem:[%s6663_s2 + $0xe0] sm:$0xff]  ;;  %v1180_v3 = vld [vmem:[%s6663_s2 + $0x138] sm:$0xff]  ;;  %v1179_v11 = vld [vmem:[%s6663_s2 + $0x130] sm:$0xff] }
  0xed   :  { %v1173_v7 = vld [vmem:[%s6663_s2 + $0x100] sm:$0xff]  ;;  %v3491_v10 = vpack.c.bf16 %v1180_v3, %v1176_v2  ;;  %v1216_v2 = vld [vmem:[%s6663_s2 + $0x258] sm:$0xff] }
  0xee   :  { %3294 = vmatpush1.bf16.msra.mxu0 %v3293_v21  ;;  %v1146_v21 = vld [vmem:[%s6663_s2 + $0x28] sm:$0xff]  ;;  %v1177_v8 = vld [vmem:[%s6663_s2 + $0x120] sm:$0xff]  ;;  %v1220_v3 = vld [vmem:[%s6663_s2 + $0x278] sm:$0xff] }
  0xef   :  { %3358 = vmatpush1.bf16.msra.mxu1 %v3357_v22  ;;  %3296 = vmatprep.subr.bf16.mxu0 %v3295_v23  ;;  %v3379_v22 = vpack.c.bf16 %v1146_v21, %v1142_v20  ;;  %v1148_v23 = vld [vmem:[%s6663_s2 + $0x38] sm:$0xff]  ;;  %v1193_v38 = vld [vmem:[%s6663_s2 + $0x1a0] sm:$0xff] }
  0xf0   :  { %3360 = vmatprep.subr.bf16.mxu1 %v3359_v27  ;;  %v3381_v27 = vpack.c.bf16 %v1145_v25, %v1141_v24  ;;  %v1184_v20 = vld [vmem:[%s6663_s2 + $0x158] sm:$0xff]  ;;  %v1181_v24 = vld [vmem:[%s6663_s2 + $0x140] sm:$0xff] }
  0xf1   :  { %v1188_v21 = vld [vmem:[%s6663_s2 + $0x178] sm:$0xff]  ;;  %v1185_v25 = vld [vmem:[%s6663_s2 + $0x160] sm:$0xff] }
  0xf2   :  { %3298 = vmatpush1.bf16.msra.mxu0 %v3297_v33  ;;  %v1152_v33 = vld [vmem:[%s6663_s2 + $0x58] sm:$0xff]  ;;  %v1197_v48 = vld [vmem:[%s6663_s2 + $0x1c0] sm:$0xff] }
  0xf3   :  { %3362 = vmatpush1.bf16.msra.mxu1 %v3361_v34  ;;  %3300 = vmatprep.subr.bf16.mxu0 %v3299_v35  ;;  %v1156_v34 = vld [vmem:[%s6663_s2 + $0x78] sm:$0xff]  ;;  %v3383_v35 = vpack.c.bf16 %v1154_v32, %v1150_v30  ;;  %v1194_v30 = vld [vmem:[%s6663_s2 + $0x1a8] sm:$0xff] }
  0xf4   :  { %3364 = vmatprep.subr.bf16.mxu1 %v3363_v40  ;;  %v3479_v36 = vpack.c.bf16 %v1156_v34, %v1152_v33  ;;  %v1151_v40 = vld [vmem:[%s6663_s2 + $0x50] sm:$0xff]  ;;  %v1196_v32 = vld [vmem:[%s6663_s2 + $0x1b8] sm:$0xff]  ;;  %v3401_v33 = vpack.c.bf16 %v1185_v25, %v1181_v24  ;;  %v1221_v24 = vld [vmem:[%s6663_s2 + $0x280] sm:$0xff] }
  0xf5   :  { %v3481_v44 = vpack.c.bf16 %v1155_v16, %v1151_v40  ;;  %v1198_v16 = vld [vmem:[%s6663_s2 + $0x1c8] sm:$0xff]  ;;  %v1225_v25 = vld [vmem:[%s6663_s2 + $0x2a0] sm:$0xff] }
  0xf6   :  { %3302 = vmatpush1.bf16.msra.mxu0 %v3301_v45  ;;  %v3387_v45 = vpack.c.bf16 %v1162_v43, %v1158_v42  ;;  %v1202_v42 = vld [vmem:[%s6663_s2 + $0x1e8] sm:$0xff]  ;;  %v1200_v43 = vld [vmem:[%s6663_s2 + $0x1d8] sm:$0xff] }
  0xf7   :  { %3366 = vmatpush1.bf16.msra.mxu1 %v3365_v46  ;;  %3304 = vmatprep.subr.bf16.mxu0 %v3303_v47  ;;  %v1160_v46 = vld [vmem:[%s6663_s2 + $0x98] sm:$0xff] }
  0xf8   :  { %3368 = vmatprep.subr.bf16.mxu1 %v3367_v51  ;;  %v1164_v47 = vld [vmem:[%s6663_s2 + $0xb8] sm:$0xff]  ;;  %v1159_v51 = vld [vmem:[%s6663_s2 + $0x90] sm:$0xff] }
  0xf9   :  { %v3483_v49 = vpack.c.bf16 %v1164_v47, %v1160_v46  ;;  %v3407_v47 = vpack.c.bf16 %v1202_v42, %v1198_v16  ;;  %v1238_v16 = vld [vmem:[%s6663_s2 + $0x308] sm:$0xff] }
  0xfa   :  { %3306 = vmatpush1.bf16.msra.mxu0 %v3305_v19  ;;  %v3485_v19 = vpack.c.bf16 %v1163_v52, %v1159_v51  ;;  %v1203_v52 = vld [vmem:[%s6663_s2 + $0x1f0] sm:$0xff]  ;;  %v1242_v42 = vld [vmem:[%s6663_s2 + $0x328] sm:$0xff] }
  0xfb   :  { %3370 = vmatpush1.bf16.msra.mxu1 %v3369_v57  ;;  %3308 = vmatprep.subr.bf16.mxu0 %v3307_v58  ;;  %v3391_v57 = vpack.c.bf16 %v1170_v55, %v1166_v54  ;;  %v1172_v58 = vld [vmem:[%s6663_s2 + $0xf8] sm:$0xff]  ;;  %v1210_v54 = vld [vmem:[%s6663_s2 + $0x228] sm:$0xff] }
  0xfc   :  { %3372 = vmatprep.subr.bf16.mxu1 %v3371_v62  ;;  %v3487_v61 = vpack.c.bf16 %v1172_v58, %v1168_v56  ;;  %v1167_v62 = vld [vmem:[%s6663_s2 + $0xd0] sm:$0xff]  ;;  %v1208_v55 = vld [vmem:[%s6663_s2 + $0x218] sm:$0xff] }
  0xfd   :  { %v1212_v56 = vld [vmem:[%s6663_s2 + $0x238] sm:$0xff] }
  0xfe   :  { %3310 = vmatpush1.bf16.msra.mxu0 %v3309_v4  ;;  %v3393_v4 = vpack.c.bf16 %v1169_v60, %v1165_v59  ;;  %v1205_v59 = vld [vmem:[%s6663_s2 + $0x200] sm:$0xff] }
  0xff   :  { %3374 = vmatpush1.bf16.msra.mxu1 %v3373_v5  ;;  %3312 = vmatprep.subr.bf16.mxu0 %v3311_v6  ;;  %v3489_v5 = vpack.c.bf16 %v1171_v63, %v1167_v62  ;;  %v3395_v6 = vpack.c.bf16 %v1178_v1, %v1174_v0  ;;  %v1209_v60 = vld [vmem:[%s6663_s2 + $0x220] sm:$0xff]  ;;  %v3507_v62 = vpack.c.bf16 %v1212_v56, %v1208_v55  ;;  %v1211_v63 = vld [vmem:[%s6663_s2 + $0x230] sm:$0xff]  ;;  %v1214_v0 = vld [vmem:[%s6663_s2 + $0x248] sm:$0xff] }
 0x100   :  { %3376 = vmatprep.subr.bf16.mxu1 %v3375_v9  ;;  %v1175_v9 = vld [vmem:[%s6663_s2 + $0x110] sm:$0xff]  ;;  %v1218_v1 = vld [vmem:[%s6663_s2 + $0x268] sm:$0xff]  ;;  %v1248_v55 = vld [vmem:[%s6663_s2 + $0x358] sm:$0xff] }
 0x101   :  { %v1252_v56 = vld [vmem:[%s6663_s2 + $0x378] sm:$0xff] }
 0x102   :  { %3314 = vmatpush1.bf16.msra.mxu0 %v3313_v12  ;;  %v1182_v12 = vld [vmem:[%s6663_s2 + $0x148] sm:$0xff] }
 0x103   :  { %3378 = vmatpush1.bf16.msra.mxu1 %v3377_v13  ;;  %3380 = vmatprep.subr.bf16.mxu0 %v3379_v22  ;;  %v1186_v13 = vld [vmem:[%s6663_s2 + $0x168] sm:$0xff]  ;;  %v3493_v22 = vpack.c.bf16 %v1179_v11, %v1175_v9  ;;  %v1215_v9 = vld [vmem:[%s6663_s2 + $0x250] sm:$0xff] }
 0x104   :  { %v1219_v11 = vld [vmem:[%s6663_s2 + $0x270] sm:$0xff] }
 0x105   :  { %1056 = vmatmul.mubr.f32.vlgmr.msra.gmra.mrb[6].mxu0 %v5092_v37 }
 0x106   :  { %1127 = vmatmul.mubr.f32.vlgmr.msra.gmra.mrb[6].mxu1 %v5092_v37  ;;  %v1144_v37 = vld [vmem:[%s6663_s2 + $0x18] sm:$0xff]  ;;  %3382 = vmatpush1.bf16.msra.mxu0 %v3381_v27  ;;  %v3495_v27 = vpack.c.bf16 %v1188_v21, %v1184_v20 }
 0x107   :  { %v3475_v26 = vpack.c.bf16 %v1148_v23, %v1144_v37  ;;  %3384 = vmatprep.subr.bf16.mxu0 %v3383_v35  ;;  %v3397_v37 = vpack.c.bf16 %v1177_v8, %v1173_v7  ;;  %v3399_v23 = vpack.c.bf16 %v1186_v13, %v1182_v12  ;;  %v3403_v35 = vpack.c.bf16 %v1194_v30, %v1190_v29  ;;  %v1213_v7 = vld [vmem:[%s6663_s2 + $0x240] sm:$0xff]  ;;  %v1222_v12 = vld [vmem:[%s6663_s2 + $0x288] sm:$0xff]  ;;  %v1224_v20 = vld [vmem:[%s6663_s2 + $0x298] sm:$0xff] }
 0x108   :  { %v1217_v8 = vld [vmem:[%s6663_s2 + $0x260] sm:$0xff]  ;;  %v1226_v13 = vld [vmem:[%s6663_s2 + $0x2a8] sm:$0xff]  ;;  %v1228_v21 = vld [vmem:[%s6663_s2 + $0x2b8] sm:$0xff] }
 0x109   :  { %3476 = vmatprep.subr.bf16.mxu1 %v3475_v26  ;;  %v1183_v26 = vld [vmem:[%s6663_s2 + $0x150] sm:$0xff]  ;;  %v1230_v29 = vld [vmem:[%s6663_s2 + $0x2c8] sm:$0xff] }
 0x10a   :  { %3478 = vmatpush1.bf16.msra.mxu1 %v3477_v31  ;;  %3386 = vmatpush1.bf16.msra.mxu0 %v3385_v41  ;;  %v1192_v31 = vld [vmem:[%s6663_s2 + $0x198] sm:$0xff]  ;;  %v3497_v34 = vpack.c.bf16 %v1187_v28, %v1183_v26  ;;  %v1195_v41 = vld [vmem:[%s6663_s2 + $0x1b0] sm:$0xff]  ;;  %v1234_v30 = vld [vmem:[%s6663_s2 + $0x2e8] sm:$0xff] }
 0x10b   :  { %3480 = vmatprep.subr.bf16.mxu1 %v3479_v36  ;;  %3388 = vmatprep.subr.bf16.mxu0 %v3387_v45  ;;  %v1189_v36 = vld [vmem:[%s6663_s2 + $0x180] sm:$0xff]  ;;  %v3499_v40 = vpack.c.bf16 %v1196_v32, %v1192_v31  ;;  %v3501_v46 = vpack.c.bf16 %v1195_v41, %v1191_v39  ;;  %v1223_v26 = vld [vmem:[%s6663_s2 + $0x290] sm:$0xff]  ;;  %v1232_v31 = vld [vmem:[%s6663_s2 + $0x2d8] sm:$0xff] }
 0x10c   :  { %v3405_v45 = vpack.c.bf16 %v1193_v38, %v1189_v36  ;;  %v1227_v28 = vld [vmem:[%s6663_s2 + $0x2b0] sm:$0xff]  ;;  %v1236_v32 = vld [vmem:[%s6663_s2 + $0x2f8] sm:$0xff]  ;;  %v1229_v36 = vld [vmem:[%s6663_s2 + $0x2c0] sm:$0xff] }
 0x10d   :  { %v1233_v38 = vld [vmem:[%s6663_s2 + $0x2e0] sm:$0xff]  ;;  %v1231_v39 = vld [vmem:[%s6663_s2 + $0x2d0] sm:$0xff] }
 0x10e   :  { %3482 = vmatpush1.bf16.msra.mxu1 %v3481_v44  ;;  %3390 = vmatpush1.bf16.msra.mxu0 %v3389_v53  ;;  %v1204_v44 = vld [vmem:[%s6663_s2 + $0x1f8] sm:$0xff]  ;;  %v1206_v53 = vld [vmem:[%s6663_s2 + $0x208] sm:$0xff]  ;;  %v1235_v41 = vld [vmem:[%s6663_s2 + $0x2f0] sm:$0xff] }
 0x10f   :  { %3484 = vmatprep.subr.bf16.mxu1 %v3483_v49  ;;  %3392 = vmatprep.subr.bf16.mxu0 %v3391_v57  ;;  %v1201_v49 = vld [vmem:[%s6663_s2 + $0x1e0] sm:$0xff]  ;;  %v3503_v51 = vpack.c.bf16 %v1204_v44, %v1200_v43  ;;  %v3505_v57 = vpack.c.bf16 %v1203_v52, %v1199_v50  ;;  %v3411_v58 = vpack.c.bf16 %v1210_v54, %v1206_v53  ;;  %v1240_v43 = vld [vmem:[%s6663_s2 + $0x318] sm:$0xff]  ;;  %v1239_v50 = vld [vmem:[%s6663_s2 + $0x310] sm:$0xff] }
 0x110   :  { %v1244_v44 = vld [vmem:[%s6663_s2 + $0x338] sm:$0xff]  ;;  %v1243_v52 = vld [vmem:[%s6663_s2 + $0x330] sm:$0xff]  ;;  %v1246_v53 = vld [vmem:[%s6663_s2 + $0x348] sm:$0xff] }
 0x111   :  { %v1250_v54 = vld [vmem:[%s6663_s2 + $0x368] sm:$0xff] }
 0x112   :  { %3486 = vmatpush1.bf16.msra.mxu1 %v3485_v19  ;;  %3394 = vmatpush1.bf16.msra.mxu0 %v3393_v4  ;;  %v3409_v19 = vpack.c.bf16 %v1201_v49, %v1197_v48  ;;  %v3413_v4 = vpack.c.bf16 %v1209_v60, %v1205_v59  ;;  %v1237_v48 = vld [vmem:[%s6663_s2 + $0x300] sm:$0xff] }
 0x113   :  { %3488 = vmatprep.subr.bf16.mxu1 %v3487_v61  ;;  %3396 = vmatprep.subr.bf16.mxu0 %v3395_v6  ;;  %v1207_v61 = vld [vmem:[%s6663_s2 + $0x210] sm:$0xff]  ;;  %v3415_v6 = vpack.c.bf16 %v1218_v1, %v1214_v0  ;;  %v1241_v49 = vld [vmem:[%s6663_s2 + $0x320] sm:$0xff]  ;;  %v1254_v0 = vld [vmem:[%s6663_s2 + $0x388] sm:$0xff] }
 0x114   :  { %v1245_v59 = vld [vmem:[%s6663_s2 + $0x340] sm:$0xff]  ;;  %v1258_v1 = vld [vmem:[%s6663_s2 + $0x3a8] sm:$0xff] }
 0x115   :  { %v1249_v60 = vld [vmem:[%s6663_s2 + $0x360] sm:$0xff] }
 0x116   :  { %3490 = vmatpush1.bf16.msra.mxu1 %v3489_v5  ;;  %3398 = vmatpush1.bf16.msra.mxu0 %v3397_v37  ;;  %v3509_v5 = vpack.c.bf16 %v1211_v63, %v1207_v61  ;;  %v3417_v37 = vpack.c.bf16 %v1217_v8, %v1213_v7  ;;  %v1247_v61 = vld [vmem:[%s6663_s2 + $0x350] sm:$0xff]  ;;  %v1253_v7 = vld [vmem:[%s6663_s2 + $0x380] sm:$0xff] }
 0x117   :  { %3492 = vmatprep.subr.bf16.mxu1 %v3491_v10  ;;  %3400 = vmatprep.subr.bf16.mxu0 %v3399_v23  ;;  %v3511_v10 = vpack.c.bf16 %v1220_v3, %v1216_v2  ;;  %v3419_v23 = vpack.c.bf16 %v1226_v13, %v1222_v12  ;;  %v1251_v63 = vld [vmem:[%s6663_s2 + $0x370] sm:$0xff]  ;;  %v1256_v2 = vld [vmem:[%s6663_s2 + $0x398] sm:$0xff]  ;;  %v1257_v8 = vld [vmem:[%s6663_s2 + $0x3a0] sm:$0xff] }
 0x118   :  { %v5430_v14 = vpop.f32.mrb[0].mxu0  ;;  %v1260_v3 = vld [vmem:[%s6663_s2 + $0x3b8] sm:$0xff]  ;;  %v3437_v12 = vpack.c.bf16 %v1257_v8, %v1253_v7  ;;  %v1283_v7 = vld [vmem:[%s6663_s2 + $0x470] sm:$0xff]  ;;  %v1286_v8 = vld [vmem:[%s6663_s2 + $0x488] sm:$0xff] }
 0x119   :  { %v5432_v15 = vpop.f32.mrb[1].mxu0  ;;  %v5434_v17 = vpop.f32.mrb[0].mxu1 }
 0x11a   :  { %v5436_v18 = vpop.f32.mrb[1].mxu1  ;;  %3494 = vmatpush1.bf16.msra.mxu1 %v3493_v22  ;;  %3402 = vmatpush1.bf16.msra.mxu0 %v3401_v33  ;;  %v3513_v22 = vpack.c.bf16 %v1219_v11, %v1215_v9  ;;  %v3421_v33 = vpack.c.bf16 %v1225_v25, %v1221_v24  ;;  %v3531_v9 = vpack.c.bf16 %v1260_v3, %v1256_v2  ;;  %v1259_v11 = vld [vmem:[%s6663_s2 + $0x3b0] sm:$0xff]  ;;  %v1277_v3 = vld [vmem:[%s6663_s2 + $0x440] sm:$0xff] }
 0x11b   :  { %3496 = vmatprep.subr.bf16.mxu1 %v3495_v27  ;;  %3404 = vmatprep.subr.bf16.mxu0 %v3403_v35  ;;  %v3515_v27 = vpack.c.bf16 %v1228_v21, %v1224_v20  ;;  %v3423_v35 = vpack.c.bf16 %v1234_v30, %v1230_v29  ;;  %v1262_v21 = vld [vmem:[%s6663_s2 + $0x3c8] sm:$0xff]  ;;  %v1265_v29 = vld [vmem:[%s6663_s2 + $0x3e0] sm:$0xff] }
 0x11e   :  { %3498 = vmatpush1.bf16.msra.mxu1 %v3497_v34  ;;  %3406 = vmatpush1.bf16.msra.mxu0 %v3405_v45  ;;  %v3517_v34 = vpack.c.bf16 %v1227_v28, %v1223_v26  ;;  %v3425_v45 = vpack.c.bf16 %v1233_v38, %v1229_v36  ;;  %v1261_v28 = vld [vmem:[%s6663_s2 + $0x3c0] sm:$0xff] }
 0x11f   :  { %3500 = vmatprep.subr.bf16.mxu1 %v3499_v40  ;;  %3408 = vmatprep.subr.bf16.mxu0 %v3407_v47  ;;  %v3519_v40 = vpack.c.bf16 %v1236_v32, %v1232_v31  ;;  %v3427_v47 = vpack.c.bf16 %v1242_v42, %v1238_v16 }
 0x122   :  { %3502 = vmatpush1.bf16.msra.mxu1 %v3501_v46  ;;  %3410 = vmatpush1.bf16.msra.mxu0 %v3409_v19  ;;  %v3521_v46 = vpack.c.bf16 %v1235_v41, %v1231_v39  ;;  %v3429_v19 = vpack.c.bf16 %v1241_v49, %v1237_v48  ;;  %v1272_v39 = vld [vmem:[%s6663_s2 + $0x418] sm:$0xff] }
 0x123   :  { %3504 = vmatprep.subr.bf16.mxu1 %v3503_v51  ;;  %3412 = vmatprep.subr.bf16.mxu0 %v3411_v58  ;;  %v3523_v51 = vpack.c.bf16 %v1244_v44, %v1240_v43  ;;  %v3431_v58 = vpack.c.bf16 %v1250_v54, %v1246_v53  ;;  %v1273_v54 = vld [vmem:[%s6663_s2 + $0x420] sm:$0xff] }
 0x126   :  { %3506 = vmatpush1.bf16.msra.mxu1 %v3505_v57  ;;  %3414 = vmatpush1.bf16.msra.mxu0 %v3413_v4  ;;  %v3525_v57 = vpack.c.bf16 %v1243_v52, %v1239_v50  ;;  %v3433_v4 = vpack.c.bf16 %v1249_v60, %v1245_v59  ;;  %v1269_v50 = vld [vmem:[%s6663_s2 + $0x400] sm:$0xff]  ;;  %v1278_v59 = vld [vmem:[%s6663_s2 + $0x448] sm:$0xff] }
 0x127   :  { %3508 = vmatprep.subr.bf16.mxu1 %v3507_v62  ;;  %3416 = vmatprep.subr.bf16.mxu0 %v3415_v6  ;;  %v3527_v62 = vpack.c.bf16 %v1252_v56, %v1248_v55  ;;  %v3435_v6 = vpack.c.bf16 %v1258_v1, %v1254_v0  ;;  %v1271_v55 = vld [vmem:[%s6663_s2 + $0x410] sm:$0xff]  ;;  %v3445_v1 = vpack.c.bf16 %v1273_v54, %v1269_v50  ;;  %v1314_v50 = vld [vmem:[%s6663_s2 + $0x568] sm:$0xff] }
 0x128   :  { %v1275_v56 = vld [vmem:[%s6663_s2 + $0x430] sm:$0xff] }
 0x129   :  { %v3541_v2 = vpack.c.bf16 %v1275_v56, %v1271_v55  ;;  %v1309_v56 = vld [vmem:[%s6663_s2 + $0x540] sm:$0xff] }
 0x12a   :  { %3510 = vmatpush1.bf16.msra.mxu1 %v3509_v5  ;;  %3418 = vmatpush1.bf16.msra.mxu0 %v3417_v37  ;;  %v3529_v5 = vpack.c.bf16 %v1251_v63, %v1247_v61  ;;  %v1266_v37 = vld [vmem:[%s6663_s2 + $0x3e8] sm:$0xff]  ;;  %v1284_v63 = vld [vmem:[%s6663_s2 + $0x478] sm:$0xff] }
 0x12b   :  { %3512 = vmatprep.subr.bf16.mxu1 %v3511_v10  ;;  %3420 = vmatprep.subr.bf16.mxu0 %v3419_v23  ;;  %v1255_v10 = vld [vmem:[%s6663_s2 + $0x390] sm:$0xff]  ;;  %v3439_v26 = vpack.c.bf16 %v1266_v37, %v1262_v21  ;;  %v1282_v61 = vld [vmem:[%s6663_s2 + $0x468] sm:$0xff] }
 0x12c   :  { %v3533_v13 = vpack.c.bf16 %v1259_v11, %v1255_v10  ;;  %v1290_v11 = vld [vmem:[%s6663_s2 + $0x4a8] sm:$0xff] }
 0x12e   :  { %3514 = vmatpush1.bf16.msra.mxu1 %v3513_v22  ;;  %3422 = vmatpush1.bf16.msra.mxu0 %v3421_v33  ;;  %v1264_v22 = vld [vmem:[%s6663_s2 + $0x3d8] sm:$0xff]  ;;  %v3441_v33 = vpack.c.bf16 %v1265_v29, %v1261_v28  ;;  %v1294_v28 = vld [vmem:[%s6663_s2 + $0x4c8] sm:$0xff] }
 0x12f   :  { %3516 = vmatprep.subr.bf16.mxu1 %v3515_v27  ;;  %3424 = vmatprep.subr.bf16.mxu0 %v3423_v35  ;;  %v1268_v27 = vld [vmem:[%s6663_s2 + $0x3f8] sm:$0xff]  ;;  %v1267_v35 = vld [vmem:[%s6663_s2 + $0x3f0] sm:$0xff]  ;;  %v1298_v29 = vld [vmem:[%s6663_s2 + $0x4e8] sm:$0xff] }
 0x130   :  { %v3535_v32 = vpack.c.bf16 %v1268_v27, %v1264_v22  ;;  %v1285_v22 = vld [vmem:[%s6663_s2 + $0x480] sm:$0xff]  ;;  %v1291_v27 = vld [vmem:[%s6663_s2 + $0x4b0] sm:$0xff] }
 0x132   :  { %3518 = vmatpush1.bf16.msra.mxu1 %v3517_v34  ;;  %3426 = vmatpush1.bf16.msra.mxu0 %v3425_v45  ;;  %v1263_v34 = vld [vmem:[%s6663_s2 + $0x3d0] sm:$0xff] }
 0x133   :  { %3520 = vmatprep.subr.bf16.mxu1 %v3519_v40  ;;  %3428 = vmatprep.subr.bf16.mxu0 %v3427_v47  ;;  %v3537_v38 = vpack.c.bf16 %v1267_v35, %v1263_v34  ;;  %v1297_v34 = vld [vmem:[%s6663_s2 + $0x4e0] sm:$0xff]  ;;  %v3455_v35 = vpack.c.bf16 %v1298_v29, %v1294_v28  ;;  %v1334_v29 = vld [vmem:[%s6663_s2 + $0x608] sm:$0xff] }
 0x136   :  { %3522 = vmatpush1.bf16.msra.mxu1 %v3521_v46  ;;  %3430 = vmatpush1.bf16.msra.mxu0 %v3429_v19 }
 0x137   :  { %3524 = vmatprep.subr.bf16.mxu1 %v3523_v51  ;;  %3432 = vmatprep.subr.bf16.mxu0 %v3431_v58 }
 0x13a   :  { %3526 = vmatpush1.bf16.msra.mxu1 %v3525_v57  ;;  %3434 = vmatpush1.bf16.msra.mxu0 %v3433_v4  ;;  %v1281_v4 = vld [vmem:[%s6663_s2 + $0x460] sm:$0xff] }
 0x13b   :  { %3528 = vmatprep.subr.bf16.mxu1 %v3527_v62  ;;  %3436 = vmatprep.subr.bf16.mxu0 %v3435_v6  ;;  %v1280_v62 = vld [vmem:[%s6663_s2 + $0x458] sm:$0xff]  ;;  %v1279_v6 = vld [vmem:[%s6663_s2 + $0x450] sm:$0xff]  ;;  %v3449_v21 = vpack.c.bf16 %v1281_v4, %v1277_v3  ;;  %v1317_v4 = vld [vmem:[%s6663_s2 + $0x580] sm:$0xff] }
 0x13c   :  { %v3543_v10 = vpack.c.bf16 %v1284_v63, %v1280_v62  ;;  %v3545_v37 = vpack.c.bf16 %v1283_v7, %v1279_v6  ;;  %v1318_v62 = vld [vmem:[%s6663_s2 + $0x588] sm:$0xff] }
 0x13d   :  { %v1322_v63 = vld [vmem:[%s6663_s2 + $0x5a8] sm:$0xff] }
 0x13e   :  { %3530 = vmatpush1.bf16.msra.mxu1 %v3529_v5  ;;  %3438 = vmatpush1.bf16.msra.mxu0 %v3437_v12  ;;  %v1288_v12 = vld [vmem:[%s6663_s2 + $0x498] sm:$0xff]  ;;  %v3467_v6 = vpack.c.bf16 %v1322_v63, %v1318_v62  ;;  %v1643_v62 = vld [vmem:[%s6664_s3 + $0x70] sm:$0xff]  ;;  %v1646_v63 = vld [vmem:[%s6664_s3 + $0x88] sm:$0xff] }
 0x13f   :  { %3532 = vmatprep.subr.bf16.mxu1 %v3531_v9  ;;  %3440 = vmatprep.subr.bf16.mxu0 %v3439_v26  ;;  %v3447_v9 = vpack.c.bf16 %v1282_v61, %v1278_v59  ;;  %v1287_v26 = vld [vmem:[%s6663_s2 + $0x490] sm:$0xff] }
 0x140   :  { %v1315_v61 = vld [vmem:[%s6663_s2 + $0x570] sm:$0xff] }
 0x142   :  { %3534 = vmatpush1.bf16.msra.mxu1 %v3533_v13  ;;  %3442 = vmatpush1.bf16.msra.mxu0 %v3441_v33  ;;  %v1292_v13 = vld [vmem:[%s6663_s2 + $0x4b8] sm:$0xff]  ;;  %v1293_v33 = vld [vmem:[%s6663_s2 + $0x4c0] sm:$0xff] }
 0x143   :  { %3536 = vmatprep.subr.bf16.mxu1 %v3535_v32  ;;  %v3549_v32 = vpack.c.bf16 %v1291_v27, %v1287_v26  ;;  %v1331_v26 = vld [vmem:[%s6663_s2 + $0x5f0] sm:$0xff] }
 0x146   :  { %3538 = vmatpush1.bf16.msra.mxu1 %v3537_v38  ;;  %v1295_v38 = vld [vmem:[%s6663_s2 + $0x4d0] sm:$0xff] }
 0x158   :  { %v507_v20 = vpop.f32.mrb[2].mxu0 }
 0x159   :  { %v583_v23 = vmax.f32 %v5430_v14, %v507_v20  ;;  %v578_v24 = vpop.f32.mrb[2].mxu1  ;;  %v509_v25 = vpop.f32.mrb[3].mxu0 }
 0x15a   :  { %v585_v30 = vmax.f32 %v5434_v17, %v578_v24  ;;  %v584_v31 = vmax.f32 %v5432_v15, %v509_v25  ;;  %v580_v14 = vpop.f32.mrb[3].mxu1  ;;  %v1270_v15 = vld [vmem:[%s6663_s2 + $0x408] sm:$0xff]  ;;  %v3451_v24 = vpack.c.bf16 %v1290_v11, %v1286_v8  ;;  %v3547_v25 = vpack.c.bf16 %v1292_v13, %v1288_v12  ;;  %v1319_v8 = vld [vmem:[%s6663_s2 + $0x590] sm:$0xff]  ;;  %v1328_v12 = vld [vmem:[%s6663_s2 + $0x5d8] sm:$0xff] }
 0x15b   :  { %v586_v36 = vmax.f32 %v5436_v18, %v580_v14  ;;  %v1274_v17 = vld [vmem:[%s6663_s2 + $0x428] sm:$0xff]  ;;  %v1276_v18 = vld [vmem:[%s6663_s2 + $0x438] sm:$0xff] }
 0x15c   :  { %v3443_v40 = vpack.c.bf16 %v1274_v17, %v1270_v15  ;;  %v3539_v41 = vpack.c.bf16 %v1276_v18, %v1272_v39  ;;  %v1299_v15 = vld [vmem:[%s6663_s2 + $0x4f0] sm:$0xff]  ;;  %v1302_v17 = vld [vmem:[%s6663_s2 + $0x508] sm:$0xff]  ;;  %v1308_v18 = vld [vmem:[%s6663_s2 + $0x538] sm:$0xff] }
 0x15d   :  { %v1306_v39 = vld [vmem:[%s6663_s2 + $0x528] sm:$0xff]  ;;  %v1332_v13 = vld [vmem:[%s6663_s2 + $0x5f8] sm:$0xff] }
 0x15e   :  { %3444 = vmatprep.subr.bf16.mxu0 %v3443_v40  ;;  %3540 = vmatprep.subr.bf16.mxu1 %v3539_v41  ;;  %v1304_v40 = vld [vmem:[%s6663_s2 + $0x518] sm:$0xff]  ;;  %v3457_v41 = vpack.c.bf16 %v1297_v34, %v1293_v33  ;;  %v1330_v11 = vld [vmem:[%s6663_s2 + $0x5e8] sm:$0xff]  ;;  %v1333_v33 = vld [vmem:[%s6663_s2 + $0x600] sm:$0xff] }
 0x15f   :  { %v1335_v34 = vld [vmem:[%s6663_s2 + $0x610] sm:$0xff] }
 0x198   :  { %v782_v16 = vpop.f32.mrb[4].mxu0 }
 0x199   :  { %v858_v42 = vmax.f32 %v583_v23, %v782_v16  ;;  %v853_v43 = vpop.f32.mrb[4].mxu1  ;;  %v784_v44 = vpop.f32.mrb[5].mxu0  ;;  %v1289_v23 = vld [vmem:[%s6663_s2 + $0x4a0] sm:$0xff]  ;;  %v3553_v16 = vpack.c.bf16 %v1299_v15, %v1295_v38  ;;  %v1682_v38 = vld [vmem:[%s6664_s3 + $0x1a8] sm:$0xff]  ;;  %v1636_v15 = vld [vmem:[%s6664_s3 + $0x38] sm:$0xff] }
 0x19a   :  { %v5838_v45 = vmax.f32 %v585_v30, %v853_v43  ;;  %v859_v46 = vmax.f32 %v584_v31, %v784_v44  ;;  %v855_v47 = vpop.f32.mrb[5].mxu1  ;;  %v1296_v30 = vld [vmem:[%s6663_s2 + $0x4d8] sm:$0xff]  ;;  %v3453_v14 = vpack.c.bf16 %v1289_v23, %v1285_v22  ;;  %v1305_v43 = vld [vmem:[%s6663_s2 + $0x520] sm:$0xff]  ;;  %v3459_v44 = vpack.c.bf16 %v1306_v39, %v1302_v17  ;;  %v1631_v17 = vld [vmem:[%s6664_s3 + $0x10] sm:$0xff] }
 0x19b   :  { %v861_v48 = vmax.f32 %v586_v36, %v855_v47  ;;  %v1300_v31 = vld [vmem:[%s6663_s2 + $0x4f8] sm:$0xff]  ;;  %v1303_v47 = vld [vmem:[%s6663_s2 + $0x510] sm:$0xff]  ;;  %v3567_v23 = vpack.c.bf16 %v1332_v13, %v1328_v12  ;;  %v1634_v39 = vld [vmem:[%s6664_s3 + $0x28] sm:$0xff] }
 0x19c   :  { %v3551_v36 = vpack.c.bf16 %v1300_v31, %v1296_v30  ;;  %v1336_v30 = vld [vmem:[%s6663_s2 + $0x618] sm:$0xff]  ;;  %v1630_v31 = vld [vmem:[%s6664_s3 + $0x8] sm:$0xff]  ;;  %v1657_v12 = vld [vmem:[%s6664_s3 + $0xe0] sm:$0xff] }
 0x19d   :  { %v1703_v13 = vld [vmem:[%s6664_s3 + $0x250] sm:$0xff] }
 0x1d8   :  { %v1057_v49 = vpop.f32.mrb[6].mxu0 }
 0x1d9   :  { %v1133_v51 = vmax.f32 %v858_v42, %v1057_v49  ;;  %v5843_v52 = vpop.f32.mrb[6].mxu1  ;;  %v1059_v53 = vpop.f32.mrb[7].mxu0  ;;  %v1301_v42 = vld [vmem:[%s6663_s2 + $0x500] sm:$0xff]  ;;  %v1310_v49 = vld [vmem:[%s6663_s2 + $0x548] sm:$0xff] }
 0x1da   :  { %v1135_v19 = vmax.f32 %v5838_v45, %v5843_v52  ;;  %v1134_v57 = vmax.f32 %v859_v46, %v1059_v53  ;;  %v1130_v58 = vpop.f32.mrb[7].mxu1  ;;  %v3555_v46 = vpack.c.bf16 %v1308_v18, %v1304_v40  ;;  %v1316_v53 = vld [vmem:[%s6663_s2 + $0x578] sm:$0xff]  ;;  %v3461_v54 = vpack.c.bf16 %v1305_v43, %v1301_v42  ;;  %v1639_v40 = vld [vmem:[%s6664_s3 + $0x50] sm:$0xff]  ;;  %v1685_v18 = vld [vmem:[%s6664_s3 + $0x1c0] sm:$0xff] }
 0x1db   :  { %v1136_v60 = vmax.f32 %v861_v48, %v1130_v58  ;;  %v1137_v5 = vmax.f32 %v1133_v51, 0.0  ;;  %v1307_v48 = vld [vmem:[%s6663_s2 + $0x530] sm:$0xff]  ;;  %v1312_v51 = vld [vmem:[%s6663_s2 + $0x558] sm:$0xff]  ;;  %v3463_v58 = vpack.c.bf16 %v1314_v50, %v1310_v49  ;;  %v3575_v49 = vpack.c.bf16 %v1639_v40, %v1636_v15  ;;  %v1642_v50 = vld [vmem:[%s6664_s3 + $0x68] sm:$0xff] }
 0x1dc   :  { %v1138_v0 = vmax.f32 %v1134_v57, 0.0  ;;  %v3557_v55 = vpack.c.bf16 %v1307_v48, %v1303_v47  ;;  %v1313_v57 = vld [vmem:[%s6663_s2 + $0x560] sm:$0xff]  ;;  %v3559_v59 = vpack.c.bf16 %v1316_v53, %v1312_v51  ;;  %v1139_v43 = vmax.f32 %v1135_v19, 0.0  ;;  %v1638_v47 = vld [vmem:[%s6664_s3 + $0x48] sm:$0xff]  ;;  %v1640_v52 = vld [vmem:[%s6664_s3 + $0x58] sm:$0xff] }
 0x1dd   :  { %v1140_v20 = vmax.f32 %v1136_v60, 0.0  ;;  %v1311_v60 = vld [vmem:[%s6663_s2 + $0x550] sm:$0xff]  ;;  %v3673_v48 = vpack.c.bf16 %v1634_v39, %v1631_v17  ;;  %v1637_v45 = vld [vmem:[%s6664_s3 + $0x40] sm:$0xff]  ;;  %v1664_v17 = vld [vmem:[%s6664_s3 + $0x118] sm:$0xff] }
 0x1de   :  { %1405 = vmatprep.mubr.f32.mxu0 %v1138_v0  ;;  %1547 = vmatprep.mubr.f32.mxu1 %v1138_v0  ;;  %v1320_v0 = vld [vmem:[%s6663_s2 + $0x598] sm:$0xff]  ;;  %v3561_v3 = vpack.c.bf16 %v1315_v61, %v1311_v60  ;;  %v1645_v19 = vld [vmem:[%s6664_s3 + $0x80] sm:$0xff]  ;;  %v1691_v53 = vld [vmem:[%s6664_s3 + $0x1f0] sm:$0xff] }
 0x1df   :  { %1406 = vmatmul.mubr.f32.vlgmr.msra.gmra.mrb[8].mxu0 %v1137_v5  ;;  %1548 = vmatmul.mubr.f32.vlgmr.msra.gmra.mrb[8].mxu1 %v1137_v5  ;;  %v1321_v5 = vld [vmem:[%s6663_s2 + $0x5a0] sm:$0xff]  ;;  %v1648_v60 = vld [vmem:[%s6664_s3 + $0x98] sm:$0xff]  ;;  %v1715_v40 = vld [vmem:[%s6664_s3 + $0x2b0] sm:$0xff] }
 0x1e0   :  { %3446 = vmatpush1.bf16.msra.mxu0 %v3445_v1  ;;  %3542 = vmatpush1.bf16.msra.mxu1 %v3541_v2  ;;  %v1324_v1 = vld [vmem:[%s6663_s2 + $0x5b8] sm:$0xff]  ;;  %v3465_v2 = vpack.c.bf16 %v1313_v57, %v1309_v56  ;;  %v1641_v56 = vld [vmem:[%s6664_s3 + $0x60] sm:$0xff] }
 0x1e1   :  { %2745 = vmatprep.mubr.msk.f32.mxu0 %vm1337_vm0, %v1140_v20  ;;  %2746 = vmatprep.mubr.msk.f32.mxu1 %vm1337_vm0, %v1140_v20  ;;  %v3563_v7 = vpack.c.bf16 %v1324_v1, %v1320_v0  ;;  %v3469_v20 = vpack.c.bf16 %v1321_v5, %v1317_v4  ;;  %v1644_v57 = vld [vmem:[%s6664_s3 + $0x78] sm:$0xff]  ;;  %v1651_v0 = vld [vmem:[%s6664_s3 + $0xb0] sm:$0xff]  ;;  %v1697_v1 = vld [vmem:[%s6664_s3 + $0x220] sm:$0xff] }
 0x1e2   :  { %3448 = vmatprep.subr.bf16.mxu0 %v3447_v9  ;;  %3544 = vmatprep.subr.bf16.mxu1 %v3543_v10  ;;  %v1323_v9 = vld [vmem:[%s6663_s2 + $0x5b0] sm:$0xff]  ;;  %v1326_v10 = vld [vmem:[%s6663_s2 + $0x5c8] sm:$0xff]  ;;  %v1661_v15 = vld [vmem:[%s6664_s3 + $0x100] sm:$0xff] }
 0x1e3   :  { %v3471_v22 = vpack.c.bf16 %v1330_v11, %v1326_v10  ;;  %v1647_v4 = vld [vmem:[%s6664_s3 + $0x90] sm:$0xff]  ;;  %v1650_v5 = vld [vmem:[%s6664_s3 + $0xa8] sm:$0xff]  ;;  %v1649_v10 = vld [vmem:[%s6664_s3 + $0xa0] sm:$0xff] }
 0x1e4   :  { %3450 = vmatpush1.bf16.msra.mxu0 %v3449_v21  ;;  %3546 = vmatpush1.bf16.msra.mxu1 %v3545_v37  ;;  %v3565_v21 = vpack.c.bf16 %v1323_v9, %v1319_v8  ;;  %v1325_v37 = vld [vmem:[%s6663_s2 + $0x5c0] sm:$0xff]  ;;  %v1654_v8 = vld [vmem:[%s6664_s3 + $0xc8] sm:$0xff]  ;;  %v1652_v11 = vld [vmem:[%s6664_s3 + $0xb8] sm:$0xff] }
 0x1e5   :  { %3452 = vmatprep.subr.bf16.mxu0 %v3451_v24  ;;  %3548 = vmatprep.subr.bf16.mxu1 %v3547_v25  ;;  %v1329_v24 = vld [vmem:[%s6663_s2 + $0x5e0] sm:$0xff]  ;;  %v1327_v25 = vld [vmem:[%s6663_s2 + $0x5d0] sm:$0xff] }
 0x1e6   :  { %v3473_v27 = vpack.c.bf16 %v1329_v24, %v1325_v37  ;;  %v3569_v28 = vpack.c.bf16 %v1331_v26, %v1327_v25  ;;  %v1653_v37 = vld [vmem:[%s6664_s3 + $0xc0] sm:$0xff]  ;;  %v3587_v24 = vpack.c.bf16 %v1657_v12, %v1654_v8  ;;  %v1660_v25 = vld [vmem:[%s6664_s3 + $0xf8] sm:$0xff]  ;;  %v1695_v12 = vld [vmem:[%s6664_s3 + $0x210] sm:$0xff] }
 0x1e7   :  { %v1669_v39 = vld [vmem:[%s6664_s3 + $0x140] sm:$0xff]  ;;  %v1696_v8 = vld [vmem:[%s6664_s3 + $0x218] sm:$0xff] }
 0x1e8   :  { %3454 = vmatpush1.bf16.msra.mxu0 %v3453_v14  ;;  %3550 = vmatpush1.bf16.msra.mxu1 %v3549_v32  ;;  %v1633_v14 = vld [vmem:[%s6664_s3 + $0x20] sm:$0xff] }
 0x1e9   :  { %3456 = vmatprep.subr.bf16.mxu0 %v3455_v35  ;;  %3552 = vmatprep.subr.bf16.mxu1 %v3551_v36  ;;  %v1629_v32 = vld [vmem:[%s6664_s3] sm:$0xff]  ;;  %v1632_v35 = vld [vmem:[%s6664_s3 + $0x18] sm:$0xff]  ;;  %v1679_v36 = vld [vmem:[%s6664_s3 + $0x190] sm:$0xff] }
 0x1ea   :  { %v3671_v42 = vpack.c.bf16 %v1682_v38, %v1679_v36  ;;  %v1666_v36 = vld [vmem:[%s6664_s3 + $0x128] sm:$0xff] }
 0x1ec   :  { %3458 = vmatpush1.bf16.msra.mxu0 %v3457_v41  ;;  %3554 = vmatpush1.bf16.msra.mxu1 %v3553_v16  ;;  %v1688_v41 = vld [vmem:[%s6664_s3 + $0x1d8] sm:$0xff]  ;;  %v3571_v16 = vpack.c.bf16 %v1633_v14, %v1630_v31 }
 0x1ed   :  { %3460 = vmatprep.subr.bf16.mxu0 %v3459_v44  ;;  %3556 = vmatprep.subr.bf16.mxu1 %v3555_v46  ;;  %v3573_v44 = vpack.c.bf16 %v1632_v35, %v1629_v32  ;;  %v1635_v46 = vld [vmem:[%s6664_s3 + $0x30] sm:$0xff]  ;;  %v3675_v51 = vpack.c.bf16 %v1688_v41, %v1685_v18  ;;  %v1712_v31 = vld [vmem:[%s6664_s3 + $0x298] sm:$0xff]  ;;  %v1718_v18 = vld [vmem:[%s6664_s3 + $0x2c8] sm:$0xff] }
 0x1ee   :  { %v1659_v32 = vld [vmem:[%s6664_s3 + $0xf0] sm:$0xff] }
 0x1f0   :  { %3462 = vmatpush1.bf16.msra.mxu0 %v3461_v54  ;;  %3558 = vmatpush1.bf16.msra.mxu1 %v3557_v55  ;;  %v1694_v54 = vld [vmem:[%s6664_s3 + $0x208] sm:$0xff]  ;;  %v3577_v55 = vpack.c.bf16 %v1638_v47, %v1635_v46  ;;  %v3695_v46 = vpack.c.bf16 %v1718_v18, %v1715_v40  ;;  %v1667_v47 = vld [vmem:[%s6664_s3 + $0x130] sm:$0xff]  ;;  %v1724_v40 = vld [vmem:[%s6664_s3 + $0x2f8] sm:$0xff] }
 0x1f1   :  { %3464 = vmatprep.subr.bf16.mxu0 %v3463_v58  ;;  %3560 = vmatprep.subr.bf16.mxu1 %v3559_v59  ;;  %v3677_v58 = vpack.c.bf16 %v1640_v52, %v1637_v45  ;;  %v3579_v59 = vpack.c.bf16 %v1645_v19, %v1642_v50  ;;  %v3679_v61 = vpack.c.bf16 %v1694_v54, %v1691_v53  ;;  %v1675_v50 = vld [vmem:[%s6664_s3 + $0x170] sm:$0xff]  ;;  %v1674_v53 = vld [vmem:[%s6664_s3 + $0x168] sm:$0xff] }
 0x1f2   :  { %v1671_v19 = vld [vmem:[%s6664_s3 + $0x150] sm:$0xff]  ;;  %v1678_v54 = vld [vmem:[%s6664_s3 + $0x188] sm:$0xff] }
 0x1f3   :  { %v1719_v18 = vld [vmem:[%s6664_s3 + $0x2d0] sm:$0xff] }
 0x1f4   :  { %3466 = vmatpush1.bf16.msra.mxu0 %v3465_v2  ;;  %3562 = vmatpush1.bf16.msra.mxu1 %v3561_v3  ;;  %v1700_v2 = vld [vmem:[%s6664_s3 + $0x238] sm:$0xff]  ;;  %v3581_v3 = vpack.c.bf16 %v1644_v57, %v1641_v56  ;;  %v3601_v56 = vpack.c.bf16 %v1674_v53, %v1671_v19  ;;  %v1730_v19 = vld [vmem:[%s6664_s3 + $0x328] sm:$0xff] }
 0x1f5   :  { %3468 = vmatprep.subr.bf16.mxu0 %v3467_v6  ;;  %3564 = vmatprep.subr.bf16.mxu1 %v3563_v7  ;;  %v3681_v6 = vpack.c.bf16 %v1646_v63, %v1643_v62  ;;  %v3583_v7 = vpack.c.bf16 %v1651_v0, %v1648_v60  ;;  %v3683_v9 = vpack.c.bf16 %v1700_v2, %v1697_v1  ;;  %v1684_v60 = vld [vmem:[%s6664_s3 + $0x1b8] sm:$0xff]  ;;  %v1683_v0 = vld [vmem:[%s6664_s3 + $0x1b0] sm:$0xff]  ;;  %v1686_v1 = vld [vmem:[%s6664_s3 + $0x1c8] sm:$0xff] }
 0x1f6   :  { %v1690_v2 = vld [vmem:[%s6664_s3 + $0x1e8] sm:$0xff] }
 0x1f8   :  { %3470 = vmatpush1.bf16.msra.mxu0 %v3469_v20  ;;  %3566 = vmatpush1.bf16.msra.mxu1 %v3565_v21  ;;  %v1706_v20 = vld [vmem:[%s6664_s3 + $0x268] sm:$0xff]  ;;  %v3585_v21 = vpack.c.bf16 %v1650_v5, %v1647_v4  ;;  %v3609_v4 = vpack.c.bf16 %v1686_v1, %v1683_v0  ;;  %v1733_v1 = vld [vmem:[%s6664_s3 + $0x340] sm:$0xff] }
 0x1f9   :  { %3472 = vmatprep.subr.bf16.mxu0 %v3471_v22  ;;  %3568 = vmatprep.subr.bf16.mxu1 %v3567_v23  ;;  %v1656_v22 = vld [vmem:[%s6664_s3 + $0xd8] sm:$0xff]  ;;  %v3685_v23 = vpack.c.bf16 %v1652_v11, %v1649_v10  ;;  %v3687_v26 = vpack.c.bf16 %v1706_v20, %v1703_v13  ;;  %v1698_v13 = vld [vmem:[%s6664_s3 + $0x228] sm:$0xff] }
 0x1fa   :  { %v3589_v14 = vpack.c.bf16 %v1656_v22, %v1653_v37  ;;  %v1702_v20 = vld [vmem:[%s6664_s3 + $0x248] sm:$0xff]  ;;  %v3617_v37 = vpack.c.bf16 %v1698_v13, %v1695_v12  ;;  %v1739_v12 = vld [vmem:[%s6664_s3 + $0x370] sm:$0xff] }
 0x1fb   :  { %v1734_v0 = vld [vmem:[%s6664_s3 + $0x348] sm:$0xff] }
 0x1fc   :  { %3474 = vmatpush1.bf16.msra.mxu0 %v3473_v27  ;;  %3570 = vmatpush1.bf16.msra.mxu1 %v3569_v28  ;;  %v1655_v27 = vld [vmem:[%s6664_s3 + $0xd0] sm:$0xff]  ;;  %v1658_v28 = vld [vmem:[%s6664_s3 + $0xe8] sm:$0xff] }
 0x1fd   :  { %1444 = vmatprep.subr.mxu0 %v1334_v29  ;;  %1586 = vmatprep.subr.mxu1 %v1336_v30  ;;  %v1663_v29 = vld [vmem:[%s6664_s3 + $0x110] sm:$0xff]  ;;  %v1709_v30 = vld [vmem:[%s6664_s3 + $0x280] sm:$0xff]  ;;  %v1742_v13 = vld [vmem:[%s6664_s3 + $0x388] sm:$0xff] }
 0x1fe   :  { %v3591_v35 = vpack.c.bf16 %v1663_v29, %v1660_v25  ;;  %v3691_v38 = vpack.c.bf16 %v1712_v31, %v1709_v30  ;;  %v1708_v25 = vld [vmem:[%s6664_s3 + $0x278] sm:$0xff]  ;;  %v1707_v29 = vld [vmem:[%s6664_s3 + $0x270] sm:$0xff]  ;;  %v1710_v30 = vld [vmem:[%s6664_s3 + $0x288] sm:$0xff] }
 0x1ff   :  { %v1714_v31 = vld [vmem:[%s6664_s3 + $0x2a8] sm:$0xff] }
 0x200   :  { %1445 = vmatpush1.msra.mxu0 %v1333_v33  ;;  %1587 = vmatpush1.msra.mxu1 %v1335_v34  ;;  %v1662_v33 = vld [vmem:[%s6664_s3 + $0x108] sm:$0xff]  ;;  %v3689_v34 = vpack.c.bf16 %v1658_v28, %v1655_v27 }
 0x201   :  { %1477 = vmatmul.mubr.f32.vlgmr.msra.gmra.mrb[8].mxu0 %v1139_v43  ;;  %1619 = vmatmul.mubr.f32.vlgmr.msra.gmra.mrb[8].mxu1 %v1139_v43  ;;  %v3593_v41 = vpack.c.bf16 %v1662_v33, %v1659_v32  ;;  %v3595_v43 = vpack.c.bf16 %v1669_v39, %v1666_v36  ;;  %v3625_v32 = vpack.c.bf16 %v1710_v30, %v1707_v29  ;;  %v1753_v29 = vld [vmem:[%s6664_s3 + $0x3e0] sm:$0xff] }
 0x202   :  { %3572 = vmatprep.subr.bf16.mxu0 %v3571_v16  ;;  %3672 = vmatprep.subr.bf16.mxu1 %v3671_v42  ;;  %v1665_v16 = vld [vmem:[%s6664_s3 + $0x120] sm:$0xff]  ;;  %v3693_v42 = vpack.c.bf16 %v1664_v17, %v1661_v15  ;;  %v1723_v15 = vld [vmem:[%s6664_s3 + $0x2f0] sm:$0xff] }
 0x203   :  { %3574 = vmatpush1.bf16.msra.mxu0 %v3573_v44  ;;  %3674 = vmatpush3.bf16.msra.mxu1 %v3673_v48  ;;  %v1668_v44 = vld [vmem:[%s6664_s3 + $0x138] sm:$0xff]  ;;  %v1670_v48 = vld [vmem:[%s6664_s3 + $0x148] sm:$0xff]  ;;  %v1721_v17 = vld [vmem:[%s6664_s3 + $0x2e0] sm:$0xff] }
 0x204   :  { %3576 = vmatprep.subr.bf16.mxu0 %v3575_v49  ;;  %3676 = vmatprep.subr.bf16.mxu1 %v3675_v51  ;;  %v1672_v49 = vld [vmem:[%s6664_s3 + $0x158] sm:$0xff]  ;;  %v3597_v51 = vpack.c.bf16 %v1668_v44, %v1665_v16  ;;  %v3697_v45 = vpack.c.bf16 %v1670_v48, %v1667_v47  ;;  %v3699_v16 = vpack.c.bf16 %v1724_v40, %v1721_v17  ;;  %v1726_v47 = vld [vmem:[%s6664_s3 + $0x308] sm:$0xff]  ;;  %v1729_v48 = vld [vmem:[%s6664_s3 + $0x320] sm:$0xff] }
 0x205   :  { %v3599_v52 = vpack.c.bf16 %v1675_v50, %v1672_v49  ;;  %v1676_v44 = vld [vmem:[%s6664_s3 + $0x178] sm:$0xff]  ;;  %v3635_v49 = vpack.c.bf16 %v1729_v48, %v1726_v47  ;;  %v3815_v50 = vmov 0.0|0.0   ;;  %v1761_v47 = vld [vmem:[%s6664_s3 + $0x420] sm:$0xff] }
 0x207   :  { %3578 = vmatpush1.bf16.msra.mxu0 %v3577_v55  ;;  %3678 = vmatpush3.bf16.msra.mxu1 %v3677_v58  ;;  %v1681_v55 = vld [vmem:[%s6664_s3 + $0x1a0] sm:$0xff] }
 0x208   :  { %3580 = vmatprep.subr.bf16.mxu0 %v3579_v59  ;;  %3680 = vmatprep.subr.bf16.mxu1 %v3679_v61  ;;  %v3603_v57 = vpack.c.bf16 %v1681_v55, %v1678_v54  ;;  %v1677_v58 = vld [vmem:[%s6664_s3 + $0x180] sm:$0xff]  ;;  %v1680_v59 = vld [vmem:[%s6664_s3 + $0x198] sm:$0xff]  ;;  %v1687_v61 = vld [vmem:[%s6664_s3 + $0x1d0] sm:$0xff] }
 0x209   :  { %v3605_v62 = vpack.c.bf16 %v1680_v59, %v1677_v58  ;;  %v3607_v63 = vpack.c.bf16 %v1687_v61, %v1684_v60  ;;  %v1735_v58 = vld [vmem:[%s6664_s3 + $0x350] sm:$0xff] }
 0x20b   :  { %3582 = vmatpush1.bf16.msra.mxu0 %v3581_v3  ;;  %3682 = vmatpush3.bf16.msra.mxu1 %v3681_v6  ;;  %v1693_v3 = vld [vmem:[%s6664_s3 + $0x200] sm:$0xff] }
 0x20c   :  { %3584 = vmatprep.subr.bf16.mxu0 %v3583_v7  ;;  %3684 = vmatprep.subr.bf16.mxu1 %v3683_v9  ;;  %v3611_v5 = vpack.c.bf16 %v1693_v3, %v1690_v2  ;;  %v1689_v6 = vld [vmem:[%s6664_s3 + $0x1e0] sm:$0xff]  ;;  %v1692_v7 = vld [vmem:[%s6664_s3 + $0x1f8] sm:$0xff]  ;;  %v1699_v9 = vld [vmem:[%s6664_s3 + $0x230] sm:$0xff] }
 0x20d   :  { %v3613_v10 = vpack.c.bf16 %v1692_v7, %v1689_v6  ;;  %v3615_v11 = vpack.c.bf16 %v1699_v9, %v1696_v8  ;;  %v1736_v2 = vld [vmem:[%s6664_s3 + $0x358] sm:$0xff]  ;;  %v1737_v9 = vld [vmem:[%s6664_s3 + $0x360] sm:$0xff] }
 0x20e   :  { %v3707_v8 = vpack.c.bf16 %v1736_v2, %v1733_v1  ;;  %v1773_v1 = vld [vmem:[%s6664_s3 + $0x480] sm:$0xff] }
 0x20f   :  { %3586 = vmatpush1.bf16.msra.mxu0 %v3585_v21  ;;  %3686 = vmatpush3.bf16.msra.mxu1 %v3685_v23  ;;  %v1705_v21 = vld [vmem:[%s6664_s3 + $0x260] sm:$0xff] }
 0x210   :  { %3588 = vmatprep.subr.bf16.mxu0 %v3587_v24  ;;  %3688 = vmatprep.subr.bf16.mxu1 %v3687_v26  ;;  %v3619_v22 = vpack.c.bf16 %v1705_v21, %v1702_v20  ;;  %v1701_v23 = vld [vmem:[%s6664_s3 + $0x240] sm:$0xff]  ;;  %v1704_v24 = vld [vmem:[%s6664_s3 + $0x258] sm:$0xff]  ;;  %v1711_v26 = vld [vmem:[%s6664_s3 + $0x290] sm:$0xff] }
 0x211   :  { %v3621_v27 = vpack.c.bf16 %v1704_v24, %v1701_v23  ;;  %v3623_v28 = vpack.c.bf16 %v1711_v26, %v1708_v25  ;;  %v1744_v20 = vld [vmem:[%s6664_s3 + $0x398] sm:$0xff]  ;;  %v1747_v21 = vld [vmem:[%s6664_s3 + $0x3b0] sm:$0xff]  ;;  %v1746_v25 = vld [vmem:[%s6664_s3 + $0x3a8] sm:$0xff] }
 0x212   :  { %v1743_v23 = vld [vmem:[%s6664_s3 + $0x390] sm:$0xff]  ;;  %v3647_v24 = vpack.c.bf16 %v1747_v21, %v1744_v20  ;;  %v1745_v26 = vld [vmem:[%s6664_s3 + $0x3a0] sm:$0xff]  ;;  %v2087_v20 = vld [vmem:[%s6665_s4 + $0x98] sm:$0xff] }
 0x213   :  { %3590 = vmatpush1.bf16.msra.mxu0 %v3589_v14  ;;  %3690 = vmatpush3.bf16.msra.mxu1 %v3689_v34  ;;  %v1717_v14 = vld [vmem:[%s6664_s3 + $0x2c0] sm:$0xff]  ;;  %v3649_v30 = vpack.c.bf16 %v1746_v25, %v1743_v23  ;;  %v2071_v23 = vld [vmem:[%s6665_s4 + $0x18] sm:$0xff]  ;;  %v2089_v25 = vld [vmem:[%s6665_s4 + $0xa8] sm:$0xff] }
 0x214   :  { %3592 = vmatprep.subr.bf16.mxu0 %v3591_v35  ;;  %3692 = vmatprep.subr.bf16.mxu1 %v3691_v38  ;;  %v3627_v33 = vpack.c.bf16 %v1717_v14, %v1714_v31  ;;  %v1713_v34 = vld [vmem:[%s6664_s3 + $0x2a0] sm:$0xff]  ;;  %v1716_v35 = vld [vmem:[%s6664_s3 + $0x2b8] sm:$0xff] }
 0x215   :  { %v3629_v36 = vpack.c.bf16 %v1716_v35, %v1713_v34  ;;  %v1720_v38 = vld [vmem:[%s6664_s3 + $0x2d8] sm:$0xff]  ;;  %v1749_v14 = vld [vmem:[%s6664_s3 + $0x3c0] sm:$0xff]  ;;  %v1751_v34 = vld [vmem:[%s6664_s3 + $0x3d0] sm:$0xff] }
 0x216   :  { %v3631_v39 = vpack.c.bf16 %v1723_v15, %v1720_v38  ;;  %v1754_v35 = vld [vmem:[%s6664_s3 + $0x3e8] sm:$0xff]  ;;  %v1759_v38 = vld [vmem:[%s6664_s3 + $0x410] sm:$0xff] }
 0x217   :  { %3594 = vmatpush1.bf16.msra.mxu0 %v3593_v41  ;;  %3694 = vmatpush3.bf16.msra.mxu1 %v3693_v42  ;;  %v1722_v41 = vld [vmem:[%s6664_s3 + $0x2e8] sm:$0xff]  ;;  %v3716_v17 = vpack.c.bf16 %v1754_v35, %v1751_v34  ;;  %v2075_v34 = vld [vmem:[%s6665_s4 + $0x38] sm:$0xff]  ;;  %v2100_v35 = vld [vmem:[%s6665_s4 + $0x100] sm:$0xff] }
 0x218   :  { %3596 = vmatprep.subr.bf16.mxu0 %v3595_v43  ;;  %3696 = vmatprep.subr.bf16.mxu1 %v3695_v46  ;;  %v3633_v42 = vpack.c.bf16 %v1722_v41, %v1719_v18  ;;  %v1673_v43 = vld [vmem:[%s6664_s3 + $0x160] sm:$0xff]  ;;  %v1758_v18 = vld [vmem:[%s6664_s3 + $0x408] sm:$0xff] }
 0x219   :  { %v3701_v46 = vpack.c.bf16 %v1676_v44, %v1673_v43  ;;  %v1757_v41 = vld [vmem:[%s6664_s3 + $0x400] sm:$0xff] }
 0x21a   :  { %v1765_v43 = vld [vmem:[%s6664_s3 + $0x440] sm:$0xff] }
 0x21b   :  { %3598 = vmatpush1.bf16.msra.mxu0 %v3597_v51  ;;  %3698 = vmatpush3.bf16.msra.mxu1 %v3697_v45  ;;  %v1725_v51 = vld [vmem:[%s6664_s3 + $0x300] sm:$0xff]  ;;  %v1728_v45 = vld [vmem:[%s6664_s3 + $0x318] sm:$0xff] }
 0x21c   :  { %3600 = vmatprep.subr.bf16.mxu0 %v3599_v52  ;;  %3700 = vmatprep.subr.bf16.mxu1 %v3699_v16  ;;  %v1727_v52 = vld [vmem:[%s6664_s3 + $0x310] sm:$0xff]  ;;  %v3637_v60 = vpack.c.bf16 %v1728_v45, %v1725_v51  ;;  %v1760_v16 = vld [vmem:[%s6664_s3 + $0x418] sm:$0xff]  ;;  %v1766_v45 = vld [vmem:[%s6664_s3 + $0x448] sm:$0xff] }
 0x21d   :  { %v3704_v61 = vpack.c.bf16 %v1730_v19, %v1727_v52  ;;  %v1763_v51 = vld [vmem:[%s6664_s3 + $0x430] sm:$0xff]  ;;  %v1768_v52 = vld [vmem:[%s6664_s3 + $0x458] sm:$0xff] }
 0x21e   :  { %v1771_v19 = vld [vmem:[%s6664_s3 + $0x470] sm:$0xff] }
 0x21f   :  { %3602 = vmatpush1.bf16.msra.mxu0 %v3601_v56  ;;  %3702 = vmatpush3.bf16.msra.mxu1 %v3701_v46  ;;  %v3719_v46 = vpack.c.bf16 %v1760_v16, %v1757_v41  ;;  %v2077_v41 = vld [vmem:[%s6665_s4 + $0x48] sm:$0xff]  ;;  %v2094_v16 = vld [vmem:[%s6665_s4 + $0xd0] sm:$0xff] }
 0x220   :  { %3604 = vmatprep.subr.bf16.mxu0 %v3603_v57  ;;  %3703 = vmatprep.subr.bf16.mxu1 %v3815_v50  ;;  %v1732_v57 = vld [vmem:[%s6664_s3 + $0x338] sm:$0xff] }
 0x221   :  { %v3639_v3 = vpack.c.bf16 %v1735_v58, %v1732_v57  ;;  %v3663_v57 = vpack.c.bf16 %v1771_v19, %v1768_v52  ;;  %v1770_v58 = vld [vmem:[%s6664_s3 + $0x468] sm:$0xff]  ;;  %v2080_v52 = vld [vmem:[%s6665_s4 + $0x60] sm:$0xff] }
 0x222   :  { %v2081_v19 = vld [vmem:[%s6665_s4 + $0x68] sm:$0xff] }
 0x223   :  { %3606 = vmatpush1.bf16.msra.mxu0 %v3605_v62  ;;  %v1731_v62 = vld [vmem:[%s6664_s3 + $0x330] sm:$0xff] }
 0x224   :  { %3608 = vmatprep.subr.bf16.mxu0 %v3607_v63  ;;  %v3641_v7 = vpack.c.bf16 %v1734_v0, %v1731_v62  ;;  %v1777_v62 = vld [vmem:[%s6664_s3 + $0x4a0] sm:$0xff] }
 0x227   :  { %3610 = vmatpush1.bf16.msra.mxu0 %v3609_v4  ;;  %v1738_v4 = vld [vmem:[%s6664_s3 + $0x368] sm:$0xff] }
 0x228   :  { %3612 = vmatprep.subr.bf16.mxu0 %v3611_v5  ;;  %v1741_v5 = vld [vmem:[%s6664_s3 + $0x380] sm:$0xff] }
 0x22b   :  { %3614 = vmatpush1.bf16.msra.mxu0 %v3613_v10  ;;  %v3643_v10 = vpack.c.bf16 %v1741_v5, %v1738_v4  ;;  %v1775_v4 = vld [vmem:[%s6664_s3 + $0x490] sm:$0xff]  ;;  %v1778_v5 = vld [vmem:[%s6664_s3 + $0x4a8] sm:$0xff] }
 0x22c   :  { %3616 = vmatprep.subr.bf16.mxu0 %v3615_v11  ;;  %v1740_v11 = vld [vmem:[%s6664_s3 + $0x378] sm:$0xff] }
 0x22f   :  { %3618 = vmatpush1.bf16.msra.mxu0 %v3617_v37  ;;  %v3645_v37 = vpack.c.bf16 %v1740_v11, %v1737_v9  ;;  %v2084_v9 = vld [vmem:[%s6665_s4 + $0x80] sm:$0xff] }
 0x230   :  { %3620 = vmatprep.subr.bf16.mxu0 %v3619_v22  ;;  %v3710_v22 = vpack.c.bf16 %v1742_v13, %v1739_v12  ;;  %v2068_v11 = vld [vmem:[%s6665_s4] sm:$0xff]  ;;  %v2086_v13 = vld [vmem:[%s6665_s4 + $0x90] sm:$0xff] }
 0x233   :  { %3622 = vmatpush1.bf16.msra.mxu0 %v3621_v27  ;;  %v1748_v27 = vld [vmem:[%s6664_s3 + $0x3b8] sm:$0xff] }
 0x234   :  { %3624 = vmatprep.subr.bf16.mxu0 %v3623_v28  ;;  %v1750_v28 = vld [vmem:[%s6664_s3 + $0x3c8] sm:$0xff]  ;;  %v3713_v31 = vpack.c.bf16 %v1748_v27, %v1745_v26 }
 0x237   :  { %3626 = vmatpush1.bf16.msra.mxu0 %v3625_v32  ;;  %v3651_v32 = vpack.c.bf16 %v1753_v29, %v1750_v28  ;;  %v2072_v28 = vld [vmem:[%s6665_s4 + $0x20] sm:$0xff]  ;;  %v2073_v29 = vld [vmem:[%s6665_s4 + $0x28] sm:$0xff] }
 0x238   :  { %3628 = vmatprep.subr.bf16.mxu0 %v3627_v33  ;;  %v1752_v33 = vld [vmem:[%s6664_s3 + $0x3d8] sm:$0xff] }
 0x239   :  { %v3653_v15 = vpack.c.bf16 %v1752_v33, %v1749_v14  ;;  %v3740_v14 = vpack.c.bf16 %v2073_v29, %v2072_v28 }
 0x23b   :  { %3630 = vmatpush1.bf16.msra.mxu0 %v3629_v36  ;;  %v1756_v36 = vld [vmem:[%s6664_s3 + $0x3f8] sm:$0xff] }
 0x23c   :  { %3632 = vmatprep.subr.bf16.mxu0 %v3631_v39  ;;  %v1755_v39 = vld [vmem:[%s6664_s3 + $0x3f0] sm:$0xff]  ;;  %v3655_v40 = vpack.c.bf16 %v1759_v38, %v1756_v36  ;;  %v2101_v36 = vld [vmem:[%s6665_s4 + $0x108] sm:$0xff]  ;;  %v2092_v38 = vld [vmem:[%s6665_s4 + $0xc0] sm:$0xff] }
 0x23d   :  { %v3657_v44 = vpack.c.bf16 %v1758_v18, %v1755_v39  ;;  %v2076_v18 = vld [vmem:[%s6665_s4 + $0x40] sm:$0xff] }
 0x23f   :  { %3634 = vmatpush1.bf16.msra.mxu0 %v3633_v42  ;;  %v1762_v42 = vld [vmem:[%s6664_s3 + $0x428] sm:$0xff] }
 0x240   :  { %3636 = vmatprep.subr.bf16.mxu0 %v3635_v49  ;;  %v3659_v48 = vpack.c.bf16 %v1765_v43, %v1762_v42  ;;  %v1764_v49 = vld [vmem:[%s6664_s3 + $0x438] sm:$0xff]  ;;  %v3748_v43 = vpack.c.bf16 %v2077_v41, %v2076_v18 }
 0x241   :  { %v2095_v42 = vld [vmem:[%s6665_s4 + $0xd8] sm:$0xff] }
 0x2d4   :  { %v1478_v53 = vpop.f32.mrb[8].mxu0  ;;  %v6348_v54 = vpop.f32.mrb[8].mxu1 }
 0x2d5   :  { %v1480_v55 = vpop.f32.mrb[9].mxu0  ;;  %v1622_v56 = vpop.f32.mrb[9].mxu1  ;;  %v1625_v63 = vmax.f32 %v1478_v53, 0.0  ;;  %v3661_v53 = vpack.c.bf16 %v1764_v49, %v1761_v47  ;;  %v2079_v47 = vld [vmem:[%s6665_s4 + $0x58] sm:$0xff]  ;;  %v2097_v49 = vld [vmem:[%s6665_s4 + $0xe8] sm:$0xff] }
 0x2d6   :  { %v1626_v59 = vmax.f32 %v1480_v55, 0.0  ;;  %v1628_v6 = vmax.f32 %v1622_v56, 0.0  ;;  %v3722_v55 = vpack.c.bf16 %v1766_v45, %v1763_v51  ;;  %v1767_v56 = vld [vmem:[%s6664_s3 + $0x450] sm:$0xff] }
 0x2d8   :  { %1847 = vmatprep.mubr.f32.mxu0 %v1626_v59  ;;  %1989 = vmatprep.mubr.f32.mxu1 %v1626_v59  ;;  %v1769_v59 = vld [vmem:[%s6664_s3 + $0x460] sm:$0xff] }
 0x2d9   :  { %1848 = vmatmul.mubr.f32.vlgmr.msra.gmra.mrb[10].mxu0 %v1625_v63  ;;  %1990 = vmatmul.mubr.f32.vlgmr.msra.gmra.mrb[10].mxu1 %v1625_v63  ;;  %v3665_v63 = vpack.c.bf16 %v1770_v58, %v1767_v56  ;;  %v2099_v56 = vld [vmem:[%s6665_s4 + $0xf8] sm:$0xff]  ;;  %v2082_v58 = vld [vmem:[%s6665_s4 + $0x70] sm:$0xff] }
 0x2da   :  { %3638 = vmatpush1.bf16.msra.mxu0 %v3637_v60  ;;  %3705 = vmatpush1.bf16.msra.mxu1 %v3704_v61  ;;  %v1772_v60 = vld [vmem:[%s6664_s3 + $0x478] sm:$0xff]  ;;  %v1774_v61 = vld [vmem:[%s6664_s3 + $0x488] sm:$0xff] }
 0x2db   :  { %2747 = vmatprep.mubr.msk.f32.mxu0 %vm1779_vm1, %v1628_v6  ;;  %2748 = vmatprep.mubr.msk.f32.mxu1 %vm1779_vm1, %v1628_v6  ;;  %v3725_v0 = vpack.c.bf16 %v1772_v60, %v1769_v59  ;;  %v3667_v2 = vpack.c.bf16 %v1777_v62, %v1774_v61  ;;  %v2083_v59 = vld [vmem:[%s6665_s4 + $0x78] sm:$0xff]  ;;  %v2102_v60 = vld [vmem:[%s6665_s4 + $0x110] sm:$0xff] }
 0x2dc   :  { %3640 = vmatprep.subr.bf16.mxu0 %v3639_v3  ;;  %3706 = vmatprep.subr.bf16.mxu1 %v3815_v50  ;;  %v1776_v3 = vld [vmem:[%s6664_s3 + $0x498] sm:$0xff]  ;;  %v3760_v61 = vpack.c.bf16 %v2083_v59, %v2082_v58 }
 0x2dd   :  { %v3669_v6 = vpack.c.bf16 %v1776_v3, %v1773_v1  ;;  %v2103_v62 = vld [vmem:[%s6665_s4 + $0x118] sm:$0xff] }
 0x2de   :  { %3642 = vmatpush1.bf16.msra.mxu0 %v3641_v7  ;;  %3708 = vmatpush1.bf16.msra.mxu1 %v3707_v8  ;;  %v3728_v7 = vpack.c.bf16 %v1778_v5, %v1775_v4  ;;  %v1627_v8 = vmax.f32 %v6348_v54, 0.0  ;;  %v2069_v54 = vld [vmem:[%s6665_s4 + $0x8] sm:$0xff]  ;;  %v2256_v4 = vld [vmem:[%s6667_s6] sm:$0xff] }
 0x2df   :  { %3644 = vmatprep.subr.bf16.mxu0 %v3643_v10  ;;  %3709 = vmatprep.subr.bf16.mxu1 %v3815_v50  ;;  %v2085_v10 = vld [vmem:[%s6665_s4 + $0x88] sm:$0xff]  ;;  %v3732_v21 = vpack.c.bf16 %v2069_v54, %v2068_v11 }
 0x2e0   :  { %v3730_v12 = vpack.c.bf16 %v2085_v10, %v2084_v9  ;;  %v2257_v5 = vld [vmem:[%s6667_s6 + $0x8] sm:$0xff] }
 0x2e2   :  { %3646 = vmatpush1.bf16.msra.mxu0 %v3645_v37  ;;  %3711 = vmatpush1.bf16.msra.mxu1 %v3710_v22  ;;  %v3734_v37 = vpack.c.bf16 %v2087_v20, %v2086_v13  ;;  %v2070_v22 = vld [vmem:[%s6665_s4 + $0x10] sm:$0xff] }
 0x2e3   :  { %3648 = vmatprep.subr.bf16.mxu0 %v3647_v24  ;;  %3712 = vmatprep.subr.bf16.mxu1 %v3815_v50  ;;  %v2088_v24 = vld [vmem:[%s6665_s4 + $0xa0] sm:$0xff]  ;;  %v3736_v26 = vpack.c.bf16 %v2071_v23, %v2070_v22  ;;  %v2258_v20 = vld [vmem:[%s6667_s6 + $0x10] sm:$0xff]  ;;  %v2261_v23 = vld [vmem:[%s6667_s6 + $0x28] sm:$0xff] }
 0x2e4   :  { %v3738_v27 = vpack.c.bf16 %v2089_v25, %v2088_v24  ;;  %v2260_v22 = vld [vmem:[%s6667_s6 + $0x20] sm:$0xff]  ;;  %v2262_v25 = vld [vmem:[%s6667_s6 + $0x30] sm:$0xff] }
 0x2e5   :  { %v3775_v24 = vpack.c.bf16 %v2261_v23, %v2260_v22 }
 0x2e6   :  { %3650 = vmatpush1.bf16.msra.mxu0 %v3649_v30  ;;  %3714 = vmatpush1.bf16.msra.mxu1 %v3713_v31  ;;  %v2090_v30 = vld [vmem:[%s6665_s4 + $0xb0] sm:$0xff]  ;;  %v2091_v31 = vld [vmem:[%s6665_s4 + $0xb8] sm:$0xff] }
 0x2e7   :  { %3652 = vmatprep.subr.bf16.mxu0 %v3651_v32  ;;  %3715 = vmatprep.subr.bf16.mxu1 %v3815_v50  ;;  %v2074_v32 = vld [vmem:[%s6665_s4 + $0x30] sm:$0xff]  ;;  %v3742_v33 = vpack.c.bf16 %v2091_v31, %v2090_v30  ;;  %v2749_v30 = vld [vmem:[%s6666_s5] ss:$0 sm:$0xff] }
 0x2e8   :  { %v3744_v39 = vpack.c.bf16 %v2075_v34, %v2074_v32 }
 0x2ea   :  { %3654 = vmatpush1.bf16.msra.mxu0 %v3653_v15  ;;  %3717 = vmatpush1.bf16.msra.mxu1 %v3716_v17  ;;  %v2093_v15 = vld [vmem:[%s6665_s4 + $0xc8] sm:$0xff]  ;;  %v3763_v17 = vpack.c.bf16 %v2101_v36, %v2100_v35  ;;  %v2751_v35 = vld [vmem:[%s6668_s7] ss:$0 sm:$0xff] }
 0x2eb   :  { %3656 = vmatprep.subr.bf16.mxu0 %v3655_v40  ;;  %3718 = vmatprep.subr.bf16.mxu1 %v3815_v50  ;;  %v3746_v40 = vpack.c.bf16 %v2093_v15, %v2092_v38 }
 0x2ee   :  { %3658 = vmatpush1.bf16.msra.mxu0 %v3657_v44  ;;  %3720 = vmatpush1.bf16.msra.mxu1 %v3719_v46  ;;  %v3750_v44 = vpack.c.bf16 %v2095_v42, %v2094_v16  ;;  %v2078_v46 = vld [vmem:[%s6665_s4 + $0x50] sm:$0xff] }
 0x2ef   :  { %3660 = vmatprep.subr.bf16.mxu0 %v3659_v48  ;;  %3721 = vmatprep.subr.bf16.mxu1 %v3815_v50  ;;  %v2096_v48 = vld [vmem:[%s6665_s4 + $0xe0] sm:$0xff]  ;;  %v3752_v51 = vpack.c.bf16 %v2079_v47, %v2078_v46 }
 0x2f0   :  { %v3754_v45 = vpack.c.bf16 %v2097_v49, %v2096_v48 }
 0x2f2   :  { %3662 = vmatpush1.bf16.msra.mxu0 %v3661_v53  ;;  %3723 = vmatpush1.bf16.msra.mxu1 %v3722_v55  ;;  %v3756_v53 = vpack.c.bf16 %v2081_v19, %v2080_v52  ;;  %v2098_v55 = vld [vmem:[%s6665_s4 + $0xf0] sm:$0xff] }
 0x2f3   :  { %3664 = vmatprep.subr.bf16.mxu0 %v3663_v57  ;;  %3724 = vmatprep.subr.bf16.mxu1 %v3815_v50  ;;  %v3758_v57 = vpack.c.bf16 %v2099_v56, %v2098_v55 }
 0x2f6   :  { %3666 = vmatpush1.bf16.msra.mxu0 %v3665_v63  ;;  %3726 = vmatpush1.bf16.msra.mxu1 %v3725_v0  ;;  %v3766_v63 = vpack.c.bf16 %v2103_v62, %v2102_v60  ;;  %v3817_v0 = vmov 0.0  }
 0x2f7   :  { %3668 = vmatprep.subr.bf16.mxu0 %v3667_v2  ;;  %3727 = vmatprep.subr.bf16.mxu1 %v3815_v50 }
 0x2fa   :  { %3670 = vmatpush1.bf16.msra.mxu0 %v3669_v6  ;;  %3729 = vmatpush1.bf16.msra.mxu1 %v3728_v7 }
 0x2fb   :  { %3762 = vmatprep.subr.bf16.mxu0 %v3815_v50  ;;  %3731 = vmatprep.subr.bf16.mxu1 %v3730_v12  ;;  %v3769_v12 = vpack.c.bf16 %v2257_v5, %v2256_v4 }
 0x2fd   :  { %1919 = vmatmul.mubr.f32.vlgmr.msra.gmra.mrb[10].mxu0 %v1627_v8  ;;  %2060 = vmatmul.mubr.f32.vlgmr.msra.gmra.mrb[12].mxu1 %v1627_v8 }
 0x2fe   :  { %3733 = vmatpush3.bf16.msra.mxu1 %v3732_v21  ;;  %3764 = vmatpush3.bf16.msra.mxu0 %v3763_v17  ;;  %v2259_v21 = vld [vmem:[%s6667_s6 + $0x18] sm:$0xff] }
 0x2ff   :  { %3735 = vmatprep.subr.bf16.mxu1 %v3734_v37  ;;  %3765 = vmatprep.subr.bf16.mxu0 %v3815_v50  ;;  %v3772_v37 = vpack.c.bf16 %v2259_v21, %v2258_v20 }
 0x300   :  { %2845 = vmatprep.mubr.msk.f32.mxu0 %vm3816_vm2, %v3817_v0 }
 0x302   :  { %3737 = vmatpush3.bf16.msra.mxu1 %v3736_v26  ;;  %3767 = vmatpush3.bf16.msra.mxu0 %v3766_v63  ;;  %v2263_v26 = vld [vmem:[%s6667_s6 + $0x38] sm:$0xff]  ;;  %s3818_s6 = smov [#allocation2]  }
 0x303   :  { %3739 = vmatprep.subr.bf16.mxu1 %v3738_v27  ;;  %v3778_v27 = vpack.c.bf16 %v2263_v26, %v2262_v25  ;;  %s2352_s29 = sshll.u32 %s3818_s6, 4  ;;  %s2353_s29 = int_to_ptr.vmem [resolvable:$true] %s2352_s29 }
 0x304   :  { %s3791_s5 = scalar_lea.vmem %s2353_s29, 32  ;;  %p3796_p1 = scmp.lt.s32.totalorder %s2353_s29, %s2353_s29 }
 0x305   :  { %p3792_p0 = scmp.ne.s32.totalorder %s2353_s29, %s3791_s5  ;;  %p3797_p2 = scmp.lt.s32.totalorder %s3791_s5, %s3791_s5 }
 0x306   :  { %3741 = vmatpush3.bf16.msra.mxu1 %v3740_v14 }
 0x307   :  { %3743 = vmatprep.subr.bf16.mxu1 %v3742_v33  ;;  %p3798_p3 = por %p3797_p2, %p3796_p1 }
 0x309   :  { %p3799_p4 = pnand %p3798_p3, %p3792_p0 }
 0x30a   :  { %3745 = vmatpush3.bf16.msra.mxu1 %v3744_v39 }
 0x30b   :  { %3747 = vmatprep.subr.bf16.mxu1 %v3746_v40 }
 0x30e   :  { %3749 = vmatpush3.bf16.msra.mxu1 %v3748_v43 }
 0x30f   :  { %3751 = vmatprep.subr.bf16.mxu1 %v3750_v44 }
 0x312   :  { %3753 = vmatpush3.bf16.msra.mxu1 %v3752_v51 }
 0x313   :  { %3755 = vmatprep.subr.bf16.mxu1 %v3754_v45 }
 0x316   :  { %3757 = vmatpush3.bf16.msra.mxu1 %v3756_v53 }
 0x317   :  { %3759 = vmatprep.subr.bf16.mxu1 %v3758_v57 }
 0x31a   :  { %3761 = vmatpush3.bf16.msra.mxu1 %v3760_v61 }
 0x31b   :  { %3768 = vmatprep.subr.bf16.mxu1 %v3815_v50 }
 0x3ac   :  { %v2785_v1 = vpop.f32.mrb[10].mxu1 }
 0x3ad   :  { %v2786_v2 = vpop.f32.mrb[11].mxu1 }
 0x3ae   :  { %v2787_v3 = vadd.f32 %v2786_v2, %v2785_v1 }
 0x3d0   :  { %v1920_v6 = vpop.f32.mrb[10].mxu0  ;;  %v2061_v7 = vpop.f32.mrb[12].mxu1 }
 0x3d1   :  { %v2062_v8 = vadd.f32 %v2787_v3, %v2061_v7  ;;  %v1922_v9 = vpop.f32.mrb[11].mxu0  ;;  %v2063_v10 = vpop.f32.mrb[13].mxu1  ;;  %v2065_v54 = vmax.f32 %v1920_v6, 0.0 }
 0x3d2   :  { %v2066_v11 = vmax.f32 %v1922_v9, 0.0 }
 0x3d3   :  { %v2067_v13 = vmax.f32 %v2062_v8, 0.0 }
 0x3d4   :  { %2179 = vmatprep.mubr.f32.mxu1 %v2066_v11 }
 0x3d5   :  { %2180 = vmatmul.mubr.f32.vlgmr.msra.gmra.mrb[14].mxu1 %v2065_v54  ;;  %2846 = vmatmul.mubr.msk.f32.vlgmr.msra.gmra.mrb[12].mxu0 %vm2111_vm3, %v2067_v13 }
 0x3d6   :  { %3770 = vmatpush3.bf16.msra.mxu1 %v3769_v12  ;;  %2864 = vmatprep.mubr.msk.f32.mxu1 %vm3816_vm2, %v3817_v0 }
 0x3d7   :  { %3771 = vmatprep.subr.bf16.mxu1 %v3815_v50 }
 0x3da   :  { %3773 = vmatpush3.bf16.msra.mxu1 %v3772_v37 }
 0x3db   :  { %3774 = vmatprep.subr.bf16.mxu1 %v3815_v50 }
 0x3de   :  { %3776 = vmatpush3.bf16.msra.mxu1 %v3775_v24 }
 0x3df   :  { %3777 = vmatprep.subr.bf16.mxu1 %v3815_v50 }
 0x3e2   :  { %3779 = vmatpush3.bf16.msra.mxu1 %v3778_v27 }
 0x4a8   :  { %v2820_v28 = vpop.f32.mrb[14].mxu1  ;;  %v2251_v29 = vpop.f32.mrb[12].mxu0 }
 0x4a9   :  { %v2821_v31 = vpop.f32.mrb[15].mxu1  ;;  %v2847_v14 = vpop.f32.mrb[13].mxu0 }
 0x4aa   :  { %v2822_v32 = vadd.f32 %v2821_v31, %v2820_v28 }
 0x4ac   :  { %v2182_v50 = vadd.f32 %v2822_v32, %v2749_v30 }
 0x4ae   :  { %v2252_v33 = vadd.f32 %v2251_v29, %v2182_v50 }
 0x4b0   :  { %v2255_v34 = vmax.f32 %v2252_v33, 0.0 }
 0x4b2   :  { %2865 = vmatmul.mubr.msk.f32.vlgmr.msra.gmra.mrb[16].mxu1 %vm2271_vm4, %v2255_v34 }
 0x585   :  { %v2341_v36 = vpop.f32.mrb[16].mxu1 }
 0x586   :  { %v2342_v38 = vadd.f32 %v2751_v35, %v2341_v36  ;;  %v2866_v15 = vpop.f32.mrb[17].mxu1 }
 0x588   :  { %2345 = vst [vmem:[#allocation2] sm:$0x3] %v2342_v38 }
 0x589   :  { %3802 = shalt.err (!%p3799_p4)
}
 0x58a   :  { %s3803_s2 = scalar_lea.hbm %s6669_s8, 32 }
 0x58b   :  { %p3804_p5 = scmp.ne.s32.totalorder %s6669_s8, %s3803_s2  ;;  %p3807_p6 = scmp.lt.u32.totalorder %s3803_s2, %s6669_s8 }
 0x58d   :  { %p3809_p7 = pnand %p3807_p6, %p3804_p5 }
 0x58f   :  { %3812 = shalt.err (!%p3809_p7)
}
 0x590   :  { %2355 = dma.vmem_to_hbm [thread:$0]  %s2353_s29, 32, %s6669_s8, [#allocation3]  }
 0x591   :  { %3813 = dma.done.wait [#allocation3], 32  }
 0x592   :  { %3814 = vsyncadd [#allocation3], 4294967264 }
 0x593   :  { %2359 = vsyncpa [#allocation3], 1 }

</bundles_post_ra>
